<compile_context>
chip_gen: v5e
topology: v5e:2x2
jax: 0.10.0
libtpu: 0.0.40
codegen_flags: <defaults>
</compile_context>

<pallas_src>
import functools

import jax
import jax.numpy as jnp
from jax.experimental import pallas as pl
from jax.experimental.pallas import tpu as pltpu


LANE = 128
_VMEM = pl.BlockSpec(memory_space=pltpu.MemorySpace.VMEM)
_VMEM_LIMIT = 32 * 1024 * 1024


def _round_up(x, m):
    return ((x + m - 1) // m) * m


def _mosaic_params():
    return pltpu.CompilerParams(
        dimension_semantics=("parallel", "arbitrary"),
        vmem_limit_bytes=_VMEM_LIMIT,
    )


# ------------------------------ Pallas kernels -------------------------------

def _mm_epilogue_kernel(*refs, relu, has_res):
    """Tiled matmul with fused (folded-BN bias) + residual-add + ReLU epilogue.

    grid = (M tiles ["parallel"], K tiles ["arbitrary"]); f32 VMEM accumulator.
    """
    if has_res:
        a_ref, w_ref, b_ref, r_ref, o_ref, acc_ref = refs
    else:
        a_ref, w_ref, b_ref, o_ref, acc_ref = refs
        r_ref = None
    kk = pl.program_id(1)

    @pl.when(kk == 0)
    def _():
        acc_ref[...] = jnp.zeros_like(acc_ref)

    acc_ref[...] += jnp.dot(a_ref[...], w_ref[...],
                            preferred_element_type=jnp.float32)

    @pl.when(kk == pl.num_programs(1) - 1)
    def _():
        y = acc_ref[...] + b_ref[...]
        if has_res:
            y = y + r_ref[...].astype(jnp.float32)
        if relu:
            y = jnp.maximum(y, 0.0)
        o_ref[...] = y.astype(o_ref.dtype)


def _maxpool_kernel(x_ref, o_ref, acc_ref):
    """Running max over the taps grid axis; taps axis is 'arbitrary'."""
    t = pl.program_id(1)
    v = x_ref[0].astype(jnp.float32)

    @pl.when(t == 0)
    def _():
        acc_ref[...] = v

    @pl.when(t > 0)
    def _():
        acc_ref[...] = jnp.maximum(acc_ref[...], v)

    @pl.when(t == pl.num_programs(1) - 1)
    def _():
        o_ref[...] = acc_ref[...].astype(o_ref.dtype)


def _avgpool_kernel(x_ref, o_ref):
    # x: (B, H*W, C) -> mean over spatial (adaptive avg pool to 1x1)
    o_ref[...] = jnp.mean(x_ref[...].astype(jnp.float32), axis=1)


def _fc_logsoftmax_kernel(x_ref, w_ref, b_ref, o_ref):
    # Padded classes carry a -1e30 bias so they vanish from the softmax.
    logits = jnp.dot(x_ref[...], w_ref[...],
                     preferred_element_type=jnp.float32) + b_ref[...]
    m = jnp.max(logits, axis=-1, keepdims=True)
    z = logits - m
    lse = jnp.log(jnp.sum(jnp.exp(z), axis=-1, keepdims=True))
    o_ref[...] = (z - lse).astype(o_ref.dtype)


# ----------------------------- kernel wrappers --------------------------------

def _fused_matmul(a, w, bias, *, relu, residual=None):
    """epilogue(a @ w + bias [+ residual]) with an M/K-tiled grid.

    `w` is pre-padded to (Kp multiple of 128, N multiple of 128) bf16; `a` is
    zero-padded here to the tiled shape and fed to the MXU in bf16.
    """
    m, k = a.shape
    kp, n = w.shape
    assert k <= kp and kp % LANE == 0 and n % LANE == 0

    tm = min(512, _round_up(m, 8))
    mp = _round_up(m, tm)
    if kp % 512 == 0:
        tk = 512
    elif kp % 256 == 0:
        tk = 256
    else:
        tk = LANE

    a = jnp.pad(a, ((0, mp - m), (0, kp - k))).astype(jnp.bfloat16)
    args = [a, w, bias]
    in_specs = [
        pl.BlockSpec((tm, tk), lambda i, kk: (i, kk)),
        pl.BlockSpec((tk, n), lambda i, kk: (kk, 0)),
        pl.BlockSpec((1, n), lambda i, kk: (0, 0)),
    ]
    has_res = residual is not None
    if has_res:
        res = jnp.pad(residual, ((0, mp - m), (0, 0))).astype(jnp.bfloat16)
        args.append(res)
        in_specs.append(pl.BlockSpec((tm, n), lambda i, kk: (i, 0)))

    out = pl.pallas_call(
        functools.partial(_mm_epilogue_kernel, relu=relu, has_res=has_res),
        out_shape=jax.ShapeDtypeStruct((mp, n), jnp.bfloat16),
        grid_spec=pltpu.PrefetchScalarGridSpec(
            num_scalar_prefetch=0,
            grid=(mp // tm, kp // tk),
            in_specs=in_specs,
            out_specs=pl.BlockSpec((tm, n), lambda i, kk: (i, 0)),
            scratch_shapes=[pltpu.VMEM((tm, n), jnp.float32)],
        ),
        compiler_params=_mosaic_params(),
    )(*args)
    return out[:m]


def _im2col(x, kh, kw, stride, pad):
    """x: (B,H,W,Cp) NHWC -> (B*Ho*Wo, kh*kw*Cp) columns (tap-major, channel-minor)."""
    # TODO(synk): the kh*kw taps are still expanded by XLA in HBM; folding them
    # into the kernel's K loop needs a manual strided-DMA halo pipeline.
    b, h, w, c = x.shape
    if pad > 0:
        x = jnp.pad(x, ((0, 0), (pad, pad), (pad, pad), (0, 0)))
    ho = (h + 2 * pad - kh) // stride + 1
    wo = (w + 2 * pad - kw) // stride + 1
    if kh == 1 and kw == 1:
        cols = x[:, ::stride, ::stride, :][:, :ho, :wo, :].reshape(b * ho * wo, c)
    else:
        taps = [x[:, i:i + stride * ho:stride, j:j + stride * wo:stride, :]
                for i in range(kh) for j in range(kw)]
        cols = jnp.stack(taps, axis=3).reshape(b * ho * wo, kh * kw * c)
    return cols, (b, ho, wo)


def _conv_block(x, pconv, *, kh, kw, stride, pad, relu, residual=None):
    """conv + folded BN (+ residual add) (+ ReLU), one fused Pallas matmul."""
    cols, (b, ho, wo) = _im2col(x, kh, kw, stride, pad)
    res2d = None
    if residual is not None:
        res2d = residual.reshape(b * ho * wo, residual.shape[-1])
    out2d = _fused_matmul(cols, pconv["w"], pconv["b"], relu=relu, residual=res2d)
    return out2d.reshape(b, ho, wo, -1)


def _maxpool(x, k, stride, pad):
    b, h, w, c = x.shape
    xp = jnp.pad(x, ((0, 0), (pad, pad), (pad, pad), (0, 0)),
                 constant_values=-jnp.inf)
    ho = (h + 2 * pad - k) // stride + 1
    wo = (w + 2 * pad - k) // stride + 1
    taps = [xp[:, i:i + stride * ho:stride, j:j + stride * wo:stride, :]
            for i in range(k) for j in range(k)]
    m = b * ho * wo
    stk = jnp.stack(taps, axis=0).reshape(k * k, m, c)

    tm = min(512, _round_up(m, 8))
    mp = _round_up(m, tm)
    stk = jnp.pad(stk, ((0, 0), (0, mp - m), (0, 0)))
    out = pl.pallas_call(
        _maxpool_kernel,
        out_shape=jax.ShapeDtypeStruct((mp, c), jnp.bfloat16),
        grid_spec=pltpu.PrefetchScalarGridSpec(
            num_scalar_prefetch=0,
            grid=(mp // tm, k * k),
            in_specs=[pl.BlockSpec((1, tm, c), lambda i, t: (t, i, 0))],
            out_specs=pl.BlockSpec((tm, c), lambda i, t: (i, 0)),
            scratch_shapes=[pltpu.VMEM((tm, c), jnp.float32)],
        ),
        compiler_params=_mosaic_params(),
    )(stk)
    return out[:m].reshape(b, ho, wo, c)


def _avgpool(x):
    b, h, w, c = x.shape
    return pl.pallas_call(
        _avgpool_kernel,
        out_shape=jax.ShapeDtypeStruct((b, c), jnp.float32),
        in_specs=[_VMEM],
        out_specs=_VMEM,
    )(x.reshape(b, h * w, c))


def _fc_logsoftmax(x, w, bias):
    b = x.shape[0]
    n = w.shape[1]
    return pl.pallas_call(
        _fc_logsoftmax_kernel,
        out_shape=jax.ShapeDtypeStruct((b, n), jnp.float32),
        in_specs=[_VMEM, _VMEM, _VMEM],
        out_specs=_VMEM,
    )(x, w, bias)


# ------------------------------- forward pass ---------------------------------

def _bottleneck(x, blk, *, stride):
    out = _conv_block(x, blk["conv1"], kh=1, kw=1, stride=1, pad=0, relu=True)
    out = _conv_block(out, blk["conv2"], kh=3, kw=3, stride=stride, pad=1, relu=True)
    if blk["down"] is not None:
        identity = _conv_block(x, blk["down"], kh=1, kw=1, stride=stride, pad=0,
                               relu=False)
    else:
        identity = x
    # conv3 + folded BN + residual add + ReLU fused into one kernel.
    return _conv_block(out, blk["conv3"], kh=1, kw=1, stride=1, pad=0, relu=True,
                       residual=identity)


def build_forward(num_classes):
    stage_strides = (1, 2, 2, 2)

    @jax.jit
    def forward(params, x_nchw):
        x = jnp.transpose(x_nchw, (0, 2, 3, 1)).astype(jnp.float32)  # NCHW -> NHWC
        x = _conv_block(x, params["conv1"], kh=7, kw=7, stride=2, pad=3, relu=True)
        x = _maxpool(x, 3, 2, 1)
        for stage, s in zip(params["stages"], stage_strides):
            x = _bottleneck(x, stage["first"], stride=s)
            if stage["rest"] is not None:
                def body(carry, blk):
                    return _bottleneck(carry, blk, stride=1), None
                x, _ = jax.lax.scan(body, x, stage["rest"])
        pooled = _avgpool(x)                      # adaptive avg-pool to (1, 1)
        logp = _fc_logsoftmax(pooled, params["fc_w"], params["fc_b"])
        return logp[:, :num_classes]

    return forward


# --------------------------- deterministic params -----------------------------

def _fold_bn_into_conv(w, bn, cin_pad, eps=1e-5):
    """Pre-layout a conv as a lane-dense (Kpad, Npad) bf16 matrix with BN folded."""
    cout, cin, kh, kw = w.shape
    scale = bn["gamma"] / jnp.sqrt(bn["var"] + eps)
    shift = bn["beta"] - bn["mean"] * scale
    wp = jnp.zeros((cout, cin_pad, kh, kw), jnp.float32).at[:, :cin].set(w)
    wmat = jnp.transpose(wp, (2, 3, 1, 0)).reshape(kh * kw * cin_pad, cout)
    wmat = wmat * scale[None, :]
    n_pad = _round_up(cout, LANE)
    k_nat = kh * kw * cin_pad
    k_pad = _round_up(k_nat, LANE)
    wmat = jnp.pad(wmat, ((0, k_pad - k_nat), (0, n_pad - cout)))
    bias = jnp.pad(shift, (0, n_pad - cout)).reshape(1, n_pad)
    return {"w": wmat.astype(jnp.bfloat16), "b": bias.astype(jnp.float32)}


def make_resnet152_params(key, num_classes=2, width=8):
    """ResNet-152 topology ([3, 8, 36, 3] Bottleneck blocks) at reduced width.

    BatchNorm (eval mode, frozen feature extractor) is folded into each conv's
    weight/bias once, here, instead of on every forward call.
    """
    # TODO(synk): pretrained ResNet152_Weights cannot be loaded here; weights
    # are synthetic deterministic tensors with the same layer topology.
    layers_cfg = [3, 8, 36, 3]
    planes_cfg = [width, 2 * width, 4 * width, 8 * width]
    expansion = 4
    counter = [0]

    def nk():
        counter[0] += 1
        return jax.random.fold_in(key, counter[0])

    def conv_w(cout, cin, kh, kw):
        fan_in = cin * kh * kw
        return (jax.random.normal(nk(), (cout, cin, kh, kw), jnp.float32)
                * jnp.sqrt(2.0 / fan_in))

    def bn_init(c, gamma=1.0):
        return dict(gamma=jnp.full((c,), gamma, jnp.float32),
                    beta=jnp.zeros((c,), jnp.float32),
                    mean=jnp.zeros((c,), jnp.float32),
                    var=jnp.ones((c,), jnp.float32))

    params = {"conv1": _fold_bn_into_conv(conv_w(width, 3, 7, 7),
                                          bn_init(width), cin_pad=3)}
    inplanes = width
    stages = []
    for planes, nblocks, stride0 in zip(planes_cfg, layers_cfg, (1, 2, 2, 2)):
        blocks = []
        for bi in range(nblocks):
            stride = stride0 if bi == 0 else 1
            blk = {
                "conv1": _fold_bn_into_conv(conv_w(planes, inplanes, 1, 1),
                                            bn_init(planes),
                                            cin_pad=_round_up(inplanes, LANE)),
                "conv2": _fold_bn_into_conv(conv_w(planes, planes, 3, 3),
                                            bn_init(planes),
                                            cin_pad=_round_up(planes, LANE)),
                # small gamma on the last BN keeps the 50-block residual stack
                # numerically stable with synthetic (non-pretrained) weights.
                "conv3": _fold_bn_into_conv(conv_w(planes * expansion, planes, 1, 1),
                                            bn_init(planes * expansion, gamma=0.1),
                                            cin_pad=_round_up(planes, LANE)),
                "down": None,
            }
            if stride != 1 or inplanes != planes * expansion:
                blk["down"] = _fold_bn_into_conv(
                    conv_w(planes * expansion, inplanes, 1, 1),
                    bn_init(planes * expansion),
                    cin_pad=_round_up(inplanes, LANE))
            blocks.append(blk)
            inplanes = planes * expansion
        rest = blocks[1:]
        stages.append({
            "first": blocks[0],
            # identical middle blocks get stacked so the forward can scan them
            # (Pallas kernels lowered once per stage instead of once per block)
            "rest": (jax.tree_util.tree_map(lambda *xs: jnp.stack(xs, axis=0), *rest)
                     if rest else None),
        })
    params["stages"] = stages

    num_features = inplanes            # analogue of resnet152.fc.in_features
    c_pad = _round_up(num_features, LANE)
    n_pad = _round_up(num_classes, LANE)
    fc_w = (jax.random.normal(nk(), (num_features, num_classes), jnp.float32)
            / jnp.sqrt(num_features))
    params["fc_w"] = (jnp.zeros((c_pad, n_pad), jnp.float32)
                      .at[:num_features, :num_classes].set(fc_w))
    # padded (fake) classes get a huge negative bias so LogSoftmax ignores them
    params["fc_b"] = (jnp.full((1, n_pad), -1e30, jnp.float32)
                      .at[0, :num_classes].set(0.0))
    return params


# ------------------------------------ main -------------------------------------

if __name__ == "__main__":
    num_classes = 2
    params = make_resnet152_params(jax.random.PRNGKey(42),
                                   num_classes=num_classes, width=8)
    forward = build_forward(num_classes)

    x = jax.random.normal(jax.random.PRNGKey(0), (2, 3, 32, 32), jnp.float32)  # NCHW
    out = jax.block_until_ready(forward(params, x))

    assert out.shape == (2, num_classes), out.shape
    assert bool(jnp.all(jnp.isfinite(out)))
    # rows of LogSoftmax(dim=1) must exp-sum to 1
    assert bool(jnp.allclose(jnp.sum(jnp.exp(out), axis=1), 1.0, atol=1e-3))
    print("KERNEL_OK")
</pallas_src>

<mosaic_0001>
module attributes {stable_mosaic.version = 11 : i64} {
  func.func @_mm_epilogue_kernel(%arg0: i32, %arg1: i32, %arg2: memref<512x256xbf16, #tpu.memory_space<vmem>>, %arg3: memref<256x128xbf16, #tpu.memory_space<vmem>>, %arg4: memref<1x128xf32, #tpu.memory_space<vmem>>, %arg5: memref<512x128xbf16, #tpu.memory_space<vmem>>, %arg6: memref<512x128xf32, #tpu.memory_space<vmem>>) attributes {dimension_semantics = [#tpu.dimension_semantics<parallel>, #tpu.dimension_semantics<arbitrary>], iteration_bounds = array<i64: 1, 1>, scalar_prefetch = 0 : i64, scratch_operands = 1 : i64, tpu.core_type = #tpu.core_type<tc>, window_params = [{transform_indices = @transform_0, window_bounds = array<i64: 512, 256>}, {transform_indices = @transform_1, window_bounds = array<i64: 256, 128>}, {pipeline_mode = #tpu.pipeline_mode<synchronous>, transform_indices = @transform_2, window_bounds = array<i64: 1, 128>}, {transform_indices = @transform_3, window_bounds = array<i64: 512, 128>}]} {
    %c0_i32 = arith.constant 0 : i32
    %0 = arith.cmpi eq, %arg1, %c0_i32 : i32
    %1 = arith.extui %0 : i1 to i32
    %c0_i32_0 = arith.constant 0 : i32
    %2 = arith.cmpi ne, %1, %c0_i32_0 : i32
    scf.if %2 {
      %cst_10 = arith.constant 0.000000e+00 : f32
      %12 = vector.broadcast %cst_10 : f32 to vector<512x128xf32>
      %c0_11 = arith.constant 0 : index
      %c0_12 = arith.constant 0 : index
      %13 = vector.load %arg6[%c0_11, %c0_12] : memref<512x128xf32, #tpu.memory_space<vmem>>, vector<512x128xf32>
      tpu.vector_store %arg6[%c0_11, %c0_12], %12 {strides = array<i32>} : memref<512x128xf32, #tpu.memory_space<vmem>>, vector<512x128xf32>,
    } else {
    }
    %c0 = arith.constant 0 : index
    %c0_1 = arith.constant 0 : index
    %3 = vector.load %arg6[%c0, %c0_1] : memref<512x128xf32, #tpu.memory_space<vmem>>, vector<512x128xf32>
    %c0_2 = arith.constant 0 : index
    %c0_3 = arith.constant 0 : index
    %4 = vector.load %arg2[%c0_2, %c0_3] : memref<512x256xbf16, #tpu.memory_space<vmem>>, vector<512x256xbf16>
    %c0_4 = arith.constant 0 : index
    %c0_5 = arith.constant 0 : index
    %5 = vector.load %arg3[%c0_4, %c0_5] : memref<256x128xbf16, #tpu.memory_space<vmem>>, vector<256x128xbf16>
    %cst = arith.constant dense<0.000000e+00> : vector<512x128xf32>
    %6 = tpu.matmul %4, %5, %cst {dimension_numbers = #tpu.dot_dimension_numbers<[1], [0], [0], [1], [0, 0, 1, 1], [], []>} : vector<512x256xbf16>, vector<256x128xbf16>, vector<512x128xf32> -> vector<512x128xf32>
    %7 = arith.addf %3, %6 : vector<512x128xf32>
    %c0_6 = arith.constant 0 : index
    %c0_7 = arith.constant 0 : index
    %8 = vector.load %arg6[%c0_6, %c0_7] : memref<512x128xf32, #tpu.memory_space<vmem>>, vector<512x128xf32>
    tpu.vector_store %arg6[%c0_6, %c0_7], %7 {strides = array<i32>} : memref<512x128xf32, #tpu.memory_space<vmem>>, vector<512x128xf32>,
    %c0_i32_8 = arith.constant 0 : i32
    %9 = arith.cmpi eq, %arg1, %c0_i32_8 : i32
    %10 = arith.extui %9 : i1 to i32
    %c0_i32_9 = arith.constant 0 : i32
    %11 = arith.cmpi ne, %10, %c0_i32_9 : i32
    scf.if %11 {
      %c0_10 = arith.constant 0 : index
      %c0_11 = arith.constant 0 : index
      %12 = vector.load %arg6[%c0_10, %c0_11] : memref<512x128xf32, #tpu.memory_space<vmem>>, vector<512x128xf32>
      %c0_12 = arith.constant 0 : index
      %c0_13 = arith.constant 0 : index
      %13 = vector.load %arg4[%c0_12, %c0_13] : memref<1x128xf32, #tpu.memory_space<vmem>>, vector<1x128xf32>
      %14 = vector.broadcast %13 : vector<1x128xf32> to vector<512x128xf32>
      %15 = arith.addf %12, %14 : vector<512x128xf32>
      %cst_14 = arith.constant 0.000000e+00 : f32
      %16 = vector.broadcast %cst_14 : f32 to vector<512x128xf32>
      %17 = arith.maximumf %15, %16 : vector<512x128xf32>
      %18 = arith.truncf %17 : vector<512x128xf32> to vector<512x128xbf16>
      %c0_15 = arith.constant 0 : index
      %c0_16 = arith.constant 0 : index
      %19 = vector.load %arg5[%c0_15, %c0_16] : memref<512x128xbf16, #tpu.memory_space<vmem>>, vector<512x128xbf16>
      tpu.vector_store %arg5[%c0_15, %c0_16], %18 {strides = array<i32>} : memref<512x128xbf16, #tpu.memory_space<vmem>>, vector<512x128xbf16>,
    } else {
    }
    return
  }
  func.func @transform_0(%arg0: i32, %arg1: i32) -> (i32, i32) {
    %c0_i32 = arith.constant 0 : i32
    return %arg0, %arg1 : i32, i32
  }
  func.func @transform_1(%arg0: i32, %arg1: i32) -> (i32, i32) {
    %c0_i32 = arith.constant 0 : i32
    %c0_i32_0 = arith.constant 0 : i32
    return %arg1, %c0_i32 : i32, i32
  }
  func.func @transform_2(%arg0: i32, %arg1: i32) -> (i32, i32) {
    %c0_i32 = arith.constant 0 : i32
    %c0_i32_0 = arith.constant 0 : i32
    %c0_i32_1 = arith.constant 0 : i32
    return %c0_i32, %c0_i32_0 : i32, i32
  }
  func.func @transform_3(%arg0: i32, %arg1: i32) -> (i32, i32) {
    %c0_i32 = arith.constant 0 : i32
    %c0_i32_0 = arith.constant 0 : i32
    return %arg0, %c0_i32 : i32, i32
  }
}

module attributes {stable_mosaic.version = 11 : i64} {
  func.func @_mm_epilogue_kernel(%arg0: i32, %arg1: i32, %arg2: memref<128x128xbf16, #tpu.memory_space<vmem>>, %arg3: memref<128x128xbf16, #tpu.memory_space<vmem>>, %arg4: memref<1x128xf32, #tpu.memory_space<vmem>>, %arg5: memref<128x128xbf16, #tpu.memory_space<vmem>>, %arg6: memref<128x128xf32, #tpu.memory_space<vmem>>) attributes {dimension_semantics = [#tpu.dimension_semantics<parallel>, #tpu.dimension_semantics<arbitrary>], iteration_bounds = array<i64: 1, 1>, scalar_prefetch = 0 : i64, scratch_operands = 1 : i64, tpu.core_type = #tpu.core_type<tc>, window_params = [{transform_indices = @transform_0, window_bounds = array<i64: 128, 128>}, {transform_indices = @transform_1, window_bounds = array<i64: 128, 128>}, {pipeline_mode = #tpu.pipeline_mode<synchronous>, transform_indices = @transform_2, window_bounds = array<i64: 1, 128>}, {transform_indices = @transform_3, window_bounds = array<i64: 128, 128>}]} {
    %c0_i32 = arith.constant 0 : i32
    %0 = arith.cmpi eq, %arg1, %c0_i32 : i32
    %1 = arith.extui %0 : i1 to i32
    %c0_i32_0 = arith.constant 0 : i32
    %2 = arith.cmpi ne, %1, %c0_i32_0 : i32
    scf.if %2 {
      %cst_10 = arith.constant 0.000000e+00 : f32
      %12 = vector.broadcast %cst_10 : f32 to vector<128x128xf32>
      %c0_11 = arith.constant 0 : index
      %c0_12 = arith.constant 0 : index
      %13 = vector.load %arg6[%c0_11, %c0_12] : memref<128x128xf32, #tpu.memory_space<vmem>>, vector<128x128xf32>
      tpu.vector_store %arg6[%c0_11, %c0_12], %12 {strides = array<i32>} : memref<128x128xf32, #tpu.memory_space<vmem>>, vector<128x128xf32>,
    } else {
    }
    %c0 = arith.constant 0 : index
    %c0_1 = arith.constant 0 : index
    %3 = vector.load %arg6[%c0, %c0_1] : memref<128x128xf32, #tpu.memory_space<vmem>>, vector<128x128xf32>
    %c0_2 = arith.constant 0 : index
    %c0_3 = arith.constant 0 : index
    %4 = vector.load %arg2[%c0_2, %c0_3] : memref<128x128xbf16, #tpu.memory_space<vmem>>, vector<128x128xbf16>
    %c0_4 = arith.constant 0 : index
    %c0_5 = arith.constant 0 : index
    %5 = vector.load %arg3[%c0_4, %c0_5] : memref<128x128xbf16, #tpu.memory_space<vmem>>, vector<128x128xbf16>
    %cst = arith.constant dense<0.000000e+00> : vector<128x128xf32>
    %6 = tpu.matmul %4, %5, %cst {dimension_numbers = #tpu.dot_dimension_numbers<[1], [0], [0], [1], [0, 0, 1, 1], [], []>} : vector<128x128xbf16>, vector<128x128xbf16>, vector<128x128xf32> -> vector<128x128xf32>
    %7 = arith.addf %3, %6 : vector<128x128xf32>
    %c0_6 = arith.constant 0 : index
    %c0_7 = arith.constant 0 : index
    %8 = vector.load %arg6[%c0_6, %c0_7] : memref<128x128xf32, #tpu.memory_space<vmem>>, vector<128x128xf32>
    tpu.vector_store %arg6[%c0_6, %c0_7], %7 {strides = array<i32>} : memref<128x128xf32, #tpu.memory_space<vmem>>, vector<128x128xf32>,
    %c0_i32_8 = arith.constant 0 : i32
    %9 = arith.cmpi eq, %arg1, %c0_i32_8 : i32
    %10 = arith.extui %9 : i1 to i32
    %c0_i32_9 = arith.constant 0 : i32
    %11 = arith.cmpi ne, %10, %c0_i32_9 : i32
    scf.if %11 {
      %c0_10 = arith.constant 0 : index
      %c0_11 = arith.constant 0 : index
      %12 = vector.load %arg6[%c0_10, %c0_11] : memref<128x128xf32, #tpu.memory_space<vmem>>, vector<128x128xf32>
      %c0_12 = arith.constant 0 : index
      %c0_13 = arith.constant 0 : index
      %13 = vector.load %arg4[%c0_12, %c0_13] : memref<1x128xf32, #tpu.memory_space<vmem>>, vector<1x128xf32>
      %14 = vector.broadcast %13 : vector<1x128xf32> to vector<128x128xf32>
      %15 = arith.addf %12, %14 : vector<128x128xf32>
      %cst_14 = arith.constant 0.000000e+00 : f32
      %16 = vector.broadcast %cst_14 : f32 to vector<128x128xf32>
      %17 = arith.maximumf %15, %16 : vector<128x128xf32>
      %18 = arith.truncf %17 : vector<128x128xf32> to vector<128x128xbf16>
      %c0_15 = arith.constant 0 : index
      %c0_16 = arith.constant 0 : index
      %19 = vector.load %arg5[%c0_15, %c0_16] : memref<128x128xbf16, #tpu.memory_space<vmem>>, vector<128x128xbf16>
      tpu.vector_store %arg5[%c0_15, %c0_16], %18 {strides = array<i32>} : memref<128x128xbf16, #tpu.memory_space<vmem>>, vector<128x128xbf16>,
    } else {
    }
    return
  }
  func.func @transform_0(%arg0: i32, %arg1: i32) -> (i32, i32) {
    %c0_i32 = arith.constant 0 : i32
    return %arg0, %arg1 : i32, i32
  }
  func.func @transform_1(%arg0: i32, %arg1: i32) -> (i32, i32) {
    %c0_i32 = arith.constant 0 : i32
    %c0_i32_0 = arith.constant 0 : i32
    return %arg1, %c0_i32 : i32, i32
  }
  func.func @transform_2(%arg0: i32, %arg1: i32) -> (i32, i32) {
    %c0_i32 = arith.constant 0 : i32
    %c0_i32_0 = arith.constant 0 : i32
    %c0_i32_1 = arith.constant 0 : i32
    return %c0_i32, %c0_i32_0 : i32, i32
  }
  func.func @transform_3(%arg0: i32, %arg1: i32) -> (i32, i32) {
    %c0_i32 = arith.constant 0 : i32
    %c0_i32_0 = arith.constant 0 : i32
    return %arg0, %c0_i32 : i32, i32
  }
}

module attributes {stable_mosaic.version = 11 : i64} {
  func.func @_maxpool_kernel(%arg0: i32, %arg1: i32, %arg2: memref<1x128x128xbf16, #tpu.memory_space<vmem>>, %arg3: memref<128x128xbf16, #tpu.memory_space<vmem>>, %arg4: memref<128x128xf32, #tpu.memory_space<vmem>>) attributes {dimension_semantics = [#tpu.dimension_semantics<parallel>, #tpu.dimension_semantics<arbitrary>], iteration_bounds = array<i64: 1, 9>, scalar_prefetch = 0 : i64, scratch_operands = 1 : i64, tpu.core_type = #tpu.core_type<tc>, window_params = [{transform_indices = @transform_0, window_bounds = array<i64: 1, 128, 128>}, {transform_indices = @transform_1, window_bounds = array<i64: 128, 128>}]} {
    %c0 = arith.constant 0 : index
    %c0_0 = arith.constant 0 : index
    %c0_1 = arith.constant 0 : index
    %0 = vector.load %arg2[%c0, %c0_0, %c0_1] : memref<1x128x128xbf16, #tpu.memory_space<vmem>>, vector<1x128x128xbf16>
    %1 = vector.shape_cast %0 : vector<1x128x128xbf16> to vector<128x128xbf16>
    %2 = arith.extf %1 : vector<128x128xbf16> to vector<128x128xf32>
    %c0_i32 = arith.constant 0 : i32
    %3 = arith.cmpi eq, %arg1, %c0_i32 : i32
    %4 = arith.extui %3 : i1 to i32
    %c0_i32_2 = arith.constant 0 : i32
    %5 = arith.cmpi ne, %4, %c0_i32_2 : i32
    scf.if %5 {
      %c0_6 = arith.constant 0 : index
      %c0_7 = arith.constant 0 : index
      %12 = vector.load %arg4[%c0_6, %c0_7] : memref<128x128xf32, #tpu.memory_space<vmem>>, vector<128x128xf32>
      tpu.vector_store %arg4[%c0_6, %c0_7], %2 {strides = array<i32>} : memref<128x128xf32, #tpu.memory_space<vmem>>, vector<128x128xf32>,
    } else {
    }
    %c0_i32_3 = arith.constant 0 : i32
    %6 = arith.cmpi sgt, %arg1, %c0_i32_3 : i32
    %7 = arith.extui %6 : i1 to i32
    %c0_i32_4 = arith.constant 0 : i32
    %8 = arith.cmpi ne, %7, %c0_i32_4 : i32
    scf.if %8 {
      %c0_6 = arith.constant 0 : index
      %c0_7 = arith.constant 0 : index
      %12 = vector.load %arg4[%c0_6, %c0_7] : memref<128x128xf32, #tpu.memory_space<vmem>>, vector<128x128xf32>
      %13 = arith.maximumf %12, %2 : vector<128x128xf32>
      %c0_8 = arith.constant 0 : index
      %c0_9 = arith.constant 0 : index
      %14 = vector.load %arg4[%c0_8, %c0_9] : memref<128x128xf32, #tpu.memory_space<vmem>>, vector<128x128xf32>
      tpu.vector_store %arg4[%c0_8, %c0_9], %13 {strides = array<i32>} : memref<128x128xf32, #tpu.memory_space<vmem>>, vector<128x128xf32>,
    } else {
    }
    %c8_i32 = arith.constant 8 : i32
    %9 = arith.cmpi eq, %arg1, %c8_i32 : i32
    %10 = arith.extui %9 : i1 to i32
    %c0_i32_5 = arith.constant 0 : i32
    %11 = arith.cmpi ne, %10, %c0_i32_5 : i32
    scf.if %11 {
      %c0_6 = arith.constant 0 : index
      %c0_7 = arith.constant 0 : index
      %12 = vector.load %arg4[%c0_6, %c0_7] : memref<128x128xf32, #tpu.memory_space<vmem>>, vector<128x128xf32>
      %13 = arith.truncf %12 : vector<128x128xf32> to vector<128x128xbf16>
      %c0_8 = arith.constant 0 : index
      %c0_9 = arith.constant 0 : index
      %14 = vector.load %arg3[%c0_8, %c0_9] : memref<128x128xbf16, #tpu.memory_space<vmem>>, vector<128x128xbf16>
      tpu.vector_store %arg3[%c0_8, %c0_9], %13 {strides = array<i32>} : memref<128x128xbf16, #tpu.memory_space<vmem>>, vector<128x128xbf16>,
    } else {
    }
    return
  }
  func.func @transform_0(%arg0: i32, %arg1: i32) -> (i32, i32, i32) {
    %c0_i32 = arith.constant 0 : i32
    %c0_i32_0 = arith.constant 0 : i32
    return %arg1, %arg0, %c0_i32 : i32, i32, i32
  }
  func.func @transform_1(%arg0: i32, %arg1: i32) -> (i32, i32) {
    %c0_i32 = arith.constant 0 : i32
    %c0_i32_0 = arith.constant 0 : i32
    return %arg0, %c0_i32 : i32, i32
  }
}

module attributes {stable_mosaic.version = 11 : i64} {
  func.func @_mm_epilogue_kernel(%arg0: i32, %arg1: i32, %arg2: memref<128x128xbf16, #tpu.memory_space<vmem>>, %arg3: memref<128x128xbf16, #tpu.memory_space<vmem>>, %arg4: memref<1x128xf32, #tpu.memory_space<vmem>>, %arg5: memref<128x128xbf16, #tpu.memory_space<vmem>>, %arg6: memref<128x128xbf16, #tpu.memory_space<vmem>>, %arg7: memref<128x128xf32, #tpu.memory_space<vmem>>) attributes {dimension_semantics = [#tpu.dimension_semantics<parallel>, #tpu.dimension_semantics<arbitrary>], iteration_bounds = array<i64: 1, 1>, scalar_prefetch = 0 : i64, scratch_operands = 1 : i64, tpu.core_type = #tpu.core_type<tc>, window_params = [{transform_indices = @transform_0, window_bounds = array<i64: 128, 128>}, {transform_indices = @transform_1, window_bounds = array<i64: 128, 128>}, {pipeline_mode = #tpu.pipeline_mode<synchronous>, transform_indices = @transform_2, window_bounds = array<i64: 1, 128>}, {transform_indices = @transform_3, window_bounds = array<i64: 128, 128>}, {transform_indices = @transform_4, window_bounds = array<i64: 128, 128>}]} {
    %c0_i32 = arith.constant 0 : i32
    %0 = arith.cmpi eq, %arg1, %c0_i32 : i32
    %1 = arith.extui %0 : i1 to i32
    %c0_i32_0 = arith.constant 0 : i32
    %2 = arith.cmpi ne, %1, %c0_i32_0 : i32
    scf.if %2 {
      %cst_10 = arith.constant 0.000000e+00 : f32
      %12 = vector.broadcast %cst_10 : f32 to vector<128x128xf32>
      %c0_11 = arith.constant 0 : index
      %c0_12 = arith.constant 0 : index
      %13 = vector.load %arg7[%c0_11, %c0_12] : memref<128x128xf32, #tpu.memory_space<vmem>>, vector<128x128xf32>
      tpu.vector_store %arg7[%c0_11, %c0_12], %12 {strides = array<i32>} : memref<128x128xf32, #tpu.memory_space<vmem>>, vector<128x128xf32>,
    } else {
    }
    %c0 = arith.constant 0 : index
    %c0_1 = arith.constant 0 : index
    %3 = vector.load %arg7[%c0, %c0_1] : memref<128x128xf32, #tpu.memory_space<vmem>>, vector<128x128xf32>
    %c0_2 = arith.constant 0 : index
    %c0_3 = arith.constant 0 : index
    %4 = vector.load %arg2[%c0_2, %c0_3] : memref<128x128xbf16, #tpu.memory_space<vmem>>, vector<128x128xbf16>
    %c0_4 = arith.constant 0 : index
    %c0_5 = arith.constant 0 : index
    %5 = vector.load %arg3[%c0_4, %c0_5] : memref<128x128xbf16, #tpu.memory_space<vmem>>, vector<128x128xbf16>
    %cst = arith.constant dense<0.000000e+00> : vector<128x128xf32>
    %6 = tpu.matmul %4, %5, %cst {dimension_numbers = #tpu.dot_dimension_numbers<[1], [0], [0], [1], [0, 0, 1, 1], [], []>} : vector<128x128xbf16>, vector<128x128xbf16>, vector<128x128xf32> -> vector<128x128xf32>
    %7 = arith.addf %3, %6 : vector<128x128xf32>
    %c0_6 = arith.constant 0 : index
    %c0_7 = arith.constant 0 : index
    %8 = vector.load %arg7[%c0_6, %c0_7] : memref<128x128xf32, #tpu.memory_space<vmem>>, vector<128x128xf32>
    tpu.vector_store %arg7[%c0_6, %c0_7], %7 {strides = array<i32>} : memref<128x128xf32, #tpu.memory_space<vmem>>, vector<128x128xf32>,
    %c0_i32_8 = arith.constant 0 : i32
    %9 = arith.cmpi eq, %arg1, %c0_i32_8 : i32
    %10 = arith.extui %9 : i1 to i32
    %c0_i32_9 = arith.constant 0 : i32
    %11 = arith.cmpi ne, %10, %c0_i32_9 : i32
    scf.if %11 {
      %c0_10 = arith.constant 0 : index
      %c0_11 = arith.constant 0 : index
      %12 = vector.load %arg7[%c0_10, %c0_11] : memref<128x128xf32, #tpu.memory_space<vmem>>, vector<128x128xf32>
      %c0_12 = arith.constant 0 : index
      %c0_13 = arith.constant 0 : index
      %13 = vector.load %arg4[%c0_12, %c0_13] : memref<1x128xf32, #tpu.memory_space<vmem>>, vector<1x128xf32>
      %14 = vector.broadcast %13 : vector<1x128xf32> to vector<128x128xf32>
      %15 = arith.addf %12, %14 : vector<128x128xf32>
      %c0_14 = arith.constant 0 : index
      %c0_15 = arith.constant 0 : index
      %16 = vector.load %arg5[%c0_14, %c0_15] : memref<128x128xbf16, #tpu.memory_space<vmem>>, vector<128x128xbf16>
      %17 = arith.extf %16 : vector<128x128xbf16> to vector<128x128xf32>
      %18 = arith.addf %15, %17 : vector<128x128xf32>
      %cst_16 = arith.constant 0.000000e+00 : f32
      %19 = vector.broadcast %cst_16 : f32 to vector<128x128xf32>
      %20 = arith.maximumf %18, %19 : vector<128x128xf32>
      %21 = arith.truncf %20 : vector<128x128xf32> to vector<128x128xbf16>
      %c0_17 = arith.constant 0 : index
      %c0_18 = arith.constant 0 : index
      %22 = vector.load %arg6[%c0_17, %c0_18] : memref<128x128xbf16, #tpu.memory_space<vmem>>, vector<128x128xbf16>
      tpu.vector_store %arg6[%c0_17, %c0_18], %21 {strides = array<i32>} : memref<128x128xbf16, #tpu.memory_space<vmem>>, vector<128x128xbf16>,
    } else {
    }
    return
  }
  func.func @transform_0(%arg0: i32, %arg1: i32) -> (i32, i32) {
    %c0_i32 = arith.constant 0 : i32
    return %arg0, %arg1 : i32, i32
  }
  func.func @transform_1(%arg0: i32, %arg1: i32) -> (i32, i32) {
    %c0_i32 = arith.constant 0 : i32
    %c0_i32_0 = arith.constant 0 : i32
    return %arg1, %c0_i32 : i32, i32
  }
  func.func @transform_2(%arg0: i32, %arg1: i32) -> (i32, i32) {
    %c0_i32 = arith.constant 0 : i32
    %c0_i32_0 = arith.constant 0 : i32
    %c0_i32_1 = arith.constant 0 : i32
    return %c0_i32, %c0_i32_0 : i32, i32
  }
  func.func @transform_3(%arg0: i32, %arg1: i32) -> (i32, i32) {
    %c0_i32 = arith.constant 0 : i32
    %c0_i32_0 = arith.constant 0 : i32
    return %arg0, %c0_i32 : i32, i32
  }
  func.func @transform_4(%arg0: i32, %arg1: i32) -> (i32, i32) {
    %c0_i32 = arith.constant 0 : i32
    %c0_i32_0 = arith.constant 0 : i32
    return %arg0, %c0_i32 : i32, i32
  }
}

module attributes {stable_mosaic.version = 11 : i64} {
  func.func @_mm_epilogue_kernel(%arg0: i32, %arg1: i32, %arg2: memref<128x128xbf16, #tpu.memory_space<vmem>>, %arg3: memref<128x128xbf16, #tpu.memory_space<vmem>>, %arg4: memref<1x128xf32, #tpu.memory_space<vmem>>, %arg5: memref<128x128xbf16, #tpu.memory_space<vmem>>, %arg6: memref<128x128xf32, #tpu.memory_space<vmem>>) attributes {dimension_semantics = [#tpu.dimension_semantics<parallel>, #tpu.dimension_semantics<arbitrary>], iteration_bounds = array<i64: 1, 9>, scalar_prefetch = 0 : i64, scratch_operands = 1 : i64, tpu.core_type = #tpu.core_type<tc>, window_params = [{transform_indices = @transform_0, window_bounds = array<i64: 128, 128>}, {transform_indices = @transform_1, window_bounds = array<i64: 128, 128>}, {pipeline_mode = #tpu.pipeline_mode<synchronous>, transform_indices = @transform_2, window_bounds = array<i64: 1, 128>}, {transform_indices = @transform_3, window_bounds = array<i64: 128, 128>}]} {
    %c0_i32 = arith.constant 0 : i32
    %0 = arith.cmpi eq, %arg1, %c0_i32 : i32
    %1 = arith.extui %0 : i1 to i32
    %c0_i32_0 = arith.constant 0 : i32
    %2 = arith.cmpi ne, %1, %c0_i32_0 : i32
    scf.if %2 {
      %cst_9 = arith.constant 0.000000e+00 : f32
      %12 = vector.broadcast %cst_9 : f32 to vector<128x128xf32>
      %c0_10 = arith.constant 0 : index
      %c0_11 = arith.constant 0 : index
      %13 = vector.load %arg6[%c0_10, %c0_11] : memref<128x128xf32, #tpu.memory_space<vmem>>, vector<128x128xf32>
      tpu.vector_store %arg6[%c0_10, %c0_11], %12 {strides = array<i32>} : memref<128x128xf32, #tpu.memory_space<vmem>>, vector<128x128xf32>,
    } else {
    }
    %c0 = arith.constant 0 : index
    %c0_1 = arith.constant 0 : index
    %3 = vector.load %arg6[%c0, %c0_1] : memref<128x128xf32, #tpu.memory_space<vmem>>, vector<128x128xf32>
    %c0_2 = arith.constant 0 : index
    %c0_3 = arith.constant 0 : index
    %4 = vector.load %arg2[%c0_2, %c0_3] : memref<128x128xbf16, #tpu.memory_space<vmem>>, vector<128x128xbf16>
    %c0_4 = arith.constant 0 : index
    %c0_5 = arith.constant 0 : index
    %5 = vector.load %arg3[%c0_4, %c0_5] : memref<128x128xbf16, #tpu.memory_space<vmem>>, vector<128x128xbf16>
    %cst = arith.constant dense<0.000000e+00> : vector<128x128xf32>
    %6 = tpu.matmul %4, %5, %cst {dimension_numbers = #tpu.dot_dimension_numbers<[1], [0], [0], [1], [0, 0, 1, 1], [], []>} : vector<128x128xbf16>, vector<128x128xbf16>, vector<128x128xf32> -> vector<128x128xf32>
    %7 = arith.addf %3, %6 : vector<128x128xf32>
    %c0_6 = arith.constant 0 : index
    %c0_7 = arith.constant 0 : index
    %8 = vector.load %arg6[%c0_6, %c0_7] : memref<128x128xf32, #tpu.memory_space<vmem>>, vector<128x128xf32>
    tpu.vector_store %arg6[%c0_6, %c0_7], %7 {strides = array<i32>} : memref<128x128xf32, #tpu.memory_space<vmem>>, vector<128x128xf32>,
    %c8_i32 = arith.constant 8 : i32
    %9 = arith.cmpi eq, %arg1, %c8_i32 : i32
    %10 = arith.extui %9 : i1 to i32
    %c0_i32_8 = arith.constant 0 : i32
    %11 = arith.cmpi ne, %10, %c0_i32_8 : i32
    scf.if %11 {
      %c0_9 = arith.constant 0 : index
      %c0_10 = arith.constant 0 : index
      %12 = vector.load %arg6[%c0_9, %c0_10] : memref<128x128xf32, #tpu.memory_space<vmem>>, vector<128x128xf32>
      %c0_11 = arith.constant 0 : index
      %c0_12 = arith.constant 0 : index
      %13 = vector.load %arg4[%c0_11, %c0_12] : memref<1x128xf32, #tpu.memory_space<vmem>>, vector<1x128xf32>
      %14 = vector.broadcast %13 : vector<1x128xf32> to vector<128x128xf32>
      %15 = arith.addf %12, %14 : vector<128x128xf32>
      %cst_13 = arith.constant 0.000000e+00 : f32
      %16 = vector.broadcast %cst_13 : f32 to vector<128x128xf32>
      %17 = arith.maximumf %15, %16 : vector<128x128xf32>
      %18 = arith.truncf %17 : vector<128x128xf32> to vector<128x128xbf16>
      %c0_14 = arith.constant 0 : index
      %c0_15 = arith.constant 0 : index
      %19 = vector.load %arg5[%c0_14, %c0_15] : memref<128x128xbf16, #tpu.memory_space<vmem>>, vector<128x128xbf16>
      tpu.vector_store %arg5[%c0_14, %c0_15], %18 {strides = array<i32>} : memref<128x128xbf16, #tpu.memory_space<vmem>>, vector<128x128xbf16>,
    } else {
    }
    return
  }
  func.func @transform_0(%arg0: i32, %arg1: i32) -> (i32, i32) {
    %c0_i32 = arith.constant 0 : i32
    return %arg0, %arg1 : i32, i32
  }
  func.func @transform_1(%arg0: i32, %arg1: i32) -> (i32, i32) {
    %c0_i32 = arith.constant 0 : i32
    %c0_i32_0 = arith.constant 0 : i32
    return %arg1, %c0_i32 : i32, i32
  }
  func.func @transform_2(%arg0: i32, %arg1: i32) -> (i32, i32) {
    %c0_i32 = arith.constant 0 : i32
    %c0_i32_0 = arith.constant 0 : i32
    %c0_i32_1 = arith.constant 0 : i32
    return %c0_i32, %c0_i32_0 : i32, i32
  }
  func.func @transform_3(%arg0: i32, %arg1: i32) -> (i32, i32) {
    %c0_i32 = arith.constant 0 : i32
    %c0_i32_0 = arith.constant 0 : i32
    return %arg0, %c0_i32 : i32, i32
  }
}

module attributes {stable_mosaic.version = 11 : i64} {
  func.func @_mm_epilogue_kernel(%arg0: i32, %arg1: i32, %arg2: memref<128x128xbf16, #tpu.memory_space<vmem>>, %arg3: memref<128x128xbf16, #tpu.memory_space<vmem>>, %arg4: memref<1x128xf32, #tpu.memory_space<vmem>>, %arg5: memref<128x128xbf16, #tpu.memory_space<vmem>>, %arg6: memref<128x128xf32, #tpu.memory_space<vmem>>) attributes {dimension_semantics = [#tpu.dimension_semantics<parallel>, #tpu.dimension_semantics<arbitrary>], iteration_bounds = array<i64: 1, 1>, scalar_prefetch = 0 : i64, scratch_operands = 1 : i64, tpu.core_type = #tpu.core_type<tc>, window_params = [{transform_indices = @transform_0, window_bounds = array<i64: 128, 128>}, {transform_indices = @transform_1, window_bounds = array<i64: 128, 128>}, {pipeline_mode = #tpu.pipeline_mode<synchronous>, transform_indices = @transform_2, window_bounds = array<i64: 1, 128>}, {transform_indices = @transform_3, window_bounds = array<i64: 128, 128>}]} {
    %c0_i32 = arith.constant 0 : i32
    %0 = arith.cmpi eq, %arg1, %c0_i32 : i32
    %1 = arith.extui %0 : i1 to i32
    %c0_i32_0 = arith.constant 0 : i32
    %2 = arith.cmpi ne, %1, %c0_i32_0 : i32
    scf.if %2 {
      %cst_10 = arith.constant 0.000000e+00 : f32
      %12 = vector.broadcast %cst_10 : f32 to vector<128x128xf32>
      %c0_11 = arith.constant 0 : index
      %c0_12 = arith.constant 0 : index
      %13 = vector.load %arg6[%c0_11, %c0_12] : memref<128x128xf32, #tpu.memory_space<vmem>>, vector<128x128xf32>
      tpu.vector_store %arg6[%c0_11, %c0_12], %12 {strides = array<i32>} : memref<128x128xf32, #tpu.memory_space<vmem>>, vector<128x128xf32>,
    } else {
    }
    %c0 = arith.constant 0 : index
    %c0_1 = arith.constant 0 : index
    %3 = vector.load %arg6[%c0, %c0_1] : memref<128x128xf32, #tpu.memory_space<vmem>>, vector<128x128xf32>
    %c0_2 = arith.constant 0 : index
    %c0_3 = arith.constant 0 : index
    %4 = vector.load %arg2[%c0_2, %c0_3] : memref<128x128xbf16, #tpu.memory_space<vmem>>, vector<128x128xbf16>
    %c0_4 = arith.constant 0 : index
    %c0_5 = arith.constant 0 : index
    %5 = vector.load %arg3[%c0_4, %c0_5] : memref<128x128xbf16, #tpu.memory_space<vmem>>, vector<128x128xbf16>
    %cst = arith.constant dense<0.000000e+00> : vector<128x128xf32>
    %6 = tpu.matmul %4, %5, %cst {dimension_numbers = #tpu.dot_dimension_numbers<[1], [0], [0], [1], [0, 0, 1, 1], [], []>} : vector<128x128xbf16>, vector<128x128xbf16>, vector<128x128xf32> -> vector<128x128xf32>
    %7 = arith.addf %3, %6 : vector<128x128xf32>
    %c0_6 = arith.constant 0 : index
    %c0_7 = arith.constant 0 : index
    %8 = vector.load %arg6[%c0_6, %c0_7] : memref<128x128xf32, #tpu.memory_space<vmem>>, vector<128x128xf32>
    tpu.vector_store %arg6[%c0_6, %c0_7], %7 {strides = array<i32>} : memref<128x128xf32, #tpu.memory_space<vmem>>, vector<128x128xf32>,
    %c0_i32_8 = arith.constant 0 : i32
    %9 = arith.cmpi eq, %arg1, %c0_i32_8 : i32
    %10 = arith.extui %9 : i1 to i32
    %c0_i32_9 = arith.constant 0 : i32
    %11 = arith.cmpi ne, %10, %c0_i32_9 : i32
    scf.if %11 {
      %c0_10 = arith.constant 0 : index
      %c0_11 = arith.constant 0 : index
      %12 = vector.load %arg6[%c0_10, %c0_11] : memref<128x128xf32, #tpu.memory_space<vmem>>, vector<128x128xf32>
      %c0_12 = arith.constant 0 : index
      %c0_13 = arith.constant 0 : index
      %13 = vector.load %arg4[%c0_12, %c0_13] : memref<1x128xf32, #tpu.memory_space<vmem>>, vector<1x128xf32>
      %14 = vector.broadcast %13 : vector<1x128xf32> to vector<128x128xf32>
      %15 = arith.addf %12, %14 : vector<128x128xf32>
      %16 = arith.truncf %15 : vector<128x128xf32> to vector<128x128xbf16>
      %c0_14 = arith.constant 0 : index
      %c0_15 = arith.constant 0 : index
      %17 = vector.load %arg5[%c0_14, %c0_15] : memref<128x128xbf16, #tpu.memory_space<vmem>>, vector<128x128xbf16>
      tpu.vector_store %arg5[%c0_14, %c0_15], %16 {strides = array<i32>} : memref<128x128xbf16, #tpu.memory_space<vmem>>, vector<128x128xbf16>,
    } else {
    }
    return
  }
  func.func @transform_0(%arg0: i32, %arg1: i32) -> (i32, i32) {
    %c0_i32 = arith.constant 0 : i32
    return %arg0, %arg1 : i32, i32
  }
  func.func @transform_1(%arg0: i32, %arg1: i32) -> (i32, i32) {
    %c0_i32 = arith.constant 0 : i32
    %c0_i32_0 = arith.constant 0 : i32
    return %arg1, %c0_i32 : i32, i32
  }
  func.func @transform_2(%arg0: i32, %arg1: i32) -> (i32, i32) {
    %c0_i32 = arith.constant 0 : i32
    %c0_i32_0 = arith.constant 0 : i32
    %c0_i32_1 = arith.constant 0 : i32
    return %c0_i32, %c0_i32_0 : i32, i32
  }
  func.func @transform_3(%arg0: i32, %arg1: i32) -> (i32, i32) {
    %c0_i32 = arith.constant 0 : i32
    %c0_i32_0 = arith.constant 0 : i32
    return %arg0, %c0_i32 : i32, i32
  }
}

module attributes {stable_mosaic.version = 11 : i64} {
  func.func @_mm_epilogue_kernel(%arg0: i32, %arg1: i32, %arg2: memref<32x128xbf16, #tpu.memory_space<vmem>>, %arg3: memref<128x128xbf16, #tpu.memory_space<vmem>>, %arg4: memref<1x128xf32, #tpu.memory_space<vmem>>, %arg5: memref<32x128xbf16, #tpu.memory_space<vmem>>, %arg6: memref<32x128xf32, #tpu.memory_space<vmem>>) attributes {dimension_semantics = [#tpu.dimension_semantics<parallel>, #tpu.dimension_semantics<arbitrary>], iteration_bounds = array<i64: 1, 9>, scalar_prefetch = 0 : i64, scratch_operands = 1 : i64, tpu.core_type = #tpu.core_type<tc>, window_params = [{transform_indices = @transform_0, window_bounds = array<i64: 32, 128>}, {transform_indices = @transform_1, window_bounds = array<i64: 128, 128>}, {pipeline_mode = #tpu.pipeline_mode<synchronous>, transform_indices = @transform_2, window_bounds = array<i64: 1, 128>}, {transform_indices = @transform_3, window_bounds = array<i64: 32, 128>}]} {
    %c0_i32 = arith.constant 0 : i32
    %0 = arith.cmpi eq, %arg1, %c0_i32 : i32
    %1 = arith.extui %0 : i1 to i32
    %c0_i32_0 = arith.constant 0 : i32
    %2 = arith.cmpi ne, %1, %c0_i32_0 : i32
    scf.if %2 {
      %cst_9 = arith.constant 0.000000e+00 : f32
      %12 = vector.broadcast %cst_9 : f32 to vector<32x128xf32>
      %c0_10 = arith.constant 0 : index
      %c0_11 = arith.constant 0 : index
      %13 = vector.load %arg6[%c0_10, %c0_11] : memref<32x128xf32, #tpu.memory_space<vmem>>, vector<32x128xf32>
      tpu.vector_store %arg6[%c0_10, %c0_11], %12 {strides = array<i32>} : memref<32x128xf32, #tpu.memory_space<vmem>>, vector<32x128xf32>,
    } else {
    }
    %c0 = arith.constant 0 : index
    %c0_1 = arith.constant 0 : index
    %3 = vector.load %arg6[%c0, %c0_1] : memref<32x128xf32, #tpu.memory_space<vmem>>, vector<32x128xf32>
    %c0_2 = arith.constant 0 : index
    %c0_3 = arith.constant 0 : index
    %4 = vector.load %arg2[%c0_2, %c0_3] : memref<32x128xbf16, #tpu.memory_space<vmem>>, vector<32x128xbf16>
    %c0_4 = arith.constant 0 : index
    %c0_5 = arith.constant 0 : index
    %5 = vector.load %arg3[%c0_4, %c0_5] : memref<128x128xbf16, #tpu.memory_space<vmem>>, vector<128x128xbf16>
    %cst = arith.constant dense<0.000000e+00> : vector<32x128xf32>
    %6 = tpu.matmul %4, %5, %cst {dimension_numbers = #tpu.dot_dimension_numbers<[1], [0], [0], [1], [0, 0, 1, 1], [], []>} : vector<32x128xbf16>, vector<128x128xbf16>, vector<32x128xf32> -> vector<32x128xf32>
    %7 = arith.addf %3, %6 : vector<32x128xf32>
    %c0_6 = arith.constant 0 : index
    %c0_7 = arith.constant 0 : index
    %8 = vector.load %arg6[%c0_6, %c0_7] : memref<32x128xf32, #tpu.memory_space<vmem>>, vector<32x128xf32>
    tpu.vector_store %arg6[%c0_6, %c0_7], %7 {strides = array<i32>} : memref<32x128xf32, #tpu.memory_space<vmem>>, vector<32x128xf32>,
    %c8_i32 = arith.constant 8 : i32
    %9 = arith.cmpi eq, %arg1, %c8_i32 : i32
    %10 = arith.extui %9 : i1 to i32
    %c0_i32_8 = arith.constant 0 : i32
    %11 = arith.cmpi ne, %10, %c0_i32_8 : i32
    scf.if %11 {
      %c0_9 = arith.constant 0 : index
      %c0_10 = arith.constant 0 : index
      %12 = vector.load %arg6[%c0_9, %c0_10] : memref<32x128xf32, #tpu.memory_space<vmem>>, vector<32x128xf32>
      %c0_11 = arith.constant 0 : index
      %c0_12 = arith.constant 0 : index
      %13 = vector.load %arg4[%c0_11, %c0_12] : memref<1x128xf32, #tpu.memory_space<vmem>>, vector<1x128xf32>
      %14 = vector.broadcast %13 : vector<1x128xf32> to vector<32x128xf32>
      %15 = arith.addf %12, %14 : vector<32x128xf32>
      %cst_13 = arith.constant 0.000000e+00 : f32
      %16 = vector.broadcast %cst_13 : f32 to vector<32x128xf32>
      %17 = arith.maximumf %15, %16 : vector<32x128xf32>
      %18 = arith.truncf %17 : vector<32x128xf32> to vector<32x128xbf16>
      %c0_14 = arith.constant 0 : index
      %c0_15 = arith.constant 0 : index
      %19 = vector.load %arg5[%c0_14, %c0_15] : memref<32x128xbf16, #tpu.memory_space<vmem>>, vector<32x128xbf16>
      tpu.vector_store %arg5[%c0_14, %c0_15], %18 {strides = array<i32>} : memref<32x128xbf16, #tpu.memory_space<vmem>>, vector<32x128xbf16>,
    } else {
    }
    return
  }
  func.func @transform_0(%arg0: i32, %arg1: i32) -> (i32, i32) {
    %c0_i32 = arith.constant 0 : i32
    return %arg0, %arg1 : i32, i32
  }
  func.func @transform_1(%arg0: i32, %arg1: i32) -> (i32, i32) {
    %c0_i32 = arith.constant 0 : i32
    %c0_i32_0 = arith.constant 0 : i32
    return %arg1, %c0_i32 : i32, i32
  }
  func.func @transform_2(%arg0: i32, %arg1: i32) -> (i32, i32) {
    %c0_i32 = arith.constant 0 : i32
    %c0_i32_0 = arith.constant 0 : i32
    %c0_i32_1 = arith.constant 0 : i32
    return %c0_i32, %c0_i32_0 : i32, i32
  }
  func.func @transform_3(%arg0: i32, %arg1: i32) -> (i32, i32) {
    %c0_i32 = arith.constant 0 : i32
    %c0_i32_0 = arith.constant 0 : i32
    return %arg0, %c0_i32 : i32, i32
  }
}

module attributes {stable_mosaic.version = 11 : i64} {
  func.func @_mm_epilogue_kernel(%arg0: i32, %arg1: i32, %arg2: memref<32x128xbf16, #tpu.memory_space<vmem>>, %arg3: memref<128x128xbf16, #tpu.memory_space<vmem>>, %arg4: memref<1x128xf32, #tpu.memory_space<vmem>>, %arg5: memref<32x128xbf16, #tpu.memory_space<vmem>>, %arg6: memref<32x128xf32, #tpu.memory_space<vmem>>) attributes {dimension_semantics = [#tpu.dimension_semantics<parallel>, #tpu.dimension_semantics<arbitrary>], iteration_bounds = array<i64: 1, 1>, scalar_prefetch = 0 : i64, scratch_operands = 1 : i64, tpu.core_type = #tpu.core_type<tc>, window_params = [{transform_indices = @transform_0, window_bounds = array<i64: 32, 128>}, {transform_indices = @transform_1, window_bounds = array<i64: 128, 128>}, {pipeline_mode = #tpu.pipeline_mode<synchronous>, transform_indices = @transform_2, window_bounds = array<i64: 1, 128>}, {transform_indices = @transform_3, window_bounds = array<i64: 32, 128>}]} {
    %c0_i32 = arith.constant 0 : i32
    %0 = arith.cmpi eq, %arg1, %c0_i32 : i32
    %1 = arith.extui %0 : i1 to i32
    %c0_i32_0 = arith.constant 0 : i32
    %2 = arith.cmpi ne, %1, %c0_i32_0 : i32
    scf.if %2 {
      %cst_10 = arith.constant 0.000000e+00 : f32
      %12 = vector.broadcast %cst_10 : f32 to vector<32x128xf32>
      %c0_11 = arith.constant 0 : index
      %c0_12 = arith.constant 0 : index
      %13 = vector.load %arg6[%c0_11, %c0_12] : memref<32x128xf32, #tpu.memory_space<vmem>>, vector<32x128xf32>
      tpu.vector_store %arg6[%c0_11, %c0_12], %12 {strides = array<i32>} : memref<32x128xf32, #tpu.memory_space<vmem>>, vector<32x128xf32>,
    } else {
    }
    %c0 = arith.constant 0 : index
    %c0_1 = arith.constant 0 : index
    %3 = vector.load %arg6[%c0, %c0_1] : memref<32x128xf32, #tpu.memory_space<vmem>>, vector<32x128xf32>
    %c0_2 = arith.constant 0 : index
    %c0_3 = arith.constant 0 : index
    %4 = vector.load %arg2[%c0_2, %c0_3] : memref<32x128xbf16, #tpu.memory_space<vmem>>, vector<32x128xbf16>
    %c0_4 = arith.constant 0 : index
    %c0_5 = arith.constant 0 : index
    %5 = vector.load %arg3[%c0_4, %c0_5] : memref<128x128xbf16, #tpu.memory_space<vmem>>, vector<128x128xbf16>
    %cst = arith.constant dense<0.000000e+00> : vector<32x128xf32>
    %6 = tpu.matmul %4, %5, %cst {dimension_numbers = #tpu.dot_dimension_numbers<[1], [0], [0], [1], [0, 0, 1, 1], [], []>} : vector<32x128xbf16>, vector<128x128xbf16>, vector<32x128xf32> -> vector<32x128xf32>
    %7 = arith.addf %3, %6 : vector<32x128xf32>
    %c0_6 = arith.constant 0 : index
    %c0_7 = arith.constant 0 : index
    %8 = vector.load %arg6[%c0_6, %c0_7] : memref<32x128xf32, #tpu.memory_space<vmem>>, vector<32x128xf32>
    tpu.vector_store %arg6[%c0_6, %c0_7], %7 {strides = array<i32>} : memref<32x128xf32, #tpu.memory_space<vmem>>, vector<32x128xf32>,
    %c0_i32_8 = arith.constant 0 : i32
    %9 = arith.cmpi eq, %arg1, %c0_i32_8 : i32
    %10 = arith.extui %9 : i1 to i32
    %c0_i32_9 = arith.constant 0 : i32
    %11 = arith.cmpi ne, %10, %c0_i32_9 : i32
    scf.if %11 {
      %c0_10 = arith.constant 0 : index
      %c0_11 = arith.constant 0 : index
      %12 = vector.load %arg6[%c0_10, %c0_11] : memref<32x128xf32, #tpu.memory_space<vmem>>, vector<32x128xf32>
      %c0_12 = arith.constant 0 : index
      %c0_13 = arith.constant 0 : index
      %13 = vector.load %arg4[%c0_12, %c0_13] : memref<1x128xf32, #tpu.memory_space<vmem>>, vector<1x128xf32>
      %14 = vector.broadcast %13 : vector<1x128xf32> to vector<32x128xf32>
      %15 = arith.addf %12, %14 : vector<32x128xf32>
      %16 = arith.truncf %15 : vector<32x128xf32> to vector<32x128xbf16>
      %c0_14 = arith.constant 0 : index
      %c0_15 = arith.constant 0 : index
      %17 = vector.load %arg5[%c0_14, %c0_15] : memref<32x128xbf16, #tpu.memory_space<vmem>>, vector<32x128xbf16>
      tpu.vector_store %arg5[%c0_14, %c0_15], %16 {strides = array<i32>} : memref<32x128xbf16, #tpu.memory_space<vmem>>, vector<32x128xbf16>,
    } else {
    }
    return
  }
  func.func @transform_0(%arg0: i32, %arg1: i32) -> (i32, i32) {
    %c0_i32 = arith.constant 0 : i32
    return %arg0, %arg1 : i32, i32
  }
  func.func @transform_1(%arg0: i32, %arg1: i32) -> (i32, i32) {
    %c0_i32 = arith.constant 0 : i32
    %c0_i32_0 = arith.constant 0 : i32
    return %arg1, %c0_i32 : i32, i32
  }
  func.func @transform_2(%arg0: i32, %arg1: i32) -> (i32, i32) {
    %c0_i32 = arith.constant 0 : i32
    %c0_i32_0 = arith.constant 0 : i32
    %c0_i32_1 = arith.constant 0 : i32
    return %c0_i32, %c0_i32_0 : i32, i32
  }
  func.func @transform_3(%arg0: i32, %arg1: i32) -> (i32, i32) {
    %c0_i32 = arith.constant 0 : i32
    %c0_i32_0 = arith.constant 0 : i32
    return %arg0, %c0_i32 : i32, i32
  }
}

module attributes {stable_mosaic.version = 11 : i64} {
  func.func @_mm_epilogue_kernel(%arg0: i32, %arg1: i32, %arg2: memref<32x128xbf16, #tpu.memory_space<vmem>>, %arg3: memref<128x128xbf16, #tpu.memory_space<vmem>>, %arg4: memref<1x128xf32, #tpu.memory_space<vmem>>, %arg5: memref<32x128xbf16, #tpu.memory_space<vmem>>, %arg6: memref<32x128xbf16, #tpu.memory_space<vmem>>, %arg7: memref<32x128xf32, #tpu.memory_space<vmem>>) attributes {dimension_semantics = [#tpu.dimension_semantics<parallel>, #tpu.dimension_semantics<arbitrary>], iteration_bounds = array<i64: 1, 1>, scalar_prefetch = 0 : i64, scratch_operands = 1 : i64, tpu.core_type = #tpu.core_type<tc>, window_params = [{transform_indices = @transform_0, window_bounds = array<i64: 32, 128>}, {transform_indices = @transform_1, window_bounds = array<i64: 128, 128>}, {pipeline_mode = #tpu.pipeline_mode<synchronous>, transform_indices = @transform_2, window_bounds = array<i64: 1, 128>}, {transform_indices = @transform_3, window_bounds = array<i64: 32, 128>}, {transform_indices = @transform_4, window_bounds = array<i64: 32, 128>}]} {
    %c0_i32 = arith.constant 0 : i32
    %0 = arith.cmpi eq, %arg1, %c0_i32 : i32
    %1 = arith.extui %0 : i1 to i32
    %c0_i32_0 = arith.constant 0 : i32
    %2 = arith.cmpi ne, %1, %c0_i32_0 : i32
    scf.if %2 {
      %cst_10 = arith.constant 0.000000e+00 : f32
      %12 = vector.broadcast %cst_10 : f32 to vector<32x128xf32>
      %c0_11 = arith.constant 0 : index
      %c0_12 = arith.constant 0 : index
      %13 = vector.load %arg7[%c0_11, %c0_12] : memref<32x128xf32, #tpu.memory_space<vmem>>, vector<32x128xf32>
      tpu.vector_store %arg7[%c0_11, %c0_12], %12 {strides = array<i32>} : memref<32x128xf32, #tpu.memory_space<vmem>>, vector<32x128xf32>,
    } else {
    }
    %c0 = arith.constant 0 : index
    %c0_1 = arith.constant 0 : index
    %3 = vector.load %arg7[%c0, %c0_1] : memref<32x128xf32, #tpu.memory_space<vmem>>, vector<32x128xf32>
    %c0_2 = arith.constant 0 : index
    %c0_3 = arith.constant 0 : index
    %4 = vector.load %arg2[%c0_2, %c0_3] : memref<32x128xbf16, #tpu.memory_space<vmem>>, vector<32x128xbf16>
    %c0_4 = arith.constant 0 : index
    %c0_5 = arith.constant 0 : index
    %5 = vector.load %arg3[%c0_4, %c0_5] : memref<128x128xbf16, #tpu.memory_space<vmem>>, vector<128x128xbf16>
    %cst = arith.constant dense<0.000000e+00> : vector<32x128xf32>
    %6 = tpu.matmul %4, %5, %cst {dimension_numbers = #tpu.dot_dimension_numbers<[1], [0], [0], [1], [0, 0, 1, 1], [], []>} : vector<32x128xbf16>, vector<128x128xbf16>, vector<32x128xf32> -> vector<32x128xf32>
    %7 = arith.addf %3, %6 : vector<32x128xf32>
    %c0_6 = arith.constant 0 : index
    %c0_7 = arith.constant 0 : index
    %8 = vector.load %arg7[%c0_6, %c0_7] : memref<32x128xf32, #tpu.memory_space<vmem>>, vector<32x128xf32>
    tpu.vector_store %arg7[%c0_6, %c0_7], %7 {strides = array<i32>} : memref<32x128xf32, #tpu.memory_space<vmem>>, vector<32x128xf32>,
    %c0_i32_8 = arith.constant 0 : i32
    %9 = arith.cmpi eq, %arg1, %c0_i32_8 : i32
    %10 = arith.extui %9 : i1 to i32
    %c0_i32_9 = arith.constant 0 : i32
    %11 = arith.cmpi ne, %10, %c0_i32_9 : i32
    scf.if %11 {
      %c0_10 = arith.constant 0 : index
      %c0_11 = arith.constant 0 : index
      %12 = vector.load %arg7[%c0_10, %c0_11] : memref<32x128xf32, #tpu.memory_space<vmem>>, vector<32x128xf32>
      %c0_12 = arith.constant 0 : index
      %c0_13 = arith.constant 0 : index
      %13 = vector.load %arg4[%c0_12, %c0_13] : memref<1x128xf32, #tpu.memory_space<vmem>>, vector<1x128xf32>
      %14 = vector.broadcast %13 : vector<1x128xf32> to vector<32x128xf32>
      %15 = arith.addf %12, %14 : vector<32x128xf32>
      %c0_14 = arith.constant 0 : index
      %c0_15 = arith.constant 0 : index
      %16 = vector.load %arg5[%c0_14, %c0_15] : memref<32x128xbf16, #tpu.memory_space<vmem>>, vector<32x128xbf16>
      %17 = arith.extf %16 : vector<32x128xbf16> to vector<32x128xf32>
      %18 = arith.addf %15, %17 : vector<32x128xf32>
      %cst_16 = arith.constant 0.000000e+00 : f32
      %19 = vector.broadcast %cst_16 : f32 to vector<32x128xf32>
      %20 = arith.maximumf %18, %19 : vector<32x128xf32>
      %21 = arith.truncf %20 : vector<32x128xf32> to vector<32x128xbf16>
      %c0_17 = arith.constant 0 : index
      %c0_18 = arith.constant 0 : index
      %22 = vector.load %arg6[%c0_17, %c0_18] : memref<32x128xbf16, #tpu.memory_space<vmem>>, vector<32x128xbf16>
      tpu.vector_store %arg6[%c0_17, %c0_18], %21 {strides = array<i32>} : memref<32x128xbf16, #tpu.memory_space<vmem>>, vector<32x128xbf16>,
    } else {
    }
    return
  }
  func.func @transform_0(%arg0: i32, %arg1: i32) -> (i32, i32) {
    %c0_i32 = arith.constant 0 : i32
    return %arg0, %arg1 : i32, i32
  }
  func.func @transform_1(%arg0: i32, %arg1: i32) -> (i32, i32) {
    %c0_i32 = arith.constant 0 : i32
    %c0_i32_0 = arith.constant 0 : i32
    return %arg1, %c0_i32 : i32, i32
  }
  func.func @transform_2(%arg0: i32, %arg1: i32) -> (i32, i32) {
    %c0_i32 = arith.constant 0 : i32
    %c0_i32_0 = arith.constant 0 : i32
    %c0_i32_1 = arith.constant 0 : i32
    return %c0_i32, %c0_i32_0 : i32, i32
  }
  func.func @transform_3(%arg0: i32, %arg1: i32) -> (i32, i32) {
    %c0_i32 = arith.constant 0 : i32
    %c0_i32_0 = arith.constant 0 : i32
    return %arg0, %c0_i32 : i32, i32
  }
  func.func @transform_4(%arg0: i32, %arg1: i32) -> (i32, i32) {
    %c0_i32 = arith.constant 0 : i32
    %c0_i32_0 = arith.constant 0 : i32
    return %arg0, %c0_i32 : i32, i32
  }
}

module attributes {stable_mosaic.version = 11 : i64} {
  func.func @_mm_epilogue_kernel(%arg0: i32, %arg1: i32, %arg2: memref<32x128xbf16, #tpu.memory_space<vmem>>, %arg3: memref<128x128xbf16, #tpu.memory_space<vmem>>, %arg4: memref<1x128xf32, #tpu.memory_space<vmem>>, %arg5: memref<32x128xbf16, #tpu.memory_space<vmem>>, %arg6: memref<32x128xf32, #tpu.memory_space<vmem>>) attributes {dimension_semantics = [#tpu.dimension_semantics<parallel>, #tpu.dimension_semantics<arbitrary>], iteration_bounds = array<i64: 1, 1>, scalar_prefetch = 0 : i64, scratch_operands = 1 : i64, tpu.core_type = #tpu.core_type<tc>, window_params = [{transform_indices = @transform_0, window_bounds = array<i64: 32, 128>}, {transform_indices = @transform_1, window_bounds = array<i64: 128, 128>}, {pipeline_mode = #tpu.pipeline_mode<synchronous>, transform_indices = @transform_2, window_bounds = array<i64: 1, 128>}, {transform_indices = @transform_3, window_bounds = array<i64: 32, 128>}]} {
    %c0_i32 = arith.constant 0 : i32
    %0 = arith.cmpi eq, %arg1, %c0_i32 : i32
    %1 = arith.extui %0 : i1 to i32
    %c0_i32_0 = arith.constant 0 : i32
    %2 = arith.cmpi ne, %1, %c0_i32_0 : i32
    scf.if %2 {
      %cst_10 = arith.constant 0.000000e+00 : f32
      %12 = vector.broadcast %cst_10 : f32 to vector<32x128xf32>
      %c0_11 = arith.constant 0 : index
      %c0_12 = arith.constant 0 : index
      %13 = vector.load %arg6[%c0_11, %c0_12] : memref<32x128xf32, #tpu.memory_space<vmem>>, vector<32x128xf32>
      tpu.vector_store %arg6[%c0_11, %c0_12], %12 {strides = array<i32>} : memref<32x128xf32, #tpu.memory_space<vmem>>, vector<32x128xf32>,
    } else {
    }
    %c0 = arith.constant 0 : index
    %c0_1 = arith.constant 0 : index
    %3 = vector.load %arg6[%c0, %c0_1] : memref<32x128xf32, #tpu.memory_space<vmem>>, vector<32x128xf32>
    %c0_2 = arith.constant 0 : index
    %c0_3 = arith.constant 0 : index
    %4 = vector.load %arg2[%c0_2, %c0_3] : memref<32x128xbf16, #tpu.memory_space<vmem>>, vector<32x128xbf16>
    %c0_4 = arith.constant 0 : index
    %c0_5 = arith.constant 0 : index
    %5 = vector.load %arg3[%c0_4, %c0_5] : memref<128x128xbf16, #tpu.memory_space<vmem>>, vector<128x128xbf16>
    %cst = arith.constant dense<0.000000e+00> : vector<32x128xf32>
    %6 = tpu.matmul %4, %5, %cst {dimension_numbers = #tpu.dot_dimension_numbers<[1], [0], [0], [1], [0, 0, 1, 1], [], []>} : vector<32x128xbf16>, vector<128x128xbf16>, vector<32x128xf32> -> vector<32x128xf32>
    %7 = arith.addf %3, %6 : vector<32x128xf32>
    %c0_6 = arith.constant 0 : index
    %c0_7 = arith.constant 0 : index
    %8 = vector.load %arg6[%c0_6, %c0_7] : memref<32x128xf32, #tpu.memory_space<vmem>>, vector<32x128xf32>
    tpu.vector_store %arg6[%c0_6, %c0_7], %7 {strides = array<i32>} : memref<32x128xf32, #tpu.memory_space<vmem>>, vector<32x128xf32>,
    %c0_i32_8 = arith.constant 0 : i32
    %9 = arith.cmpi eq, %arg1, %c0_i32_8 : i32
    %10 = arith.extui %9 : i1 to i32
    %c0_i32_9 = arith.constant 0 : i32
    %11 = arith.cmpi ne, %10, %c0_i32_9 : i32
    scf.if %11 {
      %c0_10 = arith.constant 0 : index
      %c0_11 = arith.constant 0 : index
      %12 = vector.load %arg6[%c0_10, %c0_11] : memref<32x128xf32, #tpu.memory_space<vmem>>, vector<32x128xf32>
      %c0_12 = arith.constant 0 : index
      %c0_13 = arith.constant 0 : index
      %13 = vector.load %arg4[%c0_12, %c0_13] : memref<1x128xf32, #tpu.memory_space<vmem>>, vector<1x128xf32>
      %14 = vector.broadcast %13 : vector<1x128xf32> to vector<32x128xf32>
      %15 = arith.addf %12, %14 : vector<32x128xf32>
      %cst_14 = arith.constant 0.000000e+00 : f32
      %16 = vector.broadcast %cst_14 : f32 to vector<32x128xf32>
      %17 = arith.maximumf %15, %16 : vector<32x128xf32>
      %18 = arith.truncf %17 : vector<32x128xf32> to vector<32x128xbf16>
      %c0_15 = arith.constant 0 : index
      %c0_16 = arith.constant 0 : index
      %19 = vector.load %arg5[%c0_15, %c0_16] : memref<32x128xbf16, #tpu.memory_space<vmem>>, vector<32x128xbf16>
      tpu.vector_store %arg5[%c0_15, %c0_16], %18 {strides = array<i32>} : memref<32x128xbf16, #tpu.memory_space<vmem>>, vector<32x128xbf16>,
    } else {
    }
    return
  }
  func.func @transform_0(%arg0: i32, %arg1: i32) -> (i32, i32) {
    %c0_i32 = arith.constant 0 : i32
    return %arg0, %arg1 : i32, i32
  }
  func.func @transform_1(%arg0: i32, %arg1: i32) -> (i32, i32) {
    %c0_i32 = arith.constant 0 : i32
    %c0_i32_0 = arith.constant 0 : i32
    return %arg1, %c0_i32 : i32, i32
  }
  func.func @transform_2(%arg0: i32, %arg1: i32) -> (i32, i32) {
    %c0_i32 = arith.constant 0 : i32
    %c0_i32_0 = arith.constant 0 : i32
    %c0_i32_1 = arith.constant 0 : i32
    return %c0_i32, %c0_i32_0 : i32, i32
  }
  func.func @transform_3(%arg0: i32, %arg1: i32) -> (i32, i32) {
    %c0_i32 = arith.constant 0 : i32
    %c0_i32_0 = arith.constant 0 : i32
    return %arg0, %c0_i32 : i32, i32
  }
}

module attributes {stable_mosaic.version = 11 : i64} {
  func.func @_mm_epilogue_kernel(%arg0: i32, %arg1: i32, %arg2: memref<8x128xbf16, #tpu.memory_space<vmem>>, %arg3: memref<128x128xbf16, #tpu.memory_space<vmem>>, %arg4: memref<1x128xf32, #tpu.memory_space<vmem>>, %arg5: memref<8x128xbf16, #tpu.memory_space<vmem>>, %arg6: memref<8x128xf32, #tpu.memory_space<vmem>>) attributes {dimension_semantics = [#tpu.dimension_semantics<parallel>, #tpu.dimension_semantics<arbitrary>], iteration_bounds = array<i64: 1, 1>, scalar_prefetch = 0 : i64, scratch_operands = 1 : i64, tpu.core_type = #tpu.core_type<tc>, window_params = [{transform_indices = @transform_0, window_bounds = array<i64: 8, 128>}, {transform_indices = @transform_1, window_bounds = array<i64: 128, 128>}, {pipeline_mode = #tpu.pipeline_mode<synchronous>, transform_indices = @transform_2, window_bounds = array<i64: 1, 128>}, {transform_indices = @transform_3, window_bounds = array<i64: 8, 128>}]} {
    %c0_i32 = arith.constant 0 : i32
    %0 = arith.cmpi eq, %arg1, %c0_i32 : i32
    %1 = arith.extui %0 : i1 to i32
    %c0_i32_0 = arith.constant 0 : i32
    %2 = arith.cmpi ne, %1, %c0_i32_0 : i32
    scf.if %2 {
      %cst_10 = arith.constant 0.000000e+00 : f32
      %12 = vector.broadcast %cst_10 : f32 to vector<8x128xf32>
      %c0_11 = arith.constant 0 : index
      %c0_12 = arith.constant 0 : index
      %13 = vector.load %arg6[%c0_11, %c0_12] : memref<8x128xf32, #tpu.memory_space<vmem>>, vector<8x128xf32>
      tpu.vector_store %arg6[%c0_11, %c0_12], %12 {strides = array<i32>} : memref<8x128xf32, #tpu.memory_space<vmem>>, vector<8x128xf32>,
    } else {
    }
    %c0 = arith.constant 0 : index
    %c0_1 = arith.constant 0 : index
    %3 = vector.load %arg6[%c0, %c0_1] : memref<8x128xf32, #tpu.memory_space<vmem>>, vector<8x128xf32>
    %c0_2 = arith.constant 0 : index
    %c0_3 = arith.constant 0 : index
    %4 = vector.load %arg2[%c0_2, %c0_3] : memref<8x128xbf16, #tpu.memory_space<vmem>>, vector<8x128xbf16>
    %c0_4 = arith.constant 0 : index
    %c0_5 = arith.constant 0 : index
    %5 = vector.load %arg3[%c0_4, %c0_5] : memref<128x128xbf16, #tpu.memory_space<vmem>>, vector<128x128xbf16>
    %cst = arith.constant dense<0.000000e+00> : vector<8x128xf32>
    %6 = tpu.matmul %4, %5, %cst {dimension_numbers = #tpu.dot_dimension_numbers<[1], [0], [0], [1], [0, 0, 1, 1], [], []>} : vector<8x128xbf16>, vector<128x128xbf16>, vector<8x128xf32> -> vector<8x128xf32>
    %7 = arith.addf %3, %6 : vector<8x128xf32>
    %c0_6 = arith.constant 0 : index
    %c0_7 = arith.constant 0 : index
    %8 = vector.load %arg6[%c0_6, %c0_7] : memref<8x128xf32, #tpu.memory_space<vmem>>, vector<8x128xf32>
    tpu.vector_store %arg6[%c0_6, %c0_7], %7 {strides = array<i32>} : memref<8x128xf32, #tpu.memory_space<vmem>>, vector<8x128xf32>,
    %c0_i32_8 = arith.constant 0 : i32
    %9 = arith.cmpi eq, %arg1, %c0_i32_8 : i32
    %10 = arith.extui %9 : i1 to i32
    %c0_i32_9 = arith.constant 0 : i32
    %11 = arith.cmpi ne, %10, %c0_i32_9 : i32
    scf.if %11 {
      %c0_10 = arith.constant 0 : index
      %c0_11 = arith.constant 0 : index
      %12 = vector.load %arg6[%c0_10, %c0_11] : memref<8x128xf32, #tpu.memory_space<vmem>>, vector<8x128xf32>
      %c0_12 = arith.constant 0 : index
      %c0_13 = arith.constant 0 : index
      %13 = vector.load %arg4[%c0_12, %c0_13] : memref<1x128xf32, #tpu.memory_space<vmem>>, vector<1x128xf32>
      %14 = vector.broadcast %13 : vector<1x128xf32> to vector<8x128xf32>
      %15 = arith.addf %12, %14 : vector<8x128xf32>
      %16 = arith.truncf %15 : vector<8x128xf32> to vector<8x128xbf16>
      %c0_14 = arith.constant 0 : index
      %c0_15 = arith.constant 0 : index
      %17 = vector.load %arg5[%c0_14, %c0_15] : memref<8x128xbf16, #tpu.memory_space<vmem>>, vector<8x128xbf16>
      tpu.vector_store %arg5[%c0_14, %c0_15], %16 {strides = array<i32>} : memref<8x128xbf16, #tpu.memory_space<vmem>>, vector<8x128xbf16>,
    } else {
    }
    return
  }
  func.func @transform_0(%arg0: i32, %arg1: i32) -> (i32, i32) {
    %c0_i32 = arith.constant 0 : i32
    return %arg0, %arg1 : i32, i32
  }
  func.func @transform_1(%arg0: i32, %arg1: i32) -> (i32, i32) {
    %c0_i32 = arith.constant 0 : i32
    %c0_i32_0 = arith.constant 0 : i32
    return %arg1, %c0_i32 : i32, i32
  }
  func.func @transform_2(%arg0: i32, %arg1: i32) -> (i32, i32) {
    %c0_i32 = arith.constant 0 : i32
    %c0_i32_0 = arith.constant 0 : i32
    %c0_i32_1 = arith.constant 0 : i32
    return %c0_i32, %c0_i32_0 : i32, i32
  }
  func.func @transform_3(%arg0: i32, %arg1: i32) -> (i32, i32) {
    %c0_i32 = arith.constant 0 : i32
    %c0_i32_0 = arith.constant 0 : i32
    return %arg0, %c0_i32 : i32, i32
  }
}

module attributes {stable_mosaic.version = 11 : i64} {
  func.func @_mm_epilogue_kernel(%arg0: i32, %arg1: i32, %arg2: memref<8x128xbf16, #tpu.memory_space<vmem>>, %arg3: memref<128x128xbf16, #tpu.memory_space<vmem>>, %arg4: memref<1x128xf32, #tpu.memory_space<vmem>>, %arg5: memref<8x128xbf16, #tpu.memory_space<vmem>>, %arg6: memref<8x128xf32, #tpu.memory_space<vmem>>) attributes {dimension_semantics = [#tpu.dimension_semantics<parallel>, #tpu.dimension_semantics<arbitrary>], iteration_bounds = array<i64: 1, 9>, scalar_prefetch = 0 : i64, scratch_operands = 1 : i64, tpu.core_type = #tpu.core_type<tc>, window_params = [{transform_indices = @transform_0, window_bounds = array<i64: 8, 128>}, {transform_indices = @transform_1, window_bounds = array<i64: 128, 128>}, {pipeline_mode = #tpu.pipeline_mode<synchronous>, transform_indices = @transform_2, window_bounds = array<i64: 1, 128>}, {transform_indices = @transform_3, window_bounds = array<i64: 8, 128>}]} {
    %c0_i32 = arith.constant 0 : i32
    %0 = arith.cmpi eq, %arg1, %c0_i32 : i32
    %1 = arith.extui %0 : i1 to i32
    %c0_i32_0 = arith.constant 0 : i32
    %2 = arith.cmpi ne, %1, %c0_i32_0 : i32
    scf.if %2 {
      %cst_9 = arith.constant 0.000000e+00 : f32
      %12 = vector.broadcast %cst_9 : f32 to vector<8x128xf32>
      %c0_10 = arith.constant 0 : index
      %c0_11 = arith.constant 0 : index
      %13 = vector.load %arg6[%c0_10, %c0_11] : memref<8x128xf32, #tpu.memory_space<vmem>>, vector<8x128xf32>
      tpu.vector_store %arg6[%c0_10, %c0_11], %12 {strides = array<i32>} : memref<8x128xf32, #tpu.memory_space<vmem>>, vector<8x128xf32>,
    } else {
    }
    %c0 = arith.constant 0 : index
    %c0_1 = arith.constant 0 : index
    %3 = vector.load %arg6[%c0, %c0_1] : memref<8x128xf32, #tpu.memory_space<vmem>>, vector<8x128xf32>
    %c0_2 = arith.constant 0 : index
    %c0_3 = arith.constant 0 : index
    %4 = vector.load %arg2[%c0_2, %c0_3] : memref<8x128xbf16, #tpu.memory_space<vmem>>, vector<8x128xbf16>
    %c0_4 = arith.constant 0 : index
    %c0_5 = arith.constant 0 : index
    %5 = vector.load %arg3[%c0_4, %c0_5] : memref<128x128xbf16, #tpu.memory_space<vmem>>, vector<128x128xbf16>
    %cst = arith.constant dense<0.000000e+00> : vector<8x128xf32>
    %6 = tpu.matmul %4, %5, %cst {dimension_numbers = #tpu.dot_dimension_numbers<[1], [0], [0], [1], [0, 0, 1, 1], [], []>} : vector<8x128xbf16>, vector<128x128xbf16>, vector<8x128xf32> -> vector<8x128xf32>
    %7 = arith.addf %3, %6 : vector<8x128xf32>
    %c0_6 = arith.constant 0 : index
    %c0_7 = arith.constant 0 : index
    %8 = vector.load %arg6[%c0_6, %c0_7] : memref<8x128xf32, #tpu.memory_space<vmem>>, vector<8x128xf32>
    tpu.vector_store %arg6[%c0_6, %c0_7], %7 {strides = array<i32>} : memref<8x128xf32, #tpu.memory_space<vmem>>, vector<8x128xf32>,
    %c8_i32 = arith.constant 8 : i32
    %9 = arith.cmpi eq, %arg1, %c8_i32 : i32
    %10 = arith.extui %9 : i1 to i32
    %c0_i32_8 = arith.constant 0 : i32
    %11 = arith.cmpi ne, %10, %c0_i32_8 : i32
    scf.if %11 {
      %c0_9 = arith.constant 0 : index
      %c0_10 = arith.constant 0 : index
      %12 = vector.load %arg6[%c0_9, %c0_10] : memref<8x128xf32, #tpu.memory_space<vmem>>, vector<8x128xf32>
      %c0_11 = arith.constant 0 : index
      %c0_12 = arith.constant 0 : index
      %13 = vector.load %arg4[%c0_11, %c0_12] : memref<1x128xf32, #tpu.memory_space<vmem>>, vector<1x128xf32>
      %14 = vector.broadcast %13 : vector<1x128xf32> to vector<8x128xf32>
      %15 = arith.addf %12, %14 : vector<8x128xf32>
      %cst_13 = arith.constant 0.000000e+00 : f32
      %16 = vector.broadcast %cst_13 : f32 to vector<8x128xf32>
      %17 = arith.maximumf %15, %16 : vector<8x128xf32>
      %18 = arith.truncf %17 : vector<8x128xf32> to vector<8x128xbf16>
      %c0_14 = arith.constant 0 : index
      %c0_15 = arith.constant 0 : index
      %19 = vector.load %arg5[%c0_14, %c0_15] : memref<8x128xbf16, #tpu.memory_space<vmem>>, vector<8x128xbf16>
      tpu.vector_store %arg5[%c0_14, %c0_15], %18 {strides = array<i32>} : memref<8x128xbf16, #tpu.memory_space<vmem>>, vector<8x128xbf16>,
    } else {
    }
    return
  }
  func.func @transform_0(%arg0: i32, %arg1: i32) -> (i32, i32) {
    %c0_i32 = arith.constant 0 : i32
    return %arg0, %arg1 : i32, i32
  }
  func.func @transform_1(%arg0: i32, %arg1: i32) -> (i32, i32) {
    %c0_i32 = arith.constant 0 : i32
    %c0_i32_0 = arith.constant 0 : i32
    return %arg1, %c0_i32 : i32, i32
  }
  func.func @transform_2(%arg0: i32, %arg1: i32) -> (i32, i32) {
    %c0_i32 = arith.constant 0 : i32
    %c0_i32_0 = arith.constant 0 : i32
    %c0_i32_1 = arith.constant 0 : i32
    return %c0_i32, %c0_i32_0 : i32, i32
  }
  func.func @transform_3(%arg0: i32, %arg1: i32) -> (i32, i32) {
    %c0_i32 = arith.constant 0 : i32
    %c0_i32_0 = arith.constant 0 : i32
    return %arg0, %c0_i32 : i32, i32
  }
}

module attributes {stable_mosaic.version = 11 : i64} {
  func.func @_mm_epilogue_kernel(%arg0: i32, %arg1: i32, %arg2: memref<8x128xbf16, #tpu.memory_space<vmem>>, %arg3: memref<128x128xbf16, #tpu.memory_space<vmem>>, %arg4: memref<1x128xf32, #tpu.memory_space<vmem>>, %arg5: memref<8x128xbf16, #tpu.memory_space<vmem>>, %arg6: memref<8x128xbf16, #tpu.memory_space<vmem>>, %arg7: memref<8x128xf32, #tpu.memory_space<vmem>>) attributes {dimension_semantics = [#tpu.dimension_semantics<parallel>, #tpu.dimension_semantics<arbitrary>], iteration_bounds = array<i64: 1, 1>, scalar_prefetch = 0 : i64, scratch_operands = 1 : i64, tpu.core_type = #tpu.core_type<tc>, window_params = [{transform_indices = @transform_0, window_bounds = array<i64: 8, 128>}, {transform_indices = @transform_1, window_bounds = array<i64: 128, 128>}, {pipeline_mode = #tpu.pipeline_mode<synchronous>, transform_indices = @transform_2, window_bounds = array<i64: 1, 128>}, {transform_indices = @transform_3, window_bounds = array<i64: 8, 128>}, {transform_indices = @transform_4, window_bounds = array<i64: 8, 128>}]} {
    %c0_i32 = arith.constant 0 : i32
    %0 = arith.cmpi eq, %arg1, %c0_i32 : i32
    %1 = arith.extui %0 : i1 to i32
    %c0_i32_0 = arith.constant 0 : i32
    %2 = arith.cmpi ne, %1, %c0_i32_0 : i32
    scf.if %2 {
      %cst_10 = arith.constant 0.000000e+00 : f32
      %12 = vector.broadcast %cst_10 : f32 to vector<8x128xf32>
      %c0_11 = arith.constant 0 : index
      %c0_12 = arith.constant 0 : index
      %13 = vector.load %arg7[%c0_11, %c0_12] : memref<8x128xf32, #tpu.memory_space<vmem>>, vector<8x128xf32>
      tpu.vector_store %arg7[%c0_11, %c0_12], %12 {strides = array<i32>} : memref<8x128xf32, #tpu.memory_space<vmem>>, vector<8x128xf32>,
    } else {
    }
    %c0 = arith.constant 0 : index
    %c0_1 = arith.constant 0 : index
    %3 = vector.load %arg7[%c0, %c0_1] : memref<8x128xf32, #tpu.memory_space<vmem>>, vector<8x128xf32>
    %c0_2 = arith.constant 0 : index
    %c0_3 = arith.constant 0 : index
    %4 = vector.load %arg2[%c0_2, %c0_3] : memref<8x128xbf16, #tpu.memory_space<vmem>>, vector<8x128xbf16>
    %c0_4 = arith.constant 0 : index
    %c0_5 = arith.constant 0 : index
    %5 = vector.load %arg3[%c0_4, %c0_5] : memref<128x128xbf16, #tpu.memory_space<vmem>>, vector<128x128xbf16>
    %cst = arith.constant dense<0.000000e+00> : vector<8x128xf32>
    %6 = tpu.matmul %4, %5, %cst {dimension_numbers = #tpu.dot_dimension_numbers<[1], [0], [0], [1], [0, 0, 1, 1], [], []>} : vector<8x128xbf16>, vector<128x128xbf16>, vector<8x128xf32> -> vector<8x128xf32>
    %7 = arith.addf %3, %6 : vector<8x128xf32>
    %c0_6 = arith.constant 0 : index
    %c0_7 = arith.constant 0 : index
    %8 = vector.load %arg7[%c0_6, %c0_7] : memref<8x128xf32, #tpu.memory_space<vmem>>, vector<8x128xf32>
    tpu.vector_store %arg7[%c0_6, %c0_7], %7 {strides = array<i32>} : memref<8x128xf32, #tpu.memory_space<vmem>>, vector<8x128xf32>,
    %c0_i32_8 = arith.constant 0 : i32
    %9 = arith.cmpi eq, %arg1, %c0_i32_8 : i32
    %10 = arith.extui %9 : i1 to i32
    %c0_i32_9 = arith.constant 0 : i32
    %11 = arith.cmpi ne, %10, %c0_i32_9 : i32
    scf.if %11 {
      %c0_10 = arith.constant 0 : index
      %c0_11 = arith.constant 0 : index
      %12 = vector.load %arg7[%c0_10, %c0_11] : memref<8x128xf32, #tpu.memory_space<vmem>>, vector<8x128xf32>
      %c0_12 = arith.constant 0 : index
      %c0_13 = arith.constant 0 : index
      %13 = vector.load %arg4[%c0_12, %c0_13] : memref<1x128xf32, #tpu.memory_space<vmem>>, vector<1x128xf32>
      %14 = vector.broadcast %13 : vector<1x128xf32> to vector<8x128xf32>
      %15 = arith.addf %12, %14 : vector<8x128xf32>
      %c0_14 = arith.constant 0 : index
      %c0_15 = arith.constant 0 : index
      %16 = vector.load %arg5[%c0_14, %c0_15] : memref<8x128xbf16, #tpu.memory_space<vmem>>, vector<8x128xbf16>
      %17 = arith.extf %16 : vector<8x128xbf16> to vector<8x128xf32>
      %18 = arith.addf %15, %17 : vector<8x128xf32>
      %cst_16 = arith.constant 0.000000e+00 : f32
      %19 = vector.broadcast %cst_16 : f32 to vector<8x128xf32>
      %20 = arith.maximumf %18, %19 : vector<8x128xf32>
      %21 = arith.truncf %20 : vector<8x128xf32> to vector<8x128xbf16>
      %c0_17 = arith.constant 0 : index
      %c0_18 = arith.constant 0 : index
      %22 = vector.load %arg6[%c0_17, %c0_18] : memref<8x128xbf16, #tpu.memory_space<vmem>>, vector<8x128xbf16>
      tpu.vector_store %arg6[%c0_17, %c0_18], %21 {strides = array<i32>} : memref<8x128xbf16, #tpu.memory_space<vmem>>, vector<8x128xbf16>,
    } else {
    }
    return
  }
  func.func @transform_0(%arg0: i32, %arg1: i32) -> (i32, i32) {
    %c0_i32 = arith.constant 0 : i32
    return %arg0, %arg1 : i32, i32
  }
  func.func @transform_1(%arg0: i32, %arg1: i32) -> (i32, i32) {
    %c0_i32 = arith.constant 0 : i32
    %c0_i32_0 = arith.constant 0 : i32
    return %arg1, %c0_i32 : i32, i32
  }
  func.func @transform_2(%arg0: i32, %arg1: i32) -> (i32, i32) {
    %c0_i32 = arith.constant 0 : i32
    %c0_i32_0 = arith.constant 0 : i32
    %c0_i32_1 = arith.constant 0 : i32
    return %c0_i32, %c0_i32_0 : i32, i32
  }
  func.func @transform_3(%arg0: i32, %arg1: i32) -> (i32, i32) {
    %c0_i32 = arith.constant 0 : i32
    %c0_i32_0 = arith.constant 0 : i32
    return %arg0, %c0_i32 : i32, i32
  }
  func.func @transform_4(%arg0: i32, %arg1: i32) -> (i32, i32) {
    %c0_i32 = arith.constant 0 : i32
    %c0_i32_0 = arith.constant 0 : i32
    return %arg0, %c0_i32 : i32, i32
  }
}

module attributes {stable_mosaic.version = 11 : i64} {
  func.func @_mm_epilogue_kernel(%arg0: i32, %arg1: i32, %arg2: memref<8x128xbf16, #tpu.memory_space<vmem>>, %arg3: memref<128x128xbf16, #tpu.memory_space<vmem>>, %arg4: memref<1x128xf32, #tpu.memory_space<vmem>>, %arg5: memref<8x128xbf16, #tpu.memory_space<vmem>>, %arg6: memref<8x128xf32, #tpu.memory_space<vmem>>) attributes {dimension_semantics = [#tpu.dimension_semantics<parallel>, #tpu.dimension_semantics<arbitrary>], iteration_bounds = array<i64: 1, 1>, scalar_prefetch = 0 : i64, scratch_operands = 1 : i64, tpu.core_type = #tpu.core_type<tc>, window_params = [{transform_indices = @transform_0, window_bounds = array<i64: 8, 128>}, {transform_indices = @transform_1, window_bounds = array<i64: 128, 128>}, {pipeline_mode = #tpu.pipeline_mode<synchronous>, transform_indices = @transform_2, window_bounds = array<i64: 1, 128>}, {transform_indices = @transform_3, window_bounds = array<i64: 8, 128>}]} {
    %c0_i32 = arith.constant 0 : i32
    %0 = arith.cmpi eq, %arg1, %c0_i32 : i32
    %1 = arith.extui %0 : i1 to i32
    %c0_i32_0 = arith.constant 0 : i32
    %2 = arith.cmpi ne, %1, %c0_i32_0 : i32
    scf.if %2 {
      %cst_10 = arith.constant 0.000000e+00 : f32
      %12 = vector.broadcast %cst_10 : f32 to vector<8x128xf32>
      %c0_11 = arith.constant 0 : index
      %c0_12 = arith.constant 0 : index
      %13 = vector.load %arg6[%c0_11, %c0_12] : memref<8x128xf32, #tpu.memory_space<vmem>>, vector<8x128xf32>
      tpu.vector_store %arg6[%c0_11, %c0_12], %12 {strides = array<i32>} : memref<8x128xf32, #tpu.memory_space<vmem>>, vector<8x128xf32>,
    } else {
    }
    %c0 = arith.constant 0 : index
    %c0_1 = arith.constant 0 : index
    %3 = vector.load %arg6[%c0, %c0_1] : memref<8x128xf32, #tpu.memory_space<vmem>>, vector<8x128xf32>
    %c0_2 = arith.constant 0 : index
    %c0_3 = arith.constant 0 : index
    %4 = vector.load %arg2[%c0_2, %c0_3] : memref<8x128xbf16, #tpu.memory_space<vmem>>, vector<8x128xbf16>
    %c0_4 = arith.constant 0 : index
    %c0_5 = arith.constant 0 : index
    %5 = vector.load %arg3[%c0_4, %c0_5] : memref<128x128xbf16, #tpu.memory_space<vmem>>, vector<128x128xbf16>
    %cst = arith.constant dense<0.000000e+00> : vector<8x128xf32>
    %6 = tpu.matmul %4, %5, %cst {dimension_numbers = #tpu.dot_dimension_numbers<[1], [0], [0], [1], [0, 0, 1, 1], [], []>} : vector<8x128xbf16>, vector<128x128xbf16>, vector<8x128xf32> -> vector<8x128xf32>
    %7 = arith.addf %3, %6 : vector<8x128xf32>
    %c0_6 = arith.constant 0 : index
    %c0_7 = arith.constant 0 : index
    %8 = vector.load %arg6[%c0_6, %c0_7] : memref<8x128xf32, #tpu.memory_space<vmem>>, vector<8x128xf32>
    tpu.vector_store %arg6[%c0_6, %c0_7], %7 {strides = array<i32>} : memref<8x128xf32, #tpu.memory_space<vmem>>, vector<8x128xf32>,
    %c0_i32_8 = arith.constant 0 : i32
    %9 = arith.cmpi eq, %arg1, %c0_i32_8 : i32
    %10 = arith.extui %9 : i1 to i32
    %c0_i32_9 = arith.constant 0 : i32
    %11 = arith.cmpi ne, %10, %c0_i32_9 : i32
    scf.if %11 {
      %c0_10 = arith.constant 0 : index
      %c0_11 = arith.constant 0 : index
      %12 = vector.load %arg6[%c0_10, %c0_11] : memref<8x128xf32, #tpu.memory_space<vmem>>, vector<8x128xf32>
      %c0_12 = arith.constant 0 : index
      %c0_13 = arith.constant 0 : index
      %13 = vector.load %arg4[%c0_12, %c0_13] : memref<1x128xf32, #tpu.memory_space<vmem>>, vector<1x128xf32>
      %14 = vector.broadcast %13 : vector<1x128xf32> to vector<8x128xf32>
      %15 = arith.addf %12, %14 : vector<8x128xf32>
      %cst_14 = arith.constant 0.000000e+00 : f32
      %16 = vector.broadcast %cst_14 : f32 to vector<8x128xf32>
      %17 = arith.maximumf %15, %16 : vector<8x128xf32>
      %18 = arith.truncf %17 : vector<8x128xf32> to vector<8x128xbf16>
      %c0_15 = arith.constant 0 : index
      %c0_16 = arith.constant 0 : index
      %19 = vector.load %arg5[%c0_15, %c0_16] : memref<8x128xbf16, #tpu.memory_space<vmem>>, vector<8x128xbf16>
      tpu.vector_store %arg5[%c0_15, %c0_16], %18 {strides = array<i32>} : memref<8x128xbf16, #tpu.memory_space<vmem>>, vector<8x128xbf16>,
    } else {
    }
    return
  }
  func.func @transform_0(%arg0: i32, %arg1: i32) -> (i32, i32) {
    %c0_i32 = arith.constant 0 : i32
    return %arg0, %arg1 : i32, i32
  }
  func.func @transform_1(%arg0: i32, %arg1: i32) -> (i32, i32) {
    %c0_i32 = arith.constant 0 : i32
    %c0_i32_0 = arith.constant 0 : i32
    return %arg1, %c0_i32 : i32, i32
  }
  func.func @transform_2(%arg0: i32, %arg1: i32) -> (i32, i32) {
    %c0_i32 = arith.constant 0 : i32
    %c0_i32_0 = arith.constant 0 : i32
    %c0_i32_1 = arith.constant 0 : i32
    return %c0_i32, %c0_i32_0 : i32, i32
  }
  func.func @transform_3(%arg0: i32, %arg1: i32) -> (i32, i32) {
    %c0_i32 = arith.constant 0 : i32
    %c0_i32_0 = arith.constant 0 : i32
    return %arg0, %c0_i32 : i32, i32
  }
}

module attributes {stable_mosaic.version = 11 : i64} {
  func.func @_mm_epilogue_kernel(%arg0: i32, %arg1: i32, %arg2: memref<8x128xbf16, #tpu.memory_space<vmem>>, %arg3: memref<128x256xbf16, #tpu.memory_space<vmem>>, %arg4: memref<1x256xf32, #tpu.memory_space<vmem>>, %arg5: memref<8x256xbf16, #tpu.memory_space<vmem>>, %arg6: memref<8x256xf32, #tpu.memory_space<vmem>>) attributes {dimension_semantics = [#tpu.dimension_semantics<parallel>, #tpu.dimension_semantics<arbitrary>], iteration_bounds = array<i64: 1, 1>, scalar_prefetch = 0 : i64, scratch_operands = 1 : i64, tpu.core_type = #tpu.core_type<tc>, window_params = [{transform_indices = @transform_0, window_bounds = array<i64: 8, 128>}, {transform_indices = @transform_1, window_bounds = array<i64: 128, 256>}, {pipeline_mode = #tpu.pipeline_mode<synchronous>, transform_indices = @transform_2, window_bounds = array<i64: 1, 256>}, {transform_indices = @transform_3, window_bounds = array<i64: 8, 256>}]} {
    %c0_i32 = arith.constant 0 : i32
    %0 = arith.cmpi eq, %arg1, %c0_i32 : i32
    %1 = arith.extui %0 : i1 to i32
    %c0_i32_0 = arith.constant 0 : i32
    %2 = arith.cmpi ne, %1, %c0_i32_0 : i32
    scf.if %2 {
      %cst_10 = arith.constant 0.000000e+00 : f32
      %12 = vector.broadcast %cst_10 : f32 to vector<8x256xf32>
      %c0_11 = arith.constant 0 : index
      %c0_12 = arith.constant 0 : index
      %13 = vector.load %arg6[%c0_11, %c0_12] : memref<8x256xf32, #tpu.memory_space<vmem>>, vector<8x256xf32>
      tpu.vector_store %arg6[%c0_11, %c0_12], %12 {strides = array<i32>} : memref<8x256xf32, #tpu.memory_space<vmem>>, vector<8x256xf32>,
    } else {
    }
    %c0 = arith.constant 0 : index
    %c0_1 = arith.constant 0 : index
    %3 = vector.load %arg6[%c0, %c0_1] : memref<8x256xf32, #tpu.memory_space<vmem>>, vector<8x256xf32>
    %c0_2 = arith.constant 0 : index
    %c0_3 = arith.constant 0 : index
    %4 = vector.load %arg2[%c0_2, %c0_3] : memref<8x128xbf16, #tpu.memory_space<vmem>>, vector<8x128xbf16>
    %c0_4 = arith.constant 0 : index
    %c0_5 = arith.constant 0 : index
    %5 = vector.load %arg3[%c0_4, %c0_5] : memref<128x256xbf16, #tpu.memory_space<vmem>>, vector<128x256xbf16>
    %cst = arith.constant dense<0.000000e+00> : vector<8x256xf32>
    %6 = tpu.matmul %4, %5, %cst {dimension_numbers = #tpu.dot_dimension_numbers<[1], [0], [0], [1], [0, 0, 1, 1], [], []>} : vector<8x128xbf16>, vector<128x256xbf16>, vector<8x256xf32> -> vector<8x256xf32>
    %7 = arith.addf %3, %6 : vector<8x256xf32>
    %c0_6 = arith.constant 0 : index
    %c0_7 = arith.constant 0 : index
    %8 = vector.load %arg6[%c0_6, %c0_7] : memref<8x256xf32, #tpu.memory_space<vmem>>, vector<8x256xf32>
    tpu.vector_store %arg6[%c0_6, %c0_7], %7 {strides = array<i32>} : memref<8x256xf32, #tpu.memory_space<vmem>>, vector<8x256xf32>,
    %c0_i32_8 = arith.constant 0 : i32
    %9 = arith.cmpi eq, %arg1, %c0_i32_8 : i32
    %10 = arith.extui %9 : i1 to i32
    %c0_i32_9 = arith.constant 0 : i32
    %11 = arith.cmpi ne, %10, %c0_i32_9 : i32
    scf.if %11 {
      %c0_10 = arith.constant 0 : index
      %c0_11 = arith.constant 0 : index
      %12 = vector.load %arg6[%c0_10, %c0_11] : memref<8x256xf32, #tpu.memory_space<vmem>>, vector<8x256xf32>
      %c0_12 = arith.constant 0 : index
      %c0_13 = arith.constant 0 : index
      %13 = vector.load %arg4[%c0_12, %c0_13] : memref<1x256xf32, #tpu.memory_space<vmem>>, vector<1x256xf32>
      %14 = vector.broadcast %13 : vector<1x256xf32> to vector<8x256xf32>
      %15 = arith.addf %12, %14 : vector<8x256xf32>
      %16 = arith.truncf %15 : vector<8x256xf32> to vector<8x256xbf16>
      %c0_14 = arith.constant 0 : index
      %c0_15 = arith.constant 0 : index
      %17 = vector.load %arg5[%c0_14, %c0_15] : memref<8x256xbf16, #tpu.memory_space<vmem>>, vector<8x256xbf16>
      tpu.vector_store %arg5[%c0_14, %c0_15], %16 {strides = array<i32>} : memref<8x256xbf16, #tpu.memory_space<vmem>>, vector<8x256xbf16>,
    } else {
    }
    return
  }
  func.func @transform_0(%arg0: i32, %arg1: i32) -> (i32, i32) {
    %c0_i32 = arith.constant 0 : i32
    return %arg0, %arg1 : i32, i32
  }
  func.func @transform_1(%arg0: i32, %arg1: i32) -> (i32, i32) {
    %c0_i32 = arith.constant 0 : i32
    %c0_i32_0 = arith.constant 0 : i32
    return %arg1, %c0_i32 : i32, i32
  }
  func.func @transform_2(%arg0: i32, %arg1: i32) -> (i32, i32) {
    %c0_i32 = arith.constant 0 : i32
    %c0_i32_0 = arith.constant 0 : i32
    %c0_i32_1 = arith.constant 0 : i32
    return %c0_i32, %c0_i32_0 : i32, i32
  }
  func.func @transform_3(%arg0: i32, %arg1: i32) -> (i32, i32) {
    %c0_i32 = arith.constant 0 : i32
    %c0_i32_0 = arith.constant 0 : i32
    return %arg0, %c0_i32 : i32, i32
  }
}

module attributes {stable_mosaic.version = 11 : i64} {
  func.func @_mm_epilogue_kernel(%arg0: i32, %arg1: i32, %arg2: memref<8x128xbf16, #tpu.memory_space<vmem>>, %arg3: memref<128x256xbf16, #tpu.memory_space<vmem>>, %arg4: memref<1x256xf32, #tpu.memory_space<vmem>>, %arg5: memref<8x256xbf16, #tpu.memory_space<vmem>>, %arg6: memref<8x256xbf16, #tpu.memory_space<vmem>>, %arg7: memref<8x256xf32, #tpu.memory_space<vmem>>) attributes {dimension_semantics = [#tpu.dimension_semantics<parallel>, #tpu.dimension_semantics<arbitrary>], iteration_bounds = array<i64: 1, 1>, scalar_prefetch = 0 : i64, scratch_operands = 1 : i64, tpu.core_type = #tpu.core_type<tc>, window_params = [{transform_indices = @transform_0, window_bounds = array<i64: 8, 128>}, {transform_indices = @transform_1, window_bounds = array<i64: 128, 256>}, {pipeline_mode = #tpu.pipeline_mode<synchronous>, transform_indices = @transform_2, window_bounds = array<i64: 1, 256>}, {transform_indices = @transform_3, window_bounds = array<i64: 8, 256>}, {transform_indices = @transform_4, window_bounds = array<i64: 8, 256>}]} {
    %c0_i32 = arith.constant 0 : i32
    %0 = arith.cmpi eq, %arg1, %c0_i32 : i32
    %1 = arith.extui %0 : i1 to i32
    %c0_i32_0 = arith.constant 0 : i32
    %2 = arith.cmpi ne, %1, %c0_i32_0 : i32
    scf.if %2 {
      %cst_10 = arith.constant 0.000000e+00 : f32
      %12 = vector.broadcast %cst_10 : f32 to vector<8x256xf32>
      %c0_11 = arith.constant 0 : index
      %c0_12 = arith.constant 0 : index
      %13 = vector.load %arg7[%c0_11, %c0_12] : memref<8x256xf32, #tpu.memory_space<vmem>>, vector<8x256xf32>
      tpu.vector_store %arg7[%c0_11, %c0_12], %12 {strides = array<i32>} : memref<8x256xf32, #tpu.memory_space<vmem>>, vector<8x256xf32>,
    } else {
    }
    %c0 = arith.constant 0 : index
    %c0_1 = arith.constant 0 : index
    %3 = vector.load %arg7[%c0, %c0_1] : memref<8x256xf32, #tpu.memory_space<vmem>>, vector<8x256xf32>
    %c0_2 = arith.constant 0 : index
    %c0_3 = arith.constant 0 : index
    %4 = vector.load %arg2[%c0_2, %c0_3] : memref<8x128xbf16, #tpu.memory_space<vmem>>, vector<8x128xbf16>
    %c0_4 = arith.constant 0 : index
    %c0_5 = arith.constant 0 : index
    %5 = vector.load %arg3[%c0_4, %c0_5] : memref<128x256xbf16, #tpu.memory_space<vmem>>, vector<128x256xbf16>
    %cst = arith.constant dense<0.000000e+00> : vector<8x256xf32>
    %6 = tpu.matmul %4, %5, %cst {dimension_numbers = #tpu.dot_dimension_numbers<[1], [0], [0], [1], [0, 0, 1, 1], [], []>} : vector<8x128xbf16>, vector<128x256xbf16>, vector<8x256xf32> -> vector<8x256xf32>
    %7 = arith.addf %3, %6 : vector<8x256xf32>
    %c0_6 = arith.constant 0 : index
    %c0_7 = arith.constant 0 : index
    %8 = vector.load %arg7[%c0_6, %c0_7] : memref<8x256xf32, #tpu.memory_space<vmem>>, vector<8x256xf32>
    tpu.vector_store %arg7[%c0_6, %c0_7], %7 {strides = array<i32>} : memref<8x256xf32, #tpu.memory_space<vmem>>, vector<8x256xf32>,
    %c0_i32_8 = arith.constant 0 : i32
    %9 = arith.cmpi eq, %arg1, %c0_i32_8 : i32
    %10 = arith.extui %9 : i1 to i32
    %c0_i32_9 = arith.constant 0 : i32
    %11 = arith.cmpi ne, %10, %c0_i32_9 : i32
    scf.if %11 {
      %c0_10 = arith.constant 0 : index
      %c0_11 = arith.constant 0 : index
      %12 = vector.load %arg7[%c0_10, %c0_11] : memref<8x256xf32, #tpu.memory_space<vmem>>, vector<8x256xf32>
      %c0_12 = arith.constant 0 : index
      %c0_13 = arith.constant 0 : index
      %13 = vector.load %arg4[%c0_12, %c0_13] : memref<1x256xf32, #tpu.memory_space<vmem>>, vector<1x256xf32>
      %14 = vector.broadcast %13 : vector<1x256xf32> to vector<8x256xf32>
      %15 = arith.addf %12, %14 : vector<8x256xf32>
      %c0_14 = arith.constant 0 : index
      %c0_15 = arith.constant 0 : index
      %16 = vector.load %arg5[%c0_14, %c0_15] : memref<8x256xbf16, #tpu.memory_space<vmem>>, vector<8x256xbf16>
      %17 = arith.extf %16 : vector<8x256xbf16> to vector<8x256xf32>
      %18 = arith.addf %15, %17 : vector<8x256xf32>
      %cst_16 = arith.constant 0.000000e+00 : f32
      %19 = vector.broadcast %cst_16 : f32 to vector<8x256xf32>
      %20 = arith.maximumf %18, %19 : vector<8x256xf32>
      %21 = arith.truncf %20 : vector<8x256xf32> to vector<8x256xbf16>
      %c0_17 = arith.constant 0 : index
      %c0_18 = arith.constant 0 : index
      %22 = vector.load %arg6[%c0_17, %c0_18] : memref<8x256xbf16, #tpu.memory_space<vmem>>, vector<8x256xbf16>
      tpu.vector_store %arg6[%c0_17, %c0_18], %21 {strides = array<i32>} : memref<8x256xbf16, #tpu.memory_space<vmem>>, vector<8x256xbf16>,
    } else {
    }
    return
  }
  func.func @transform_0(%arg0: i32, %arg1: i32) -> (i32, i32) {
    %c0_i32 = arith.constant 0 : i32
    return %arg0, %arg1 : i32, i32
  }
  func.func @transform_1(%arg0: i32, %arg1: i32) -> (i32, i32) {
    %c0_i32 = arith.constant 0 : i32
    %c0_i32_0 = arith.constant 0 : i32
    return %arg1, %c0_i32 : i32, i32
  }
  func.func @transform_2(%arg0: i32, %arg1: i32) -> (i32, i32) {
    %c0_i32 = arith.constant 0 : i32
    %c0_i32_0 = arith.constant 0 : i32
    %c0_i32_1 = arith.constant 0 : i32
    return %c0_i32, %c0_i32_0 : i32, i32
  }
  func.func @transform_3(%arg0: i32, %arg1: i32) -> (i32, i32) {
    %c0_i32 = arith.constant 0 : i32
    %c0_i32_0 = arith.constant 0 : i32
    return %arg0, %c0_i32 : i32, i32
  }
  func.func @transform_4(%arg0: i32, %arg1: i32) -> (i32, i32) {
    %c0_i32 = arith.constant 0 : i32
    %c0_i32_0 = arith.constant 0 : i32
    return %arg0, %c0_i32 : i32, i32
  }
}

module attributes {stable_mosaic.version = 11 : i64} {
  func.func @_mm_epilogue_kernel(%arg0: i32, %arg1: i32, %arg2: memref<8x256xbf16, #tpu.memory_space<vmem>>, %arg3: memref<256x128xbf16, #tpu.memory_space<vmem>>, %arg4: memref<1x128xf32, #tpu.memory_space<vmem>>, %arg5: memref<8x128xbf16, #tpu.memory_space<vmem>>, %arg6: memref<8x128xf32, #tpu.memory_space<vmem>>) attributes {dimension_semantics = [#tpu.dimension_semantics<parallel>, #tpu.dimension_semantics<arbitrary>], iteration_bounds = array<i64: 1, 1>, scalar_prefetch = 0 : i64, scratch_operands = 1 : i64, tpu.core_type = #tpu.core_type<tc>, window_params = [{transform_indices = @transform_0, window_bounds = array<i64: 8, 256>}, {transform_indices = @transform_1, window_bounds = array<i64: 256, 128>}, {pipeline_mode = #tpu.pipeline_mode<synchronous>, transform_indices = @transform_2, window_bounds = array<i64: 1, 128>}, {transform_indices = @transform_3, window_bounds = array<i64: 8, 128>}]} {
    %c0_i32 = arith.constant 0 : i32
    %0 = arith.cmpi eq, %arg1, %c0_i32 : i32
    %1 = arith.extui %0 : i1 to i32
    %c0_i32_0 = arith.constant 0 : i32
    %2 = arith.cmpi ne, %1, %c0_i32_0 : i32
    scf.if %2 {
      %cst_10 = arith.constant 0.000000e+00 : f32
      %12 = vector.broadcast %cst_10 : f32 to vector<8x128xf32>
      %c0_11 = arith.constant 0 : index
      %c0_12 = arith.constant 0 : index
      %13 = vector.load %arg6[%c0_11, %c0_12] : memref<8x128xf32, #tpu.memory_space<vmem>>, vector<8x128xf32>
      tpu.vector_store %arg6[%c0_11, %c0_12], %12 {strides = array<i32>} : memref<8x128xf32, #tpu.memory_space<vmem>>, vector<8x128xf32>,
    } else {
    }
    %c0 = arith.constant 0 : index
    %c0_1 = arith.constant 0 : index
    %3 = vector.load %arg6[%c0, %c0_1] : memref<8x128xf32, #tpu.memory_space<vmem>>, vector<8x128xf32>
    %c0_2 = arith.constant 0 : index
    %c0_3 = arith.constant 0 : index
    %4 = vector.load %arg2[%c0_2, %c0_3] : memref<8x256xbf16, #tpu.memory_space<vmem>>, vector<8x256xbf16>
    %c0_4 = arith.constant 0 : index
    %c0_5 = arith.constant 0 : index
    %5 = vector.load %arg3[%c0_4, %c0_5] : memref<256x128xbf16, #tpu.memory_space<vmem>>, vector<256x128xbf16>
    %cst = arith.constant dense<0.000000e+00> : vector<8x128xf32>
    %6 = tpu.matmul %4, %5, %cst {dimension_numbers = #tpu.dot_dimension_numbers<[1], [0], [0], [1], [0, 0, 1, 1], [], []>} : vector<8x256xbf16>, vector<256x128xbf16>, vector<8x128xf32> -> vector<8x128xf32>
    %7 = arith.addf %3, %6 : vector<8x128xf32>
    %c0_6 = arith.constant 0 : index
    %c0_7 = arith.constant 0 : index
    %8 = vector.load %arg6[%c0_6, %c0_7] : memref<8x128xf32, #tpu.memory_space<vmem>>, vector<8x128xf32>
    tpu.vector_store %arg6[%c0_6, %c0_7], %7 {strides = array<i32>} : memref<8x128xf32, #tpu.memory_space<vmem>>, vector<8x128xf32>,
    %c0_i32_8 = arith.constant 0 : i32
    %9 = arith.cmpi eq, %arg1, %c0_i32_8 : i32
    %10 = arith.extui %9 : i1 to i32
    %c0_i32_9 = arith.constant 0 : i32
    %11 = arith.cmpi ne, %10, %c0_i32_9 : i32
    scf.if %11 {
      %c0_10 = arith.constant 0 : index
      %c0_11 = arith.constant 0 : index
      %12 = vector.load %arg6[%c0_10, %c0_11] : memref<8x128xf32, #tpu.memory_space<vmem>>, vector<8x128xf32>
      %c0_12 = arith.constant 0 : index
      %c0_13 = arith.constant 0 : index
      %13 = vector.load %arg4[%c0_12, %c0_13] : memref<1x128xf32, #tpu.memory_space<vmem>>, vector<1x128xf32>
      %14 = vector.broadcast %13 : vector<1x128xf32> to vector<8x128xf32>
      %15 = arith.addf %12, %14 : vector<8x128xf32>
      %cst_14 = arith.constant 0.000000e+00 : f32
      %16 = vector.broadcast %cst_14 : f32 to vector<8x128xf32>
      %17 = arith.maximumf %15, %16 : vector<8x128xf32>
      %18 = arith.truncf %17 : vector<8x128xf32> to vector<8x128xbf16>
      %c0_15 = arith.constant 0 : index
      %c0_16 = arith.constant 0 : index
      %19 = vector.load %arg5[%c0_15, %c0_16] : memref<8x128xbf16, #tpu.memory_space<vmem>>, vector<8x128xbf16>
      tpu.vector_store %arg5[%c0_15, %c0_16], %18 {strides = array<i32>} : memref<8x128xbf16, #tpu.memory_space<vmem>>, vector<8x128xbf16>,
    } else {
    }
    return
  }
  func.func @transform_0(%arg0: i32, %arg1: i32) -> (i32, i32) {
    %c0_i32 = arith.constant 0 : i32
    return %arg0, %arg1 : i32, i32
  }
  func.func @transform_1(%arg0: i32, %arg1: i32) -> (i32, i32) {
    %c0_i32 = arith.constant 0 : i32
    %c0_i32_0 = arith.constant 0 : i32
    return %arg1, %c0_i32 : i32, i32
  }
  func.func @transform_2(%arg0: i32, %arg1: i32) -> (i32, i32) {
    %c0_i32 = arith.constant 0 : i32
    %c0_i32_0 = arith.constant 0 : i32
    %c0_i32_1 = arith.constant 0 : i32
    return %c0_i32, %c0_i32_0 : i32, i32
  }
  func.func @transform_3(%arg0: i32, %arg1: i32) -> (i32, i32) {
    %c0_i32 = arith.constant 0 : i32
    %c0_i32_0 = arith.constant 0 : i32
    return %arg0, %c0_i32 : i32, i32
  }
}

module attributes {stable_mosaic.version = 11 : i64} {
  func.func @_avgpool_kernel(%arg0: memref<2x1x256xbf16, #tpu.memory_space<vmem>>, %arg1: memref<2x256xf32, #tpu.memory_space<vmem>>) attributes {dimension_semantics = [], scalar_prefetch = 0 : i64, scratch_operands = 0 : i64, tpu.core_type = #tpu.core_type<tc>} {
    %c0 = arith.constant 0 : index
    %c0_0 = arith.constant 0 : index
    %c0_1 = arith.constant 0 : index
    %0 = vector.load %arg0[%c0, %c0_0, %c0_1] : memref<2x1x256xbf16, #tpu.memory_space<vmem>>, vector<2x1x256xbf16>
    %1 = arith.extf %0 : vector<2x1x256xbf16> to vector<2x1x256xf32>
    %cst = arith.constant dense<0.000000e+00> : vector<2x256xf32>
    %2 = vector.multi_reduction <add>, %1, %cst [1] : vector<2x1x256xf32> to vector<2x256xf32>
    %cst_2 = arith.constant 1.000000e+00 : f32
    %3 = vector.broadcast %cst_2 : f32 to vector<2x256xf32>
    %4 = arith.divf %2, %3 : vector<2x256xf32>
    %c0_3 = arith.constant 0 : index
    %c0_4 = arith.constant 0 : index
    %5 = vector.load %arg1[%c0_3, %c0_4] : memref<2x256xf32, #tpu.memory_space<vmem>>, vector<2x256xf32>
    tpu.vector_store %arg1[%c0_3, %c0_4], %4 {strides = array<i32>} : memref<2x256xf32, #tpu.memory_space<vmem>>, vector<2x256xf32>,
    return
  }
}

module attributes {stable_mosaic.version = 11 : i64} {
  func.func @_fc_logsoftmax_kernel(%arg0: memref<2x256xf32, #tpu.memory_space<vmem>>, %arg1: memref<256x128xf32, #tpu.memory_space<vmem>>, %arg2: memref<1x128xf32, #tpu.memory_space<vmem>>, %arg3: memref<2x128xf32, #tpu.memory_space<vmem>>) attributes {dimension_semantics = [], scalar_prefetch = 0 : i64, scratch_operands = 0 : i64, tpu.core_type = #tpu.core_type<tc>} {
    %c0 = arith.constant 0 : index
    %c0_0 = arith.constant 0 : index
    %0 = vector.load %arg0[%c0, %c0_0] : memref<2x256xf32, #tpu.memory_space<vmem>>, vector<2x256xf32>
    %c0_1 = arith.constant 0 : index
    %c0_2 = arith.constant 0 : index
    %1 = vector.load %arg1[%c0_1, %c0_2] : memref<256x128xf32, #tpu.memory_space<vmem>>, vector<256x128xf32>
    %cst = arith.constant dense<0.000000e+00> : vector<2x128xf32>
    %2 = tpu.matmul %0, %1, %cst {dimension_numbers = #tpu.dot_dimension_numbers<[1], [0], [0], [1], [0, 0, 1, 1], [], []>} : vector<2x256xf32>, vector<256x128xf32>, vector<2x128xf32> -> vector<2x128xf32>
    %c0_3 = arith.constant 0 : index
    %c0_4 = arith.constant 0 : index
    %3 = vector.load %arg2[%c0_3, %c0_4] : memref<1x128xf32, #tpu.memory_space<vmem>>, vector<1x128xf32>
    %4 = vector.broadcast %3 : vector<1x128xf32> to vector<2x128xf32>
    %5 = arith.addf %2, %4 : vector<2x128xf32>
    %cst_5 = arith.constant dense<0xFF800000> : vector<2xf32>
    %6 = vector.multi_reduction <maximumf>, %5, %cst_5 [1] : vector<2x128xf32> to vector<2xf32>
    %7 = vector.shape_cast %6 : vector<2xf32> to vector<2x1xf32>
    %8 = vector.broadcast %7 : vector<2x1xf32> to vector<2x128xf32>
    %9 = arith.subf %5, %8 : vector<2x128xf32>
    %10 = math.exp %9 : vector<2x128xf32>
    %cst_6 = arith.constant dense<0.000000e+00> : vector<2xf32>
    %11 = vector.multi_reduction <add>, %10, %cst_6 [1] : vector<2x128xf32> to vector<2xf32>
    %12 = vector.shape_cast %11 : vector<2xf32> to vector<2x1xf32>
    %13 = math.log %12 : vector<2x1xf32>
    %14 = vector.broadcast %13 : vector<2x1xf32> to vector<2x128xf32>
    %15 = arith.subf %9, %14 : vector<2x128xf32>
    %c0_7 = arith.constant 0 : index
    %c0_8 = arith.constant 0 : index
    %16 = vector.load %arg3[%c0_7, %c0_8] : memref<2x128xf32, #tpu.memory_space<vmem>>, vector<2x128xf32>
    tpu.vector_store %arg3[%c0_7, %c0_8], %15 {strides = array<i32>} : memref<2x128xf32, #tpu.memory_space<vmem>>, vector<2x128xf32>,
    return
  }
}

</mosaic_0001>

<bundles_post_ra>
// kernel: forward.21
= control target key start
LH: loop header
LB: loop body
LE: loop exit
PB: predicated region body
PF: predicated region fallthrough
CT: control target
= control target key end

     0   :  { %s528_s6 = smov 0   ;;  %s530_s7 = smov 0   ;;  %s617_s0 = inlined_call_operand.vmem [shape: bf16[9,128,128], index: 0, kind: input, shape index: {}]   ;;  %s618_s1 = inlined_call_operand.vmem [shape: bf16[128,128], index: 1, kind: output, shape index: {}]  }
   0x1   :  { %s532_s8 = smov 0  }
   0x2 LB: > { %s20_s9 = sadd.s32 1, %s512_s7  ;;  %p373_p0 = scmp.ge.s32.totalorder %s516_s8, 1  ;;  %s516_s8 = sphi %s532_s8, %s11_s8   ;;  %s512_s7 = sphi %s530_s7, %s620_s7   ;;  %s508_s6 = sphi %s528_s6, %s619_s6  }
   0x3   : > { %p21_p1 = scmp.ge.s32.totalorder %s20_s9, 9  ;;  %p106_p2 = scmp.lt.s32.totalorder %s516_s8, 10 }
   0x5   : > { %s622_s9 = smov (%p21_p1, %s20_s9), 0  ;;  %p107_p3 = pnand %p373_p0, %p106_p2 }
   0x6   : > { %p131_p4 = scmp.lt.s32.totalorder (!%p107_p3), %s508_s6, 8  ;;  %p376_p5 = scmp.ne.s32.totalorder (!%p107_p3), %s508_s6, 0 }
   0x7   : > { %110 = sbr.rel (%p107_p3) target bundleno = 81 (0x51), region = 24 }
   0xc   : > { %s132_s10 = scalar_select %p131_p4, %s508_s6, 8 }
   0xe   : > { %s383_s11 = sshll.u32 %s132_s10, 6 }
   0xf   : > { %s138_s14 = scalar_lea.vmem %s617_s0, %s383_s11 }
  0x10   : > { %v385_v0 = vld [vmem:[%s138_s14] sm:$0xff]   ;;  %v456_v1 = vld [vmem:[%s138_s14 + $0x8] sm:$0xff]   ;;  %v457_v2 = vld [vmem:[%s138_s14 + $0x10] sm:$0xff]   ;;  %181 = sbr.rel (%p376_p5) target bundleno = 37 (0x25), region = 28 }
  0x11   : > { %v386_v3 = vunpack.c.l.bf16 %v385_v0  ;;  %v387_v4 = vunpack.c.h.bf16 %v385_v0  ;;  %v390_v5 = vunpack.c.l.bf16 %v456_v1  ;;  %v391_v6 = vunpack.c.h.bf16 %v456_v1  ;;  %v458_v7 = vld [vmem:[%s138_s14 + $0x18] sm:$0xff]   ;;  %v553_v8 = vld [vmem:[%s138_s14 + $0x20] sm:$0xff]   ;;  %v555_v9 = vld [vmem:[%s138_s14 + $0x28] sm:$0xff]  }
  0x12   : > { %v394_v10 = vunpack.c.l.bf16 %v457_v2  ;;  %v395_v11 = vunpack.c.h.bf16 %v457_v2  ;;  %v398_v12 = vunpack.c.l.bf16 %v458_v7  ;;  %v399_v13 = vunpack.c.h.bf16 %v458_v7  ;;  %v557_v14 = vld [vmem:[%s138_s14 + $0x30] sm:$0xff]   ;;  %v559_v15 = vld [vmem:[%s138_s14 + $0x38] sm:$0xff]  }
  0x13   : > { %v402_v16 = vunpack.c.l.bf16 %v553_v8  ;;  %v403_v17 = vunpack.c.h.bf16 %v553_v8  ;;  %v406_v18 = vunpack.c.l.bf16 %v555_v9  ;;  %v407_v19 = vunpack.c.h.bf16 %v555_v9 }
  0x14   : > { %v410_v20 = vunpack.c.l.bf16 %v557_v14  ;;  %v411_v21 = vunpack.c.h.bf16 %v557_v14  ;;  %v414_v22 = vunpack.c.l.bf16 %v559_v15  ;;  %v415_v23 = vunpack.c.h.bf16 %v559_v15 }
  0x15   : > { %182 = vst [vmem:[#allocation2 + $0x30] sm:$0xff] %v386_v3 }
  0x16   : > { %183 = vst [vmem:[#allocation2] sm:$0xff] %v387_v4 }
  0x17   : > { %184 = vst [vmem:[#allocation2 + $0x58] sm:$0xff] %v390_v5 }
  0x18   : > { %185 = vst [vmem:[#allocation2 + $0x18] sm:$0xff] %v391_v6 }
  0x19   : > { %186 = vst [vmem:[#allocation2 + $0x50] sm:$0xff] %v394_v10 }
  0x1a   : > { %187 = vst [vmem:[#allocation2 + $0x68] sm:$0xff] %v395_v11 }
  0x1b   : > { %188 = vst [vmem:[#allocation2 + $0x8] sm:$0xff] %v398_v12 }
  0x1c   : > { %189 = vst [vmem:[#allocation2 + $0x48] sm:$0xff] %v399_v13 }
  0x1d   : > { %190 = vst [vmem:[#allocation2 + $0x40] sm:$0xff] %v402_v16 }
  0x1e   : > { %191 = vst [vmem:[#allocation2 + $0x20] sm:$0xff] %v403_v17 }
  0x1f   : > { %192 = vst [vmem:[#allocation2 + $0x10] sm:$0xff] %v406_v18 }
  0x20   : > { %193 = vst [vmem:[#allocation2 + $0x38] sm:$0xff] %v407_v19 }
  0x21   : > { %194 = vst [vmem:[#allocation2 + $0x60] sm:$0xff] %v410_v20 }
  0x22   : > { %195 = vst [vmem:[#allocation2 + $0x70] sm:$0xff] %v411_v21 }
  0x23   : > { %196 = vst [vmem:[#allocation2 + $0x78] sm:$0xff] %v414_v22 }
  0x24   : > { %197 = vst [vmem:[#allocation2 + $0x28] sm:$0xff] %v415_v23 }
  0x25 PF: > { %p377_p6 = scmp.le.s32.totalorder %s508_s6, 0 }
  0x27   : > { %201 = sbr.rel (%p377_p6) target bundleno = 63 (0x3f), region = 32 }
  0x2c   : > { %v202_v24 = vld [vmem:[#allocation2 + $0x30] sm:$0xff]  ;;  %v203_v25 = vld [vmem:[#allocation2] sm:$0xff]  ;;  %v204_v26 = vld [vmem:[#allocation2 + $0x58] sm:$0xff] }
  0x2d   : > { %v218_v27 = vmax.f32 %v202_v24, %v386_v3  ;;  %v219_v28 = vmax.f32 %v203_v25, %v387_v4  ;;  %v220_v29 = vmax.f32 %v204_v26, %v390_v5  ;;  %v205_v30 = vld [vmem:[#allocation2 + $0x18] sm:$0xff]  ;;  %v206_v31 = vld [vmem:[#allocation2 + $0x50] sm:$0xff]  ;;  %v207_v32 = vld [vmem:[#allocation2 + $0x68] sm:$0xff] }
  0x2e   : > { %v221_v33 = vmax.f32 %v205_v30, %v391_v6  ;;  %v208_v34 = vld [vmem:[#allocation2 + $0x8] sm:$0xff]  ;;  %v222_v35 = vmax.f32 %v206_v31, %v394_v10  ;;  %v223_v37 = vmax.f32 %v207_v32, %v395_v11  ;;  %v210_v38 = vld [vmem:[#allocation2 + $0x40] sm:$0xff]  ;;  %v212_v42 = vld [vmem:[#allocation2 + $0x10] sm:$0xff] }
  0x2f   : > { %234 = vst [vmem:[#allocation2 + $0x30] sm:$0xff] %v218_v27  ;;  %v209_v36 = vld [vmem:[#allocation2 + $0x48] sm:$0xff]  ;;  %v224_v39 = vmax.f32 %v208_v34, %v398_v12  ;;  %v211_v40 = vld [vmem:[#allocation2 + $0x20] sm:$0xff]  ;;  %v226_v43 = vmax.f32 %v210_v38, %v402_v16  ;;  %v213_v44 = vld [vmem:[#allocation2 + $0x38] sm:$0xff]  ;;  %v228_v47 = vmax.f32 %v212_v42, %v406_v18 }
  0x30   : > { %235 = vst [vmem:[#allocation2] sm:$0xff] %v219_v28  ;;  %v225_v41 = vmax.f32 %v209_v36, %v399_v13  ;;  %v227_v45 = vmax.f32 %v211_v40, %v403_v17  ;;  %v214_v46 = vld [vmem:[#allocation2 + $0x60] sm:$0xff]  ;;  %v215_v48 = vld [vmem:[#allocation2 + $0x70] sm:$0xff]  ;;  %v229_v49 = vmax.f32 %v213_v44, %v407_v19  ;;  %v216_v50 = vld [vmem:[#allocation2 + $0x78] sm:$0xff] }
  0x31   : > { %236 = vst [vmem:[#allocation2 + $0x58] sm:$0xff] %v220_v29  ;;  %v230_v51 = vmax.f32 %v214_v46, %v410_v20  ;;  %v217_v52 = vld [vmem:[#allocation2 + $0x28] sm:$0xff]  ;;  %v231_v53 = vmax.f32 %v215_v48, %v411_v21  ;;  %v232_v54 = vmax.f32 %v216_v50, %v414_v22 }
  0x32   : > { %237 = vst [vmem:[#allocation2 + $0x18] sm:$0xff] %v221_v33  ;;  %v233_v55 = vmax.f32 %v217_v52, %v415_v23 }
  0x33   : > { %238 = vst [vmem:[#allocation2 + $0x50] sm:$0xff] %v222_v35 }
  0x34   : > { %239 = vst [vmem:[#allocation2 + $0x68] sm:$0xff] %v223_v37 }
  0x35   : > { %240 = vst [vmem:[#allocation2 + $0x8] sm:$0xff] %v224_v39 }
  0x36   : > { %241 = vst [vmem:[#allocation2 + $0x48] sm:$0xff] %v225_v41 }
  0x37   : > { %242 = vst [vmem:[#allocation2 + $0x40] sm:$0xff] %v226_v43 }
  0x38   : > { %243 = vst [vmem:[#allocation2 + $0x20] sm:$0xff] %v227_v45 }
  0x39   : > { %244 = vst [vmem:[#allocation2 + $0x10] sm:$0xff] %v228_v47 }
  0x3a   : > { %245 = vst [vmem:[#allocation2 + $0x38] sm:$0xff] %v229_v49 }
  0x3b   : > { %246 = vst [vmem:[#allocation2 + $0x60] sm:$0xff] %v230_v51 }
  0x3c   : > { %247 = vst [vmem:[#allocation2 + $0x70] sm:$0xff] %v231_v53 }
  0x3d   : > { %248 = vst [vmem:[#allocation2 + $0x78] sm:$0xff] %v232_v54 }
  0x3e   : > { %249 = vst [vmem:[#allocation2 + $0x28] sm:$0xff] %v233_v55 }
  0x3f PF: > { %p378_p7 = scmp.ne.s32.totalorder %s508_s6, 8 }
  0x41   : > { %253 = sbr.rel (%p378_p7) target bundleno = 81 (0x51), region = 36 }
  0x46   : > { %v254_v56 = vld [vmem:[#allocation2 + $0x30] sm:$0xff]  ;;  %v255_v57 = vld [vmem:[#allocation2] sm:$0xff]  ;;  %v256_v58 = vld [vmem:[#allocation2 + $0x58] sm:$0xff] }
  0x47   : > { %v419_v59 = vpack.c.bf16 %v255_v57, %v254_v56  ;;  %v257_v60 = vld [vmem:[#allocation2 + $0x18] sm:$0xff]  ;;  %v258_v61 = vld [vmem:[#allocation2 + $0x50] sm:$0xff]  ;;  %v259_v62 = vld [vmem:[#allocation2 + $0x68] sm:$0xff] }
  0x48   : > { %v424_v63 = vpack.c.bf16 %v257_v60, %v256_v58  ;;  %v429_v0 = vpack.c.bf16 %v259_v62, %v258_v61  ;;  %v260_v1 = vld [vmem:[#allocation2 + $0x8] sm:$0xff]  ;;  %v262_v3 = vld [vmem:[#allocation2 + $0x40] sm:$0xff]  ;;  %v264_v6 = vld [vmem:[#allocation2 + $0x10] sm:$0xff] }
  0x49   : > { %v261_v2 = vld [vmem:[#allocation2 + $0x48] sm:$0xff]  ;;  %420 = vst [vmem:[%s618_s1] sm:$0xff] %v419_v59   ;;  %v263_v5 = vld [vmem:[#allocation2 + $0x20] sm:$0xff]  ;;  %v265_v7 = vld [vmem:[#allocation2 + $0x38] sm:$0xff] }
  0x4a   : > { %v434_v4 = vpack.c.bf16 %v261_v2, %v260_v1  ;;  %463 = vst [vmem:[%s618_s1 + $0x8] sm:$0xff] %v424_v63   ;;  %v439_v8 = vpack.c.bf16 %v263_v5, %v262_v3  ;;  %v444_v9 = vpack.c.bf16 %v265_v7, %v264_v6  ;;  %v266_v10 = vld [vmem:[#allocation2 + $0x60] sm:$0xff]  ;;  %v267_v11 = vld [vmem:[#allocation2 + $0x70] sm:$0xff]  ;;  %v268_v12 = vld [vmem:[#allocation2 + $0x78] sm:$0xff] }
  0x4b   : > { %464 = vst [vmem:[%s618_s1 + $0x10] sm:$0xff] %v429_v0   ;;  %v449_v13 = vpack.c.bf16 %v267_v11, %v266_v10  ;;  %v269_v14 = vld [vmem:[#allocation2 + $0x28] sm:$0xff] }
  0x4c   : > { %465 = vst [vmem:[%s618_s1 + $0x18] sm:$0xff] %v434_v4   ;;  %v454_v15 = vpack.c.bf16 %v269_v14, %v268_v12 }
  0x4d   : > { %466 = vst [vmem:[%s618_s1 + $0x20] sm:$0xff] %v439_v8  }
  0x4e   : > { %467 = vst [vmem:[%s618_s1 + $0x28] sm:$0xff] %v444_v9  }
  0x4f   : > { %468 = vst [vmem:[%s618_s1 + $0x30] sm:$0xff] %v449_v13  }
  0x50   : > { %469 = vst [vmem:[%s618_s1 + $0x38] sm:$0xff] %v454_v15  }
  0x51 PF: > { %s11_s8 = sadd.s32 1, %s516_s8   ;;  %s619_s6 = smov %s512_s7 }
  0x52   : > { %p8_p8 = scmp.ge.s32.totalorder %s11_s8, 11   ;;  %s620_s7 = smov %s622_s9 }
  0x54   :  { %10 = sbr.rel (!%p8_p8) target bundleno = 2 (0x2), region = 66 }

// kernel: forward.22
= control target key start
LH: loop header
LB: loop body
LE: loop exit
PB: predicated region body
PF: predicated region fallthrough
CT: control target
= control target key end

     0   :  { %s597_s1 = inlined_call_operand.vmem [shape: bf16[128,128], index: 1, kind: input, shape index: {}]   ;;  %s598_s2 = inlined_call_operand.vmem [shape: f32[1,128], index: 2, kind: input, shape index: {}]   ;;  %s599_s0 = inlined_call_operand.vmem [shape: bf16[128,128], index: 0, kind: input, shape index: {}]   ;;  %s600_s3 = inlined_call_operand.vmem [shape: bf16[128,128], index: 3, kind: output, shape index: {}]  }
   0x1   :  { %v429_v0 = vld [vmem:[%s597_s1 + $0x38] sm:$0xff]  ;;  %v428_v1 = vld [vmem:[%s597_s1 + $0x30] sm:$0xff]  ;;  %v427_v2 = vld [vmem:[%s597_s1 + $0x28] sm:$0xff] }
   0x2   :  { %178 = vmatpush.bf16.msra.mxu0 %v429_v0  ;;  %477 = vmatpush.bf16.msra.mxu1 %v429_v0  ;;  %v426_v3 = vld [vmem:[%s597_s1 + $0x20] sm:$0xff]  ;;  %v425_v4 = vld [vmem:[%s597_s1 + $0x18] sm:$0xff]  ;;  %v424_v5 = vld [vmem:[%s597_s1 + $0x10] sm:$0xff] }
   0x3   :  { %478 = vmatpush.bf16.msra.mxu2 %v429_v0  ;;  %479 = vmatpush.bf16.msra.mxu3 %v429_v0  ;;  %v423_v6 = vld [vmem:[%s597_s1 + $0x8] sm:$0xff]  ;;  %v422_v7 = vld [vmem:[%s597_s1] sm:$0xff]  ;;  %v416_v9 = vld [vmem:[%s599_s0 + $0x10] sm:$0xff] }
   0x4   :  { %v414_v8 = vld [vmem:[%s599_s0] sm:$0xff]  ;;  %v420_v11 = vld [vmem:[%s599_s0 + $0x30] sm:$0xff]  ;;  %v415_v12 = vld [vmem:[%s599_s0 + $0x8] sm:$0xff] }
   0x5   :  { %v418_v10 = vld [vmem:[%s599_s0 + $0x20] sm:$0xff]  ;;  %v417_v13 = vld [vmem:[%s599_s0 + $0x18] sm:$0xff]  ;;  %v419_v14 = vld [vmem:[%s599_s0 + $0x28] sm:$0xff] }
   0x6   :  { %179 = vmatpush.bf16.msra.mxu0 %v428_v1  ;;  %480 = vmatpush.bf16.msra.mxu1 %v428_v1  ;;  %v421_v15 = vld [vmem:[%s599_s0 + $0x38] sm:$0xff]  ;;  %v501_v18 = vld [vmem:[%s598_s2] ss:$0 sm:$0xff] }
   0x7   :  { %481 = vmatpush.bf16.msra.mxu2 %v428_v1  ;;  %482 = vmatpush.bf16.msra.mxu3 %v428_v1 }
   0xa   :  { %180 = vmatpush.bf16.msra.mxu0 %v427_v2  ;;  %483 = vmatpush.bf16.msra.mxu1 %v427_v2 }
   0xb   :  { %484 = vmatpush.bf16.msra.mxu2 %v427_v2  ;;  %485 = vmatpush.bf16.msra.mxu3 %v427_v2 }
   0xe   :  { %181 = vmatpush.bf16.msra.mxu0 %v426_v3  ;;  %486 = vmatpush.bf16.msra.mxu1 %v426_v3 }
   0xf   :  { %487 = vmatpush.bf16.msra.mxu2 %v426_v3  ;;  %488 = vmatpush.bf16.msra.mxu3 %v426_v3 }
  0x12   :  { %182 = vmatpush.bf16.msra.mxu0 %v425_v4  ;;  %489 = vmatpush.bf16.msra.mxu1 %v425_v4 }
  0x13   :  { %490 = vmatpush.bf16.msra.mxu2 %v425_v4  ;;  %491 = vmatpush.bf16.msra.mxu3 %v425_v4 }
  0x16   :  { %183 = vmatpush.bf16.msra.mxu0 %v424_v5  ;;  %492 = vmatpush.bf16.msra.mxu1 %v424_v5 }
  0x17   :  { %493 = vmatpush.bf16.msra.mxu2 %v424_v5  ;;  %494 = vmatpush.bf16.msra.mxu3 %v424_v5 }
  0x1a   :  { %184 = vmatpush.bf16.msra.mxu0 %v423_v6  ;;  %495 = vmatpush.bf16.msra.mxu1 %v423_v6 }
  0x1b   :  { %496 = vmatpush.bf16.msra.mxu2 %v423_v6  ;;  %497 = vmatpush.bf16.msra.mxu3 %v423_v6 }
  0x1e   :  { %185 = vmatpush.bf16.msra.mxu0 %v422_v7  ;;  %498 = vmatpush.bf16.msra.mxu1 %v422_v7 }
  0x1f   :  { %499 = vmatpush.bf16.msra.mxu2 %v422_v7  ;;  %500 = vmatpush.bf16.msra.mxu3 %v422_v7 }
  0x21   :  { %186 = vmatmul.bf16.vlgmr.msra.gmra.mxu0 %v414_v8  ;;  %196 = vmatmul.bf16.vlgmr.msra.gmra.mxu1 %v416_v9 }
  0x22   :  { %206 = vmatmul.bf16.vlgmr.msra.gmra.mxu2 %v418_v10  ;;  %216 = vmatmul.bf16.vlgmr.msra.gmra.mxu3 %v420_v11 }
  0x31   :  { %191 = vmatmul.bf16.gmra.mxu0 %v415_v12  ;;  %201 = vmatmul.bf16.gmra.mxu1 %v417_v13 }
  0x32   :  { %211 = vmatmul.bf16.gmra.mxu2 %v419_v14  ;;  %221 = vmatmul.bf16.gmra.mxu3 %v421_v15 }
  0x9e   :  { %v187_v16 = vpop.f32.mrf.mxu0  ;;  %v197_v17 = vpop.f32.mrf.mxu1 }
  0x9f   :  { %v282_v19 = vadd.f32 %v501_v18, %v187_v16  ;;  %v286_v20 = vadd.f32 %v501_v18, %v197_v17 }
  0xa1   :  { %v298_v27 = vmax.f32 %v282_v19, 0.0  ;;  %v302_v28 = vmax.f32 %v286_v20, 0.0 }
  0xa5   :  { %v207_v21 = vpop.f32.mrf.mxu2  ;;  %v217_v22 = vpop.f32.mrf.mxu3 }
  0xa6   :  { %v189_v23 = vpop.f32.mrf.mxu0  ;;  %v199_v24 = vpop.f32.mrf.mxu1  ;;  %v290_v33 = vadd.f32 %v501_v18, %v207_v21  ;;  %v294_v34 = vadd.f32 %v501_v18, %v217_v22 }
  0xa7   :  { %v283_v25 = vadd.f32 %v501_v18, %v189_v23  ;;  %v287_v26 = vadd.f32 %v501_v18, %v199_v24 }
  0xa8   :  { %v306_v41 = vmax.f32 %v290_v33, 0.0  ;;  %v310_v42 = vmax.f32 %v294_v34, 0.0 }
  0xa9   :  { %v299_v29 = vmax.f32 %v283_v25, 0.0  ;;  %v303_v30 = vmax.f32 %v287_v26, 0.0 }
  0xab   :  { %v433_v31 = vpack.c.bf16 %v299_v29, %v298_v27  ;;  %v443_v32 = vpack.c.bf16 %v303_v30, %v302_v28 }
  0xad   :  { %434 = vst [vmem:[%s600_s3] sm:$0xff] %v433_v31   ;;  %v209_v35 = vpop.f32.mrf.mxu2  ;;  %v219_v36 = vpop.f32.mrf.mxu3 }
  0xae   :  { %471 = vst [vmem:[%s600_s3 + $0x10] sm:$0xff] %v443_v32   ;;  %v291_v37 = vadd.f32 %v501_v18, %v209_v35  ;;  %v295_v38 = vadd.f32 %v501_v18, %v219_v36  ;;  %v192_v39 = vpop.f32.mrf.mxu0  ;;  %v202_v40 = vpop.f32.mrf.mxu1 }
  0xaf   :  { %v284_v47 = vadd.f32 %v501_v18, %v192_v39  ;;  %v288_v48 = vadd.f32 %v501_v18, %v202_v40 }
  0xb0   :  { %v307_v43 = vmax.f32 %v291_v37, 0.0  ;;  %v311_v44 = vmax.f32 %v295_v38, 0.0 }
  0xb1   :  { %v300_v55 = vmax.f32 %v284_v47, 0.0  ;;  %v304_v56 = vmax.f32 %v288_v48, 0.0 }
  0xb2   :  { %v453_v45 = vpack.c.bf16 %v307_v43, %v306_v41  ;;  %v463_v46 = vpack.c.bf16 %v311_v44, %v310_v42 }
  0xb4   :  { %473 = vst [vmem:[%s600_s3 + $0x20] sm:$0xff] %v453_v45  }
  0xb5   :  { %475 = vst [vmem:[%s600_s3 + $0x30] sm:$0xff] %v463_v46   ;;  %v212_v49 = vpop.f32.mrf.mxu2  ;;  %v222_v50 = vpop.f32.mrf.mxu3 }
  0xb6   :  { %v194_v51 = vpop.f32.mrf.mxu0  ;;  %v204_v52 = vpop.f32.mrf.mxu1  ;;  %v292_v61 = vadd.f32 %v501_v18, %v212_v49  ;;  %v296_v62 = vadd.f32 %v501_v18, %v222_v50 }
  0xb7   :  { %v285_v53 = vadd.f32 %v501_v18, %v194_v51  ;;  %v289_v54 = vadd.f32 %v501_v18, %v204_v52 }
  0xb8   :  { %v308_v3 = vmax.f32 %v292_v61, 0.0  ;;  %v312_v4 = vmax.f32 %v296_v62, 0.0 }
  0xb9   :  { %v301_v57 = vmax.f32 %v285_v53, 0.0  ;;  %v305_v58 = vmax.f32 %v289_v54, 0.0 }
  0xbb   :  { %v438_v59 = vpack.c.bf16 %v301_v57, %v300_v55  ;;  %v448_v60 = vpack.c.bf16 %v305_v58, %v304_v56 }
  0xbd   :  { %470 = vst [vmem:[%s600_s3 + $0x8] sm:$0xff] %v438_v59   ;;  %v214_v63 = vpop.f32.mrf.mxu2  ;;  %v224_v0 = vpop.f32.mrf.mxu3 }
  0xbe   :  { %472 = vst [vmem:[%s600_s3 + $0x18] sm:$0xff] %v448_v60   ;;  %v293_v1 = vadd.f32 %v501_v18, %v214_v63  ;;  %v297_v2 = vadd.f32 %v501_v18, %v224_v0 }
  0xc0   :  { %v309_v5 = vmax.f32 %v293_v1, 0.0  ;;  %v313_v6 = vmax.f32 %v297_v2, 0.0 }
  0xc2   :  { %v458_v7 = vpack.c.bf16 %v309_v5, %v308_v3  ;;  %v468_v8 = vpack.c.bf16 %v313_v6, %v312_v4 }
  0xc4   :  { %474 = vst [vmem:[%s600_s3 + $0x28] sm:$0xff] %v458_v7  }
  0xc5   :  { %476 = vst [vmem:[%s600_s3 + $0x38] sm:$0xff] %v468_v8  }

// kernel: forward.20
= control target key start
LH: loop header
LB: loop body
LE: loop exit
PB: predicated region body
PF: predicated region fallthrough
CT: control target
= control target key end

     0   :  { %s2680_s1 = inlined_call_operand.vmem [shape: bf16[256,128], index: 1, kind: input, shape index: {}]   ;;  %s2681_s0 = inlined_call_operand.vmem [shape: bf16[512,256], index: 0, kind: input, shape index: {}]   ;;  %s2682_s2 = inlined_call_operand.vmem [shape: f32[1,128], index: 2, kind: input, shape index: {}]   ;;  %s2683_s3 = inlined_call_operand.vmem [shape: bf16[512,128], index: 3, kind: output, shape index: {}]  }
   0x1   :  { %v1846_v0 = vld [vmem:[%s2680_s1 + $0x38] sm:$0xff]  ;;  %v1845_v2 = vld [vmem:[%s2680_s1 + $0x30] sm:$0xff]  ;;  %v1844_v4 = vld [vmem:[%s2680_s1 + $0x28] sm:$0xff] }
   0x2   :  { %v1854_v1 = vld [vmem:[%s2680_s1 + $0x78] sm:$0xff]  ;;  %658 = vmatpush.bf16.msra.mxu0 %v1846_v0  ;;  %2046 = vmatpush.bf16.msra.mxu2 %v1846_v0  ;;  %v1853_v3 = vld [vmem:[%s2680_s1 + $0x70] sm:$0xff]  ;;  %v1852_v5 = vld [vmem:[%s2680_s1 + $0x68] sm:$0xff] }
   0x3   :  { %827 = vmatpush.bf16.msra.mxu1 %v1854_v1  ;;  %2054 = vmatpush.bf16.msra.mxu3 %v1854_v1  ;;  %v1843_v6 = vld [vmem:[%s2680_s1 + $0x20] sm:$0xff]  ;;  %v1842_v8 = vld [vmem:[%s2680_s1 + $0x18] sm:$0xff]  ;;  %v1841_v10 = vld [vmem:[%s2680_s1 + $0x10] sm:$0xff] }
   0x4   :  { %v1851_v7 = vld [vmem:[%s2680_s1 + $0x60] sm:$0xff]  ;;  %v1850_v9 = vld [vmem:[%s2680_s1 + $0x58] sm:$0xff]  ;;  %v1849_v11 = vld [vmem:[%s2680_s1 + $0x50] sm:$0xff] }
   0x5   :  { %v1840_v12 = vld [vmem:[%s2680_s1 + $0x8] sm:$0xff]  ;;  %v1839_v14 = vld [vmem:[%s2680_s1] sm:$0xff]  ;;  %v1465_v28 = vld [vmem:[%s2681_s0 + $0x10] sm:$0xf] }
   0x6   :  { %659 = vmatpush.bf16.msra.mxu0 %v1845_v2  ;;  %2047 = vmatpush.bf16.msra.mxu2 %v1845_v2  ;;  %v1848_v13 = vld [vmem:[%s2680_s1 + $0x48] sm:$0xff]  ;;  %v1847_v15 = vld [vmem:[%s2680_s1 + $0x40] sm:$0xff]  ;;  %v1778_v29 = vld [vmem:[%s2681_s0 + $0x14] sm:$0xf0] }
   0x7   :  { %828 = vmatpush.bf16.msra.mxu1 %v1853_v3  ;;  %2055 = vmatpush.bf16.msra.mxu3 %v1853_v3  ;;  %v1457_v16 = vld [vmem:[%s2681_s0] sm:$0xf]  ;;  %v1776_v17 = vld [vmem:[%s2681_s0 + $0x4] sm:$0xf0]  ;;  %v1775_v20 = vld [vmem:[%s2681_s0 + $0x4] sm:$0xf]  ;;  %v1466_v36 = vor.u32 %v1778_v29, %v1465_v28 }
   0x8   :  { %v1585_v18 = vld [vmem:[%s2681_s0 + $0x100] sm:$0xf]  ;;  %v1808_v19 = vld [vmem:[%s2681_s0 + $0x104] sm:$0xf0]  ;;  %v1459_v21 = vld [vmem:[%s2681_s0 + $0x8] sm:$0xf0]  ;;  %v1458_v24 = vor.u32 %v1776_v17, %v1457_v16 }
   0x9   :  { %v1807_v22 = vld [vmem:[%s2681_s0 + $0x104] sm:$0xf]  ;;  %v1587_v23 = vld [vmem:[%s2681_s0 + $0x108] sm:$0xf0]  ;;  %v1586_v25 = vor.u32 %v1808_v19, %v1585_v18  ;;  %v1462_v26 = vor.u32 %v1775_v20, %v1459_v21  ;;  %v1593_v30 = vld [vmem:[%s2681_s0 + $0x110] sm:$0xf] }
   0xa   :  { %660 = vmatpush.bf16.msra.mxu0 %v1844_v4  ;;  %2048 = vmatpush.bf16.msra.mxu2 %v1844_v4  ;;  %v1590_v27 = vor.u32 %v1807_v22, %v1587_v23  ;;  %v1810_v31 = vld [vmem:[%s2681_s0 + $0x114] sm:$0xf0]  ;;  %v1777_v32 = vld [vmem:[%s2681_s0 + $0x14] sm:$0xf]  ;;  %v1467_v33 = vld [vmem:[%s2681_s0 + $0x18] sm:$0xf0] }
   0xb   :  { %829 = vmatpush.bf16.msra.mxu1 %v1852_v5  ;;  %2056 = vmatpush.bf16.msra.mxu3 %v1852_v5  ;;  %v1809_v34 = vld [vmem:[%s2681_s0 + $0x114] sm:$0xf]  ;;  %v1595_v35 = vld [vmem:[%s2681_s0 + $0x118] sm:$0xf0]  ;;  %v1594_v37 = vor.u32 %v1810_v31, %v1593_v30  ;;  %v1470_v38 = vor.u32 %v1777_v32, %v1467_v33  ;;  %v1473_v40 = vld [vmem:[%s2681_s0 + $0x20] sm:$0xf] }
   0xc   :  { %v1598_v39 = vor.u32 %v1809_v34, %v1595_v35  ;;  %v1780_v41 = vld [vmem:[%s2681_s0 + $0x24] sm:$0xf0]  ;;  %v1601_v42 = vld [vmem:[%s2681_s0 + $0x120] sm:$0xf]  ;;  %v1779_v44 = vld [vmem:[%s2681_s0 + $0x24] sm:$0xf] }
   0xd   :  { %v1812_v43 = vld [vmem:[%s2681_s0 + $0x124] sm:$0xf0]  ;;  %v1475_v45 = vld [vmem:[%s2681_s0 + $0x28] sm:$0xf0]  ;;  %v1811_v46 = vld [vmem:[%s2681_s0 + $0x124] sm:$0xf]  ;;  %v1474_v48 = vor.u32 %v1780_v41, %v1473_v40 }
   0xe   :  { %661 = vmatpush.bf16.msra.mxu0 %v1843_v6  ;;  %2049 = vmatpush.bf16.msra.mxu2 %v1843_v6  ;;  %v1603_v47 = vld [vmem:[%s2681_s0 + $0x128] sm:$0xf0]  ;;  %v1602_v49 = vor.u32 %v1812_v43, %v1601_v42  ;;  %v1478_v50 = vor.u32 %v1779_v44, %v1475_v45  ;;  %v1481_v52 = vld [vmem:[%s2681_s0 + $0x30] sm:$0xf]  ;;  %v1782_v53 = vld [vmem:[%s2681_s0 + $0x34] sm:$0xf0] }
   0xf   :  { %830 = vmatpush.bf16.msra.mxu1 %v1851_v7  ;;  %2057 = vmatpush.bf16.msra.mxu3 %v1851_v7  ;;  %v1606_v51 = vor.u32 %v1811_v46, %v1603_v47  ;;  %v1609_v54 = vld [vmem:[%s2681_s0 + $0x130] sm:$0xf]  ;;  %v1814_v55 = vld [vmem:[%s2681_s0 + $0x134] sm:$0xf0]  ;;  %v1781_v56 = vld [vmem:[%s2681_s0 + $0x34] sm:$0xf]  ;;  %v1482_v60 = vor.u32 %v1782_v53, %v1481_v52 }
  0x10   :  { %v1483_v57 = vld [vmem:[%s2681_s0 + $0x38] sm:$0xf0]  ;;  %v1813_v58 = vld [vmem:[%s2681_s0 + $0x134] sm:$0xf]  ;;  %v1610_v61 = vor.u32 %v1814_v55, %v1609_v54  ;;  %v1489_v0 = vld [vmem:[%s2681_s0 + $0x40] sm:$0xf] }
  0x11   :  { %v1611_v59 = vld [vmem:[%s2681_s0 + $0x138] sm:$0xf0]  ;;  %v1486_v62 = vor.u32 %v1781_v56, %v1483_v57  ;;  %v1784_v1 = vld [vmem:[%s2681_s0 + $0x44] sm:$0xf0]  ;;  %v1617_v2 = vld [vmem:[%s2681_s0 + $0x140] sm:$0xf] }
  0x12   :  { %662 = vmatpush.bf16.msra.mxu0 %v1842_v8  ;;  %2050 = vmatpush.bf16.msra.mxu2 %v1842_v8  ;;  %v1614_v63 = vor.u32 %v1813_v58, %v1611_v59  ;;  %v1816_v3 = vld [vmem:[%s2681_s0 + $0x144] sm:$0xf0]  ;;  %v1783_v4 = vld [vmem:[%s2681_s0 + $0x44] sm:$0xf]  ;;  %v1491_v5 = vld [vmem:[%s2681_s0 + $0x48] sm:$0xf0]  ;;  %v1490_v8 = vor.u32 %v1784_v1, %v1489_v0 }
  0x13   :  { %831 = vmatpush.bf16.msra.mxu1 %v1850_v9  ;;  %2058 = vmatpush.bf16.msra.mxu3 %v1850_v9  ;;  %v1815_v6 = vld [vmem:[%s2681_s0 + $0x144] sm:$0xf]  ;;  %v1619_v7 = vld [vmem:[%s2681_s0 + $0x148] sm:$0xf0]  ;;  %v1618_v9 = vor.u32 %v1816_v3, %v1617_v2  ;;  %v1785_v16 = vld [vmem:[%s2681_s0 + $0x54] sm:$0xf] }
  0x14   :  { %v1499_v17 = vld [vmem:[%s2681_s0 + $0x58] sm:$0xf0]  ;;  %v1817_v18 = vld [vmem:[%s2681_s0 + $0x154] sm:$0xf]  ;;  %v1787_v28 = vld [vmem:[%s2681_s0 + $0x64] sm:$0xf] }
  0x15   :  { %v1627_v19 = vld [vmem:[%s2681_s0 + $0x158] sm:$0xf0]  ;;  %v1502_v22 = vor.u32 %v1785_v16, %v1499_v17  ;;  %v1507_v29 = vld [vmem:[%s2681_s0 + $0x68] sm:$0xf0]  ;;  %v1819_v30 = vld [vmem:[%s2681_s0 + $0x164] sm:$0xf] }
  0x16   :  { %663 = vmatpush.bf16.msra.mxu0 %v1841_v10  ;;  %2051 = vmatpush.bf16.msra.mxu2 %v1841_v10  ;;  %v1494_v10 = vor.u32 %v1783_v4, %v1491_v5  ;;  %v1630_v23 = vor.u32 %v1817_v18, %v1627_v19  ;;  %v1635_v31 = vld [vmem:[%s2681_s0 + $0x168] sm:$0xf0]  ;;  %v1510_v34 = vor.u32 %v1787_v28, %v1507_v29  ;;  %v1789_v40 = vld [vmem:[%s2681_s0 + $0x74] sm:$0xf]  ;;  %v1515_v41 = vld [vmem:[%s2681_s0 + $0x78] sm:$0xf0] }
  0x17   :  { %832 = vmatpush.bf16.msra.mxu1 %v1849_v11  ;;  %2059 = vmatpush.bf16.msra.mxu3 %v1849_v11  ;;  %v1622_v11 = vor.u32 %v1815_v6, %v1619_v7  ;;  %v1638_v35 = vor.u32 %v1819_v30, %v1635_v31  ;;  %v1821_v42 = vld [vmem:[%s2681_s0 + $0x174] sm:$0xf]  ;;  %v1643_v43 = vld [vmem:[%s2681_s0 + $0x178] sm:$0xf0]  ;;  %v1518_v46 = vor.u32 %v1789_v40, %v1515_v41  ;;  %v1791_v52 = vld [vmem:[%s2681_s0 + $0x84] sm:$0xf] }
  0x18   :  { %v1646_v47 = vor.u32 %v1821_v42, %v1643_v43  ;;  %v1523_v53 = vld [vmem:[%s2681_s0 + $0x88] sm:$0xf0]  ;;  %v1823_v54 = vld [vmem:[%s2681_s0 + $0x184] sm:$0xf]  ;;  %v1529_v6 = vld [vmem:[%s2681_s0 + $0x90] sm:$0xf] }
  0x19   :  { %v1651_v55 = vld [vmem:[%s2681_s0 + $0x188] sm:$0xf0]  ;;  %v1526_v59 = vor.u32 %v1791_v52, %v1523_v53  ;;  %v1794_v7 = vld [vmem:[%s2681_s0 + $0x94] sm:$0xf0]  ;;  %v1537_v40 = vld [vmem:[%s2681_s0 + $0xa0] sm:$0xf] }
  0x1a   :  { %664 = vmatpush.bf16.msra.mxu0 %v1840_v12  ;;  %2052 = vmatpush.bf16.msra.mxu2 %v1840_v12  ;;  %v1497_v12 = vld [vmem:[%s2681_s0 + $0x50] sm:$0xf]  ;;  %v1796_v41 = vld [vmem:[%s2681_s0 + $0xa4] sm:$0xf0]  ;;  %v1665_v42 = vld [vmem:[%s2681_s0 + $0x1a0] sm:$0xf] }
  0x1b   :  { %833 = vmatpush.bf16.msra.mxu1 %v1848_v13  ;;  %2060 = vmatpush.bf16.msra.mxu3 %v1848_v13  ;;  %v1786_v13 = vld [vmem:[%s2681_s0 + $0x54] sm:$0xf0] }
  0x1c   :  { %v1498_v20 = vor.u32 %v1786_v13, %v1497_v12  ;;  %v1793_v12 = vld [vmem:[%s2681_s0 + $0x94] sm:$0xf]  ;;  %v1531_v13 = vld [vmem:[%s2681_s0 + $0x98] sm:$0xf0] }
  0x1e   :  { %665 = vmatpush.bf16.msra.mxu0 %v1839_v14  ;;  %2053 = vmatpush.bf16.msra.mxu2 %v1839_v14  ;;  %v1625_v14 = vld [vmem:[%s2681_s0 + $0x150] sm:$0xf] }
  0x1f   :  { %834 = vmatpush.bf16.msra.mxu1 %v1847_v15  ;;  %2061 = vmatpush.bf16.msra.mxu3 %v1847_v15  ;;  %v1818_v15 = vld [vmem:[%s2681_s0 + $0x154] sm:$0xf0] }
  0x20   :  { %v1626_v21 = vor.u32 %v1818_v15, %v1625_v14  ;;  %v1825_v14 = vld [vmem:[%s2681_s0 + $0x194] sm:$0xf]  ;;  %v1659_v15 = vld [vmem:[%s2681_s0 + $0x198] sm:$0xf0] }
  0x21   :  { %666 = vmatmul.bf16.vlgmr.msra.gmra.mxu0 %v1458_v24  ;;  %746 = vmatmul.bf16.vlgmr.msra.gmra.mxu2 %v1586_v25  ;;  %v1505_v24 = vld [vmem:[%s2681_s0 + $0x60] sm:$0xf]  ;;  %v1788_v25 = vld [vmem:[%s2681_s0 + $0x64] sm:$0xf0] }
  0x22   :  { %835 = vmatmul.bf16.vlgmr.msra.gmra.mxu1 %v1462_v26  ;;  %915 = vmatmul.bf16.vlgmr.msra.gmra.mxu3 %v1590_v27  ;;  %v1633_v26 = vld [vmem:[%s2681_s0 + $0x160] sm:$0xf]  ;;  %v1820_v27 = vld [vmem:[%s2681_s0 + $0x164] sm:$0xf0]  ;;  %v1506_v32 = vor.u32 %v1788_v25, %v1505_v24 }
  0x23   :  { %v1634_v33 = vor.u32 %v1820_v27, %v1633_v26  ;;  %v1662_v27 = vor.u32 %v1825_v14, %v1659_v15 }
  0x31   :  { %671 = vmatmul.bf16.gmra.mxu0 %v1466_v36  ;;  %751 = vmatmul.bf16.gmra.mxu2 %v1594_v37  ;;  %v1513_v36 = vld [vmem:[%s2681_s0 + $0x70] sm:$0xf]  ;;  %v1790_v37 = vld [vmem:[%s2681_s0 + $0x74] sm:$0xf0] }
  0x32   :  { %840 = vmatmul.bf16.gmra.mxu1 %v1470_v38  ;;  %920 = vmatmul.bf16.gmra.mxu3 %v1598_v39  ;;  %v1641_v38 = vld [vmem:[%s2681_s0 + $0x170] sm:$0xf]  ;;  %v1822_v39 = vld [vmem:[%s2681_s0 + $0x174] sm:$0xf0]  ;;  %v1514_v44 = vor.u32 %v1790_v37, %v1513_v36 }
  0x33   :  { %v1642_v45 = vor.u32 %v1822_v39, %v1641_v38 }
  0x41   :  { %676 = vmatmul.bf16.gmra.mxu0 %v1474_v48  ;;  %756 = vmatmul.bf16.gmra.mxu2 %v1602_v49  ;;  %v1521_v48 = vld [vmem:[%s2681_s0 + $0x80] sm:$0xf]  ;;  %v1792_v49 = vld [vmem:[%s2681_s0 + $0x84] sm:$0xf0] }
  0x42   :  { %845 = vmatmul.bf16.gmra.mxu1 %v1478_v50  ;;  %925 = vmatmul.bf16.gmra.mxu3 %v1606_v51  ;;  %v1649_v50 = vld [vmem:[%s2681_s0 + $0x180] sm:$0xf]  ;;  %v1824_v51 = vld [vmem:[%s2681_s0 + $0x184] sm:$0xf0]  ;;  %v1522_v56 = vor.u32 %v1792_v49, %v1521_v48  ;;  %v1827_v48 = vld [vmem:[%s2681_s0 + $0x1a4] sm:$0xf] }
  0x43   :  { %v1650_v57 = vor.u32 %v1824_v51, %v1649_v50  ;;  %v1667_v49 = vld [vmem:[%s2681_s0 + $0x1a8] sm:$0xf0] }
  0x51   :  { %681 = vmatmul.bf16.gmra.mxu0 %v1482_v60  ;;  %761 = vmatmul.bf16.gmra.mxu2 %v1610_v61  ;;  %v1654_v60 = vor.u32 %v1823_v54, %v1651_v55  ;;  %v1538_v54 = vor.u32 %v1796_v41, %v1537_v40 }
  0x52   :  { %850 = vmatmul.bf16.gmra.mxu1 %v1486_v62  ;;  %930 = vmatmul.bf16.gmra.mxu3 %v1614_v63  ;;  %v2350_v63 = vld [vmem:[%s2682_s2] ss:$0 sm:$0xff] }
  0x61   :  { %686 = vmatmul.bf16.gmra.mxu0 %v1490_v8  ;;  %766 = vmatmul.bf16.gmra.mxu2 %v1618_v9  ;;  %v1657_v8 = vld [vmem:[%s2681_s0 + $0x190] sm:$0xf] }
  0x62   :  { %855 = vmatmul.bf16.gmra.mxu1 %v1494_v10  ;;  %935 = vmatmul.bf16.gmra.mxu3 %v1622_v11  ;;  %v1826_v11 = vld [vmem:[%s2681_s0 + $0x194] sm:$0xf0] }
  0x71   :  { %691 = vmatmul.bf16.gmra.mxu0 %v1498_v20  ;;  %771 = vmatmul.bf16.gmra.mxu2 %v1626_v21  ;;  %v1530_v20 = vor.u32 %v1794_v7, %v1529_v6  ;;  %v1658_v21 = vor.u32 %v1826_v11, %v1657_v8  ;;  %v1545_v11 = vld [vmem:[%s2681_s0 + $0xb0] sm:$0xf] }
  0x72   :  { %860 = vmatmul.bf16.gmra.mxu1 %v1502_v22  ;;  %940 = vmatmul.bf16.gmra.mxu3 %v1630_v23  ;;  %v1534_v22 = vor.u32 %v1793_v12, %v1531_v13  ;;  %v1798_v12 = vld [vmem:[%s2681_s0 + $0xb4] sm:$0xf0]  ;;  %v1673_v13 = vld [vmem:[%s2681_s0 + $0x1b0] sm:$0xf] }
  0x81   :  { %696 = vmatmul.bf16.gmra.mxu0 %v1506_v32  ;;  %776 = vmatmul.bf16.gmra.mxu2 %v1634_v33 }
  0x82   :  { %865 = vmatmul.bf16.gmra.mxu1 %v1510_v34  ;;  %945 = vmatmul.bf16.gmra.mxu3 %v1638_v35 }
  0x91   :  { %701 = vmatmul.bf16.gmra.mxu0 %v1514_v44  ;;  %781 = vmatmul.bf16.gmra.mxu2 %v1642_v45  ;;  %v1828_v45 = vld [vmem:[%s2681_s0 + $0x1a4] sm:$0xf0] }
  0x92   :  { %870 = vmatmul.bf16.gmra.mxu1 %v1518_v46  ;;  %950 = vmatmul.bf16.gmra.mxu3 %v1646_v47  ;;  %v1795_v46 = vld [vmem:[%s2681_s0 + $0xa4] sm:$0xf]  ;;  %v1539_v47 = vld [vmem:[%s2681_s0 + $0xa8] sm:$0xf0]  ;;  %v1666_v55 = vor.u32 %v1828_v45, %v1665_v42  ;;  %v1553_v45 = vld [vmem:[%s2681_s0 + $0xc0] sm:$0xf] }
  0x9e   :  { %v667_v58 = vpop.f32.mrf.mxu0 }
  0x9f   :  { %v836_v61 = vpop.f32.mrf.mxu1 }
  0xa0   :  { %v837_v62 = vadd.f32 %v836_v61, %v667_v58  ;;  %v1670_v61 = vor.u32 %v1827_v48, %v1667_v49 }
  0xa1   :  { %706 = vmatmul.bf16.gmra.mxu0 %v1522_v56  ;;  %786 = vmatmul.bf16.gmra.mxu2 %v1650_v57  ;;  %v1542_v56 = vor.u32 %v1795_v46, %v1539_v47  ;;  %v1800_v46 = vld [vmem:[%s2681_s0 + $0xc4] sm:$0xf0]  ;;  %v1681_v47 = vld [vmem:[%s2681_s0 + $0x1c0] sm:$0xf] }
  0xa2   :  { %875 = vmatmul.bf16.gmra.mxu1 %v1526_v59  ;;  %955 = vmatmul.bf16.gmra.mxu3 %v1654_v60  ;;  %v1195_v4 = vadd.f32 %v2350_v63, %v837_v62 }
  0xa4   :  { %v747_v0 = vpop.f32.mrf.mxu2  ;;  %v1259_v16 = vmax.f32 %v1195_v4, 0.0 }
  0xa5   :  { %v916_v1 = vpop.f32.mrf.mxu3 }
  0xa6   :  { %v669_v2 = vpop.f32.mrf.mxu0  ;;  %v917_v9 = vadd.f32 %v916_v1, %v747_v0 }
  0xa7   :  { %v838_v3 = vpop.f32.mrf.mxu1 }
  0xa8   :  { %v839_v5 = vadd.f32 %v838_v3, %v669_v2  ;;  %v1227_v23 = vadd.f32 %v2350_v63, %v917_v9 }
  0xaa   :  { %v1196_v10 = vadd.f32 %v2350_v63, %v839_v5  ;;  %v1291_v30 = vmax.f32 %v1227_v23, 0.0 }
  0xac   :  { %v1260_v17 = vmax.f32 %v1196_v10, 0.0  ;;  %v749_v18 = vpop.f32.mrf.mxu2 }
  0xad   :  { %v918_v19 = vpop.f32.mrf.mxu3 }
  0xae   :  { %v1858_v24 = vpack.c.bf16 %v1260_v17, %v1259_v16  ;;  %v919_v25 = vadd.f32 %v918_v19, %v749_v18  ;;  %v672_v26 = vpop.f32.mrf.mxu0  ;;  %v1830_v16 = vld [vmem:[%s2681_s0 + $0x1b4] sm:$0xf0]  ;;  %v1797_v17 = vld [vmem:[%s2681_s0 + $0xb4] sm:$0xf]  ;;  %v1547_v18 = vld [vmem:[%s2681_s0 + $0xb8] sm:$0xf0] }
  0xaf   :  { %v841_v28 = vpop.f32.mrf.mxu1  ;;  %v1829_v19 = vld [vmem:[%s2681_s0 + $0x1b4] sm:$0xf] }
  0xb0   :  { %1859 = vst [vmem:[%s2683_s3] sm:$0xff] %v1858_v24   ;;  %v1228_v29 = vadd.f32 %v2350_v63, %v919_v25  ;;  %v842_v33 = vadd.f32 %v841_v28, %v672_v26  ;;  %v1546_v25 = vor.u32 %v1798_v12, %v1545_v11  ;;  %v1674_v26 = vor.u32 %v1830_v16, %v1673_v13  ;;  %v1561_v16 = vld [vmem:[%s2681_s0 + $0xd0] sm:$0xf] }
  0xb1   :  { %711 = vmatmul.bf16.gmra.mxu0 %v1530_v20  ;;  %791 = vmatmul.bf16.gmra.mxu2 %v1658_v21  ;;  %v1675_v20 = vld [vmem:[%s2681_s0 + $0x1b8] sm:$0xf0] }
  0xb2   :  { %v1292_v31 = vmax.f32 %v1228_v29, 0.0  ;;  %880 = vmatmul.bf16.gmra.mxu1 %v1534_v22  ;;  %960 = vmatmul.bf16.gmra.mxu3 %v1662_v27  ;;  %v1197_v38 = vadd.f32 %v2350_v63, %v842_v33  ;;  %v1550_v27 = vor.u32 %v1797_v17, %v1547_v18  ;;  %v1802_v17 = vld [vmem:[%s2681_s0 + $0xd4] sm:$0xf0]  ;;  %v1689_v18 = vld [vmem:[%s2681_s0 + $0x1d0] sm:$0xf] }
  0xb4   :  { %v1938_v32 = vpack.c.bf16 %v1292_v31, %v1291_v30  ;;  %v752_v34 = vpop.f32.mrf.mxu2  ;;  %v1261_v50 = vmax.f32 %v1197_v38, 0.0 }
  0xb5   :  { %v921_v35 = vpop.f32.mrf.mxu3 }
  0xb6   :  { %2030 = vst [vmem:[%s2683_s3 + $0x80] sm:$0xff] %v1938_v32   ;;  %v674_v36 = vpop.f32.mrf.mxu0  ;;  %v922_v43 = vadd.f32 %v921_v35, %v752_v34  ;;  %v1678_v32 = vor.u32 %v1829_v19, %v1675_v20 }
  0xb7   :  { %v843_v37 = vpop.f32.mrf.mxu1 }
  0xb8   :  { %v844_v39 = vadd.f32 %v843_v37, %v674_v36  ;;  %v1229_v57 = vadd.f32 %v2350_v63, %v922_v43 }
  0xba   :  { %v1198_v44 = vadd.f32 %v2350_v63, %v844_v39  ;;  %v1293_v1 = vmax.f32 %v1229_v57, 0.0 }
  0xbc   :  { %v1262_v51 = vmax.f32 %v1198_v44, 0.0  ;;  %v754_v52 = vpop.f32.mrf.mxu2 }
  0xbd   :  { %v923_v53 = vpop.f32.mrf.mxu3 }
  0xbe   :  { %v1863_v58 = vpack.c.bf16 %v1262_v51, %v1261_v50  ;;  %v924_v59 = vadd.f32 %v923_v53, %v754_v52  ;;  %v677_v60 = vpop.f32.mrf.mxu0  ;;  %v1832_v50 = vld [vmem:[%s2681_s0 + $0x1c4] sm:$0xf0]  ;;  %v1799_v51 = vld [vmem:[%s2681_s0 + $0xc4] sm:$0xf]  ;;  %v1555_v52 = vld [vmem:[%s2681_s0 + $0xc8] sm:$0xf0] }
  0xbf   :  { %v846_v62 = vpop.f32.mrf.mxu1  ;;  %v1831_v53 = vld [vmem:[%s2681_s0 + $0x1c4] sm:$0xf] }
  0xc0   :  { %2015 = vst [vmem:[%s2683_s3 + $0x8] sm:$0xff] %v1863_v58   ;;  %v1230_v0 = vadd.f32 %v2350_v63, %v924_v59  ;;  %v847_v4 = vadd.f32 %v846_v62, %v677_v60  ;;  %v1554_v59 = vor.u32 %v1800_v46, %v1553_v45  ;;  %v1682_v60 = vor.u32 %v1832_v50, %v1681_v47  ;;  %v1569_v50 = vld [vmem:[%s2681_s0 + $0xe0] sm:$0xf] }
  0xc1   :  { %716 = vmatmul.bf16.gmra.mxu0 %v1538_v54  ;;  %796 = vmatmul.bf16.gmra.mxu2 %v1666_v55  ;;  %v1683_v54 = vld [vmem:[%s2681_s0 + $0x1c8] sm:$0xf0] }
  0xc2   :  { %v1294_v2 = vmax.f32 %v1230_v0, 0.0  ;;  %885 = vmatmul.bf16.gmra.mxu1 %v1542_v56  ;;  %965 = vmatmul.bf16.gmra.mxu3 %v1670_v61  ;;  %v1199_v9 = vadd.f32 %v2350_v63, %v847_v4  ;;  %v1558_v61 = vor.u32 %v1799_v51, %v1555_v52  ;;  %v1804_v51 = vld [vmem:[%s2681_s0 + $0xe4] sm:$0xf0]  ;;  %v1697_v52 = vld [vmem:[%s2681_s0 + $0x1e0] sm:$0xf] }
  0xc4   :  { %v1943_v3 = vpack.c.bf16 %v1294_v2, %v1293_v1  ;;  %v757_v5 = vpop.f32.mrf.mxu2  ;;  %v1263_v21 = vmax.f32 %v1199_v9, 0.0 }
  0xc5   :  { %v926_v6 = vpop.f32.mrf.mxu3 }
  0xc6   :  { %2031 = vst [vmem:[%s2683_s3 + $0x88] sm:$0xff] %v1943_v3   ;;  %v679_v7 = vpop.f32.mrf.mxu0  ;;  %v927_v14 = vadd.f32 %v926_v6, %v757_v5  ;;  %v1686_v3 = vor.u32 %v1831_v53, %v1683_v54 }
  0xc7   :  { %v848_v8 = vpop.f32.mrf.mxu1 }
  0xc8   :  { %v849_v10 = vadd.f32 %v848_v8, %v679_v7  ;;  %v1231_v28 = vadd.f32 %v2350_v63, %v927_v14 }
  0xca   :  { %v1200_v15 = vadd.f32 %v2350_v63, %v849_v10  ;;  %v1295_v35 = vmax.f32 %v1231_v28, 0.0 }
  0xcc   :  { %v1264_v22 = vmax.f32 %v1200_v15, 0.0  ;;  %v759_v23 = vpop.f32.mrf.mxu2 }
  0xcd   :  { %v928_v24 = vpop.f32.mrf.mxu3 }
  0xce   :  { %v1868_v29 = vpack.c.bf16 %v1264_v22, %v1263_v21  ;;  %v929_v30 = vadd.f32 %v928_v24, %v759_v23  ;;  %v682_v31 = vpop.f32.mrf.mxu0  ;;  %v1834_v21 = vld [vmem:[%s2681_s0 + $0x1d4] sm:$0xf0]  ;;  %v1801_v22 = vld [vmem:[%s2681_s0 + $0xd4] sm:$0xf]  ;;  %v1563_v23 = vld [vmem:[%s2681_s0 + $0xd8] sm:$0xf0] }
  0xcf   :  { %v851_v33 = vpop.f32.mrf.mxu1  ;;  %v1833_v24 = vld [vmem:[%s2681_s0 + $0x1d4] sm:$0xf] }
  0xd0   :  { %2016 = vst [vmem:[%s2683_s3 + $0x10] sm:$0xff] %v1868_v29   ;;  %v1232_v34 = vadd.f32 %v2350_v63, %v929_v30  ;;  %v852_v38 = vadd.f32 %v851_v33, %v682_v31  ;;  %v1562_v30 = vor.u32 %v1802_v17, %v1561_v16  ;;  %v1690_v31 = vor.u32 %v1834_v21, %v1689_v18  ;;  %v1577_v21 = vld [vmem:[%s2681_s0 + $0xf0] sm:$0xf] }
  0xd1   :  { %721 = vmatmul.bf16.gmra.mxu0 %v1546_v25  ;;  %801 = vmatmul.bf16.gmra.mxu2 %v1674_v26  ;;  %v1691_v25 = vld [vmem:[%s2681_s0 + $0x1d8] sm:$0xf0] }
  0xd2   :  { %v1296_v36 = vmax.f32 %v1232_v34, 0.0  ;;  %890 = vmatmul.bf16.gmra.mxu1 %v1550_v27  ;;  %970 = vmatmul.bf16.gmra.mxu3 %v1678_v32  ;;  %v1201_v43 = vadd.f32 %v2350_v63, %v852_v38  ;;  %v1566_v32 = vor.u32 %v1801_v22, %v1563_v23  ;;  %v1806_v22 = vld [vmem:[%s2681_s0 + $0xf4] sm:$0xf0]  ;;  %v1705_v23 = vld [vmem:[%s2681_s0 + $0x1f0] sm:$0xf] }
  0xd4   :  { %v1948_v37 = vpack.c.bf16 %v1296_v36, %v1295_v35  ;;  %v762_v39 = vpop.f32.mrf.mxu2  ;;  %v1265_v55 = vmax.f32 %v1201_v43, 0.0 }
  0xd5   :  { %v931_v40 = vpop.f32.mrf.mxu3 }
  0xd6   :  { %2032 = vst [vmem:[%s2683_s3 + $0x90] sm:$0xff] %v1948_v37   ;;  %v684_v41 = vpop.f32.mrf.mxu0  ;;  %v932_v48 = vadd.f32 %v931_v40, %v762_v39  ;;  %v1694_v37 = vor.u32 %v1833_v24, %v1691_v25 }
  0xd7   :  { %v853_v42 = vpop.f32.mrf.mxu1 }
  0xd8   :  { %v854_v44 = vadd.f32 %v853_v42, %v684_v41  ;;  %v1233_v62 = vadd.f32 %v2350_v63, %v932_v48 }
  0xda   :  { %v1202_v49 = vadd.f32 %v2350_v63, %v854_v44  ;;  %v1297_v6 = vmax.f32 %v1233_v62, 0.0 }
  0xdc   :  { %v1266_v56 = vmax.f32 %v1202_v49, 0.0  ;;  %v764_v57 = vpop.f32.mrf.mxu2 }
  0xdd   :  { %v933_v58 = vpop.f32.mrf.mxu3 }
  0xde   :  { %v1873_v0 = vpack.c.bf16 %v1266_v56, %v1265_v55  ;;  %v934_v1 = vadd.f32 %v933_v58, %v764_v57  ;;  %v687_v2 = vpop.f32.mrf.mxu0  ;;  %v1836_v55 = vld [vmem:[%s2681_s0 + $0x1e4] sm:$0xf0]  ;;  %v1803_v56 = vld [vmem:[%s2681_s0 + $0xe4] sm:$0xf]  ;;  %v1571_v57 = vld [vmem:[%s2681_s0 + $0xe8] sm:$0xf0] }
  0xdf   :  { %v856_v4 = vpop.f32.mrf.mxu1  ;;  %v1835_v58 = vld [vmem:[%s2681_s0 + $0x1e4] sm:$0xf] }
  0xe0   :  { %2017 = vst [vmem:[%s2683_s3 + $0x18] sm:$0xff] %v1873_v0   ;;  %v1234_v5 = vadd.f32 %v2350_v63, %v934_v1  ;;  %v857_v9 = vadd.f32 %v856_v4, %v687_v2  ;;  %v1570_v1 = vor.u32 %v1804_v51, %v1569_v50  ;;  %v1698_v2 = vor.u32 %v1836_v55, %v1697_v52 }
  0xe1   :  { %726 = vmatmul.bf16.gmra.mxu0 %v1554_v59  ;;  %806 = vmatmul.bf16.gmra.mxu2 %v1682_v60  ;;  %v1699_v59 = vld [vmem:[%s2681_s0 + $0x1e8] sm:$0xf0] }
  0xe2   :  { %v1298_v7 = vmax.f32 %v1234_v5, 0.0  ;;  %895 = vmatmul.bf16.gmra.mxu1 %v1558_v61  ;;  %975 = vmatmul.bf16.gmra.mxu3 %v1686_v3  ;;  %v1203_v14 = vadd.f32 %v2350_v63, %v857_v9  ;;  %v1574_v3 = vor.u32 %v1803_v56, %v1571_v57 }
  0xe4   :  { %v1953_v8 = vpack.c.bf16 %v1298_v7, %v1297_v6  ;;  %v767_v10 = vpop.f32.mrf.mxu2  ;;  %v1267_v26 = vmax.f32 %v1203_v14, 0.0 }
  0xe5   :  { %v936_v11 = vpop.f32.mrf.mxu3 }
  0xe6   :  { %2033 = vst [vmem:[%s2683_s3 + $0x98] sm:$0xff] %v1953_v8   ;;  %v689_v12 = vpop.f32.mrf.mxu0  ;;  %v937_v19 = vadd.f32 %v936_v11, %v767_v10  ;;  %v1702_v8 = vor.u32 %v1835_v58, %v1699_v59 }
  0xe7   :  { %v858_v13 = vpop.f32.mrf.mxu1 }
  0xe8   :  { %v859_v15 = vadd.f32 %v858_v13, %v689_v12  ;;  %v1235_v33 = vadd.f32 %v2350_v63, %v937_v19 }
  0xea   :  { %v1204_v20 = vadd.f32 %v2350_v63, %v859_v15  ;;  %v1299_v40 = vmax.f32 %v1235_v33, 0.0 }
  0xec   :  { %v1268_v27 = vmax.f32 %v1204_v20, 0.0  ;;  %v769_v28 = vpop.f32.mrf.mxu2 }
  0xed   :  { %v938_v29 = vpop.f32.mrf.mxu3 }
  0xee   :  { %v1878_v34 = vpack.c.bf16 %v1268_v27, %v1267_v26  ;;  %v939_v35 = vadd.f32 %v938_v29, %v769_v28  ;;  %v692_v36 = vpop.f32.mrf.mxu0  ;;  %v1838_v26 = vld [vmem:[%s2681_s0 + $0x1f4] sm:$0xf0]  ;;  %v1805_v27 = vld [vmem:[%s2681_s0 + $0xf4] sm:$0xf]  ;;  %v1579_v28 = vld [vmem:[%s2681_s0 + $0xf8] sm:$0xf0] }
  0xef   :  { %v861_v38 = vpop.f32.mrf.mxu1  ;;  %v1837_v29 = vld [vmem:[%s2681_s0 + $0x1f4] sm:$0xf] }
  0xf0   :  { %2018 = vst [vmem:[%s2683_s3 + $0x20] sm:$0xff] %v1878_v34   ;;  %v1236_v39 = vadd.f32 %v2350_v63, %v939_v35  ;;  %v862_v43 = vadd.f32 %v861_v38, %v692_v36  ;;  %v1578_v35 = vor.u32 %v1806_v22, %v1577_v21  ;;  %v1706_v36 = vor.u32 %v1838_v26, %v1705_v23 }
  0xf1   :  { %731 = vmatmul.bf16.gmra.mxu0 %v1562_v30  ;;  %811 = vmatmul.bf16.gmra.mxu2 %v1690_v31  ;;  %v1707_v30 = vld [vmem:[%s2681_s0 + $0x1f8] sm:$0xf0] }
  0xf2   :  { %v1300_v41 = vmax.f32 %v1236_v39, 0.0  ;;  %900 = vmatmul.bf16.gmra.mxu1 %v1566_v32  ;;  %980 = vmatmul.bf16.gmra.mxu3 %v1694_v37  ;;  %v1205_v48 = vadd.f32 %v2350_v63, %v862_v43  ;;  %v1582_v37 = vor.u32 %v1805_v27, %v1579_v28 }
  0xf4   :  { %v1958_v42 = vpack.c.bf16 %v1300_v41, %v1299_v40  ;;  %v772_v44 = vpop.f32.mrf.mxu2  ;;  %v1269_v60 = vmax.f32 %v1205_v48, 0.0 }
  0xf5   :  { %v941_v45 = vpop.f32.mrf.mxu3 }
  0xf6   :  { %2034 = vst [vmem:[%s2683_s3 + $0xa0] sm:$0xff] %v1958_v42   ;;  %v694_v46 = vpop.f32.mrf.mxu0  ;;  %v942_v53 = vadd.f32 %v941_v45, %v772_v44  ;;  %v1710_v42 = vor.u32 %v1837_v29, %v1707_v30 }
  0xf7   :  { %v863_v47 = vpop.f32.mrf.mxu1 }
  0xf8   :  { %v864_v49 = vadd.f32 %v863_v47, %v694_v46  ;;  %v1237_v4 = vadd.f32 %v2350_v63, %v942_v53 }
  0xfa   :  { %v1206_v54 = vadd.f32 %v2350_v63, %v864_v49  ;;  %v1301_v11 = vmax.f32 %v1237_v4, 0.0 }
  0xfc   :  { %v1270_v61 = vmax.f32 %v1206_v54, 0.0  ;;  %v774_v62 = vpop.f32.mrf.mxu2 }
  0xfd   :  { %v943_v0 = vpop.f32.mrf.mxu3 }
  0xfe   :  { %v1883_v5 = vpack.c.bf16 %v1270_v61, %v1269_v60  ;;  %v944_v6 = vadd.f32 %v943_v0, %v774_v62  ;;  %v697_v7 = vpop.f32.mrf.mxu0 }
  0xff   :  { %v866_v9 = vpop.f32.mrf.mxu1 }
 0x100   :  { %2019 = vst [vmem:[%s2683_s3 + $0x28] sm:$0xff] %v1883_v5   ;;  %v1238_v10 = vadd.f32 %v2350_v63, %v944_v6  ;;  %v867_v14 = vadd.f32 %v866_v9, %v697_v7 }
 0x101   :  { %736 = vmatmul.bf16.gmra.mxu0 %v1570_v1  ;;  %816 = vmatmul.bf16.gmra.mxu2 %v1698_v2 }
 0x102   :  { %v1302_v12 = vmax.f32 %v1238_v10, 0.0  ;;  %905 = vmatmul.bf16.gmra.mxu1 %v1574_v3  ;;  %985 = vmatmul.bf16.gmra.mxu3 %v1702_v8  ;;  %v1207_v19 = vadd.f32 %v2350_v63, %v867_v14 }
 0x104   :  { %v1963_v13 = vpack.c.bf16 %v1302_v12, %v1301_v11  ;;  %v777_v15 = vpop.f32.mrf.mxu2  ;;  %v1271_v31 = vmax.f32 %v1207_v19, 0.0 }
 0x105   :  { %v946_v16 = vpop.f32.mrf.mxu3 }
 0x106   :  { %2035 = vst [vmem:[%s2683_s3 + $0xa8] sm:$0xff] %v1963_v13   ;;  %v699_v17 = vpop.f32.mrf.mxu0  ;;  %v947_v24 = vadd.f32 %v946_v16, %v777_v15 }
 0x107   :  { %v868_v18 = vpop.f32.mrf.mxu1 }
 0x108   :  { %v869_v20 = vadd.f32 %v868_v18, %v699_v17  ;;  %v1239_v38 = vadd.f32 %v2350_v63, %v947_v24 }
 0x10a   :  { %v1208_v25 = vadd.f32 %v2350_v63, %v869_v20  ;;  %v1303_v45 = vmax.f32 %v1239_v38, 0.0 }
 0x10c   :  { %v1272_v32 = vmax.f32 %v1208_v25, 0.0  ;;  %v779_v33 = vpop.f32.mrf.mxu2 }
 0x10d   :  { %v948_v34 = vpop.f32.mrf.mxu3 }
 0x10e   :  { %v1888_v39 = vpack.c.bf16 %v1272_v32, %v1271_v31  ;;  %v949_v40 = vadd.f32 %v948_v34, %v779_v33  ;;  %v702_v41 = vpop.f32.mrf.mxu0 }
 0x10f   :  { %v871_v43 = vpop.f32.mrf.mxu1 }
 0x110   :  { %2020 = vst [vmem:[%s2683_s3 + $0x30] sm:$0xff] %v1888_v39   ;;  %v1240_v44 = vadd.f32 %v2350_v63, %v949_v40  ;;  %v872_v48 = vadd.f32 %v871_v43, %v702_v41 }
 0x111   :  { %741 = vmatmul.bf16.gmra.mxu0 %v1578_v35  ;;  %821 = vmatmul.bf16.gmra.mxu2 %v1706_v36 }
 0x112   :  { %v1304_v46 = vmax.f32 %v1240_v44, 0.0  ;;  %910 = vmatmul.bf16.gmra.mxu1 %v1582_v37  ;;  %990 = vmatmul.bf16.gmra.mxu3 %v1710_v42  ;;  %v1209_v53 = vadd.f32 %v2350_v63, %v872_v48 }
 0x114   :  { %v1968_v47 = vpack.c.bf16 %v1304_v46, %v1303_v45  ;;  %v782_v49 = vpop.f32.mrf.mxu2  ;;  %v1273_v57 = vmax.f32 %v1209_v53, 0.0 }
 0x115   :  { %v951_v50 = vpop.f32.mrf.mxu3 }
 0x116   :  { %2036 = vst [vmem:[%s2683_s3 + $0xb0] sm:$0xff] %v1968_v47   ;;  %v704_v51 = vpop.f32.mrf.mxu0  ;;  %v952_v55 = vadd.f32 %v951_v50, %v782_v49 }
 0x117   :  { %v873_v52 = vpop.f32.mrf.mxu1 }
 0x118   :  { %v874_v54 = vadd.f32 %v873_v52, %v704_v51  ;;  %v1241_v61 = vadd.f32 %v2350_v63, %v952_v55 }
 0x11a   :  { %v1210_v56 = vadd.f32 %v2350_v63, %v874_v54  ;;  %v1305_v4 = vmax.f32 %v1241_v61, 0.0 }
 0x11c   :  { %v1274_v58 = vmax.f32 %v1210_v56, 0.0  ;;  %v784_v59 = vpop.f32.mrf.mxu2 }
 0x11d   :  { %v953_v60 = vpop.f32.mrf.mxu3 }
 0x11e   :  { %v1893_v62 = vpack.c.bf16 %v1274_v58, %v1273_v57  ;;  %v954_v0 = vadd.f32 %v953_v60, %v784_v59  ;;  %v707_v1 = vpop.f32.mrf.mxu0 }
 0x11f   :  { %v876_v2 = vpop.f32.mrf.mxu1 }
 0x120   :  { %2021 = vst [vmem:[%s2683_s3 + $0x38] sm:$0xff] %v1893_v62   ;;  %v1242_v3 = vadd.f32 %v2350_v63, %v954_v0  ;;  %v877_v7 = vadd.f32 %v876_v2, %v707_v1 }
 0x122   :  { %v1306_v5 = vmax.f32 %v1242_v3, 0.0  ;;  %v1211_v12 = vadd.f32 %v2350_v63, %v877_v7 }
 0x124   :  { %v1973_v6 = vpack.c.bf16 %v1306_v5, %v1305_v4  ;;  %v787_v8 = vpop.f32.mrf.mxu2  ;;  %v1275_v16 = vmax.f32 %v1211_v12, 0.0 }
 0x125   :  { %v956_v9 = vpop.f32.mrf.mxu3 }
 0x126   :  { %2037 = vst [vmem:[%s2683_s3 + $0xb8] sm:$0xff] %v1973_v6   ;;  %v709_v10 = vpop.f32.mrf.mxu0  ;;  %v957_v14 = vadd.f32 %v956_v9, %v787_v8 }
 0x127   :  { %v878_v11 = vpop.f32.mrf.mxu1 }
 0x128   :  { %v879_v13 = vadd.f32 %v878_v11, %v709_v10  ;;  %v1243_v20 = vadd.f32 %v2350_v63, %v957_v14 }
 0x12a   :  { %v1212_v15 = vadd.f32 %v2350_v63, %v879_v13  ;;  %v1307_v26 = vmax.f32 %v1243_v20, 0.0 }
 0x12c   :  { %v1276_v17 = vmax.f32 %v1212_v15, 0.0  ;;  %v789_v18 = vpop.f32.mrf.mxu2 }
 0x12d   :  { %v958_v19 = vpop.f32.mrf.mxu3 }
 0x12e   :  { %v1898_v21 = vpack.c.bf16 %v1276_v17, %v1275_v16  ;;  %v959_v22 = vadd.f32 %v958_v19, %v789_v18  ;;  %v712_v23 = vpop.f32.mrf.mxu0 }
 0x12f   :  { %v881_v24 = vpop.f32.mrf.mxu1 }
 0x130   :  { %2022 = vst [vmem:[%s2683_s3 + $0x40] sm:$0xff] %v1898_v21   ;;  %v1244_v25 = vadd.f32 %v2350_v63, %v959_v22  ;;  %v882_v29 = vadd.f32 %v881_v24, %v712_v23 }
 0x132   :  { %v1308_v27 = vmax.f32 %v1244_v25, 0.0  ;;  %v1213_v34 = vadd.f32 %v2350_v63, %v882_v29 }
 0x134   :  { %v1978_v28 = vpack.c.bf16 %v1308_v27, %v1307_v26  ;;  %v792_v30 = vpop.f32.mrf.mxu2  ;;  %v1277_v38 = vmax.f32 %v1213_v34, 0.0 }
 0x135   :  { %v961_v31 = vpop.f32.mrf.mxu3 }
 0x136   :  { %2038 = vst [vmem:[%s2683_s3 + $0xc0] sm:$0xff] %v1978_v28   ;;  %v714_v32 = vpop.f32.mrf.mxu0  ;;  %v962_v36 = vadd.f32 %v961_v31, %v792_v30 }
 0x137   :  { %v883_v33 = vpop.f32.mrf.mxu1 }
 0x138   :  { %v884_v35 = vadd.f32 %v883_v33, %v714_v32  ;;  %v1245_v42 = vadd.f32 %v2350_v63, %v962_v36 }
 0x13a   :  { %v1214_v37 = vadd.f32 %v2350_v63, %v884_v35  ;;  %v1309_v48 = vmax.f32 %v1245_v42, 0.0 }
 0x13c   :  { %v1278_v39 = vmax.f32 %v1214_v37, 0.0  ;;  %v794_v40 = vpop.f32.mrf.mxu2 }
 0x13d   :  { %v963_v41 = vpop.f32.mrf.mxu3 }
 0x13e   :  { %v1903_v43 = vpack.c.bf16 %v1278_v39, %v1277_v38  ;;  %v964_v44 = vadd.f32 %v963_v41, %v794_v40  ;;  %v717_v45 = vpop.f32.mrf.mxu0 }
 0x13f   :  { %v886_v46 = vpop.f32.mrf.mxu1 }
 0x140   :  { %2023 = vst [vmem:[%s2683_s3 + $0x48] sm:$0xff] %v1903_v43   ;;  %v1246_v47 = vadd.f32 %v2350_v63, %v964_v44  ;;  %v887_v51 = vadd.f32 %v886_v46, %v717_v45 }
 0x142   :  { %v1310_v49 = vmax.f32 %v1246_v47, 0.0  ;;  %v1215_v56 = vadd.f32 %v2350_v63, %v887_v51 }
 0x144   :  { %v1983_v50 = vpack.c.bf16 %v1310_v49, %v1309_v48  ;;  %v797_v52 = vpop.f32.mrf.mxu2  ;;  %v1279_v60 = vmax.f32 %v1215_v56, 0.0 }
 0x145   :  { %v966_v53 = vpop.f32.mrf.mxu3 }
 0x146   :  { %2039 = vst [vmem:[%s2683_s3 + $0xc8] sm:$0xff] %v1983_v50   ;;  %v719_v54 = vpop.f32.mrf.mxu0  ;;  %v967_v58 = vadd.f32 %v966_v53, %v797_v52 }
 0x147   :  { %v888_v55 = vpop.f32.mrf.mxu1 }
 0x148   :  { %v889_v57 = vadd.f32 %v888_v55, %v719_v54  ;;  %v1247_v1 = vadd.f32 %v2350_v63, %v967_v58 }
 0x14a   :  { %v1216_v59 = vadd.f32 %v2350_v63, %v889_v57  ;;  %v1311_v7 = vmax.f32 %v1247_v1, 0.0 }
 0x14c   :  { %v1280_v61 = vmax.f32 %v1216_v59, 0.0  ;;  %v799_v62 = vpop.f32.mrf.mxu2 }
 0x14d   :  { %v968_v0 = vpop.f32.mrf.mxu3 }
 0x14e   :  { %v1908_v2 = vpack.c.bf16 %v1280_v61, %v1279_v60  ;;  %v969_v3 = vadd.f32 %v968_v0, %v799_v62  ;;  %v722_v4 = vpop.f32.mrf.mxu0 }
 0x14f   :  { %v891_v5 = vpop.f32.mrf.mxu1 }
 0x150   :  { %2024 = vst [vmem:[%s2683_s3 + $0x50] sm:$0xff] %v1908_v2   ;;  %v1248_v6 = vadd.f32 %v2350_v63, %v969_v3  ;;  %v892_v10 = vadd.f32 %v891_v5, %v722_v4 }
 0x152   :  { %v1312_v8 = vmax.f32 %v1248_v6, 0.0  ;;  %v1217_v15 = vadd.f32 %v2350_v63, %v892_v10 }
 0x154   :  { %v1988_v9 = vpack.c.bf16 %v1312_v8, %v1311_v7  ;;  %v802_v11 = vpop.f32.mrf.mxu2  ;;  %v1281_v19 = vmax.f32 %v1217_v15, 0.0 }
 0x155   :  { %v971_v12 = vpop.f32.mrf.mxu3 }
 0x156   :  { %2040 = vst [vmem:[%s2683_s3 + $0xd0] sm:$0xff] %v1988_v9   ;;  %v724_v13 = vpop.f32.mrf.mxu0  ;;  %v972_v17 = vadd.f32 %v971_v12, %v802_v11 }
 0x157   :  { %v893_v14 = vpop.f32.mrf.mxu1 }
 0x158   :  { %v894_v16 = vadd.f32 %v893_v14, %v724_v13  ;;  %v1249_v23 = vadd.f32 %v2350_v63, %v972_v17 }
 0x15a   :  { %v1218_v18 = vadd.f32 %v2350_v63, %v894_v16  ;;  %v1313_v29 = vmax.f32 %v1249_v23, 0.0 }
 0x15c   :  { %v1282_v20 = vmax.f32 %v1218_v18, 0.0  ;;  %v804_v21 = vpop.f32.mrf.mxu2 }
 0x15d   :  { %v973_v22 = vpop.f32.mrf.mxu3 }
 0x15e   :  { %v1913_v24 = vpack.c.bf16 %v1282_v20, %v1281_v19  ;;  %v974_v25 = vadd.f32 %v973_v22, %v804_v21  ;;  %v727_v26 = vpop.f32.mrf.mxu0 }
 0x15f   :  { %v896_v27 = vpop.f32.mrf.mxu1 }
 0x160   :  { %2025 = vst [vmem:[%s2683_s3 + $0x58] sm:$0xff] %v1913_v24   ;;  %v1250_v28 = vadd.f32 %v2350_v63, %v974_v25  ;;  %v897_v32 = vadd.f32 %v896_v27, %v727_v26 }
 0x162   :  { %v1314_v30 = vmax.f32 %v1250_v28, 0.0  ;;  %v1219_v37 = vadd.f32 %v2350_v63, %v897_v32 }
 0x164   :  { %v1993_v31 = vpack.c.bf16 %v1314_v30, %v1313_v29  ;;  %v807_v33 = vpop.f32.mrf.mxu2  ;;  %v1283_v41 = vmax.f32 %v1219_v37, 0.0 }
 0x165   :  { %v976_v34 = vpop.f32.mrf.mxu3 }
 0x166   :  { %2041 = vst [vmem:[%s2683_s3 + $0xd8] sm:$0xff] %v1993_v31   ;;  %v729_v35 = vpop.f32.mrf.mxu0  ;;  %v977_v39 = vadd.f32 %v976_v34, %v807_v33 }
 0x167   :  { %v898_v36 = vpop.f32.mrf.mxu1 }
 0x168   :  { %v899_v38 = vadd.f32 %v898_v36, %v729_v35  ;;  %v1251_v45 = vadd.f32 %v2350_v63, %v977_v39 }
 0x16a   :  { %v1220_v40 = vadd.f32 %v2350_v63, %v899_v38  ;;  %v1315_v51 = vmax.f32 %v1251_v45, 0.0 }
 0x16c   :  { %v1284_v42 = vmax.f32 %v1220_v40, 0.0  ;;  %v809_v43 = vpop.f32.mrf.mxu2 }
 0x16d   :  { %v978_v44 = vpop.f32.mrf.mxu3 }
 0x16e   :  { %v1918_v46 = vpack.c.bf16 %v1284_v42, %v1283_v41  ;;  %v979_v47 = vadd.f32 %v978_v44, %v809_v43  ;;  %v732_v48 = vpop.f32.mrf.mxu0 }
 0x16f   :  { %v901_v49 = vpop.f32.mrf.mxu1 }
 0x170   :  { %2026 = vst [vmem:[%s2683_s3 + $0x60] sm:$0xff] %v1918_v46   ;;  %v1252_v50 = vadd.f32 %v2350_v63, %v979_v47  ;;  %v902_v54 = vadd.f32 %v901_v49, %v732_v48 }
 0x172   :  { %v1316_v52 = vmax.f32 %v1252_v50, 0.0  ;;  %v1221_v59 = vadd.f32 %v2350_v63, %v902_v54 }
 0x174   :  { %v1998_v53 = vpack.c.bf16 %v1316_v52, %v1315_v51  ;;  %v812_v55 = vpop.f32.mrf.mxu2  ;;  %v1285_v0 = vmax.f32 %v1221_v59, 0.0 }
 0x175   :  { %v981_v56 = vpop.f32.mrf.mxu3 }
 0x176   :  { %2042 = vst [vmem:[%s2683_s3 + $0xe0] sm:$0xff] %v1998_v53   ;;  %v734_v57 = vpop.f32.mrf.mxu0  ;;  %v982_v61 = vadd.f32 %v981_v56, %v812_v55 }
 0x177   :  { %v903_v58 = vpop.f32.mrf.mxu1 }
 0x178   :  { %v904_v60 = vadd.f32 %v903_v58, %v734_v57  ;;  %v1253_v4 = vadd.f32 %v2350_v63, %v982_v61 }
 0x17a   :  { %v1222_v62 = vadd.f32 %v2350_v63, %v904_v60  ;;  %v1317_v10 = vmax.f32 %v1253_v4, 0.0 }
 0x17c   :  { %v1286_v1 = vmax.f32 %v1222_v62, 0.0  ;;  %v814_v2 = vpop.f32.mrf.mxu2 }
 0x17d   :  { %v983_v3 = vpop.f32.mrf.mxu3 }
 0x17e   :  { %v1923_v5 = vpack.c.bf16 %v1286_v1, %v1285_v0  ;;  %v984_v6 = vadd.f32 %v983_v3, %v814_v2  ;;  %v737_v7 = vpop.f32.mrf.mxu0 }
 0x17f   :  { %v906_v8 = vpop.f32.mrf.mxu1 }
 0x180   :  { %2027 = vst [vmem:[%s2683_s3 + $0x68] sm:$0xff] %v1923_v5   ;;  %v1254_v9 = vadd.f32 %v2350_v63, %v984_v6  ;;  %v907_v13 = vadd.f32 %v906_v8, %v737_v7 }
 0x182   :  { %v1318_v11 = vmax.f32 %v1254_v9, 0.0  ;;  %v1223_v18 = vadd.f32 %v2350_v63, %v907_v13 }
 0x184   :  { %v2003_v12 = vpack.c.bf16 %v1318_v11, %v1317_v10  ;;  %v817_v14 = vpop.f32.mrf.mxu2  ;;  %v1287_v22 = vmax.f32 %v1223_v18, 0.0 }
 0x185   :  { %v986_v15 = vpop.f32.mrf.mxu3 }
 0x186   :  { %2043 = vst [vmem:[%s2683_s3 + $0xe8] sm:$0xff] %v2003_v12   ;;  %v739_v16 = vpop.f32.mrf.mxu0  ;;  %v987_v20 = vadd.f32 %v986_v15, %v817_v14 }
 0x187   :  { %v908_v17 = vpop.f32.mrf.mxu1 }
 0x188   :  { %v909_v19 = vadd.f32 %v908_v17, %v739_v16  ;;  %v1255_v26 = vadd.f32 %v2350_v63, %v987_v20 }
 0x18a   :  { %v1224_v21 = vadd.f32 %v2350_v63, %v909_v19  ;;  %v1319_v32 = vmax.f32 %v1255_v26, 0.0 }
 0x18c   :  { %v1288_v23 = vmax.f32 %v1224_v21, 0.0  ;;  %v819_v24 = vpop.f32.mrf.mxu2 }
 0x18d   :  { %v988_v25 = vpop.f32.mrf.mxu3 }
 0x18e   :  { %v1928_v27 = vpack.c.bf16 %v1288_v23, %v1287_v22  ;;  %v989_v28 = vadd.f32 %v988_v25, %v819_v24  ;;  %v742_v29 = vpop.f32.mrf.mxu0 }
 0x18f   :  { %v911_v30 = vpop.f32.mrf.mxu1 }
 0x190   :  { %2028 = vst [vmem:[%s2683_s3 + $0x70] sm:$0xff] %v1928_v27   ;;  %v1256_v31 = vadd.f32 %v2350_v63, %v989_v28  ;;  %v912_v35 = vadd.f32 %v911_v30, %v742_v29 }
 0x192   :  { %v1320_v33 = vmax.f32 %v1256_v31, 0.0  ;;  %v1225_v40 = vadd.f32 %v2350_v63, %v912_v35 }
 0x194   :  { %v2008_v34 = vpack.c.bf16 %v1320_v33, %v1319_v32  ;;  %v822_v36 = vpop.f32.mrf.mxu2  ;;  %v1289_v44 = vmax.f32 %v1225_v40, 0.0 }
 0x195   :  { %v991_v37 = vpop.f32.mrf.mxu3 }
 0x196   :  { %2044 = vst [vmem:[%s2683_s3 + $0xf0] sm:$0xff] %v2008_v34   ;;  %v744_v38 = vpop.f32.mrf.mxu0  ;;  %v992_v42 = vadd.f32 %v991_v37, %v822_v36 }
 0x197   :  { %v913_v39 = vpop.f32.mrf.mxu1 }
 0x198   :  { %v914_v41 = vadd.f32 %v913_v39, %v744_v38  ;;  %v1257_v48 = vadd.f32 %v2350_v63, %v992_v42 }
 0x19a   :  { %v1226_v43 = vadd.f32 %v2350_v63, %v914_v41  ;;  %v1321_v52 = vmax.f32 %v1257_v48, 0.0 }
 0x19c   :  { %v1290_v45 = vmax.f32 %v1226_v43, 0.0  ;;  %v824_v46 = vpop.f32.mrf.mxu2 }
 0x19d   :  { %v993_v47 = vpop.f32.mrf.mxu3 }
 0x19e   :  { %v1933_v49 = vpack.c.bf16 %v1290_v45, %v1289_v44  ;;  %v994_v50 = vadd.f32 %v993_v47, %v824_v46 }
 0x1a0   :  { %2029 = vst [vmem:[%s2683_s3 + $0x78] sm:$0xff] %v1933_v49   ;;  %v1258_v51 = vadd.f32 %v2350_v63, %v994_v50 }
 0x1a2   :  { %v1322_v53 = vmax.f32 %v1258_v51, 0.0 }
 0x1a4   :  { %v2013_v54 = vpack.c.bf16 %v1322_v53, %v1321_v52 }
 0x1a6   :  { %2045 = vst [vmem:[%s2683_s3 + $0xf8] sm:$0xff] %v2013_v54  }

// kernel: forward.25
= control target key start
LH: loop header
LB: loop body
LE: loop exit
PB: predicated region body
PF: predicated region fallthrough
CT: control target
= control target key end

     0   :  { %s734_s1 = inlined_call_operand.vmem [shape: bf16[128,128], index: 1, kind: input, shape index: {}]   ;;  %s735_s2 = inlined_call_operand.vmem [shape: f32[1,128], index: 2, kind: input, shape index: {}]   ;;  %s736_s0 = inlined_call_operand.vmem [shape: bf16[128,128], index: 0, kind: input, shape index: {}]   ;;  %s737_s3 = inlined_call_operand.vmem [shape: bf16[128,128], index: 3, kind: input, shape index: {}]   ;;  %s738_s4 = inlined_call_operand.vmem [shape: bf16[128,128], index: 4, kind: output, shape index: {}]  }
   0x1   :  { %v480_v0 = vld [vmem:[%s734_s1 + $0x38] sm:$0xff]  ;;  %v479_v1 = vld [vmem:[%s734_s1 + $0x30] sm:$0xff]  ;;  %v478_v2 = vld [vmem:[%s734_s1 + $0x28] sm:$0xff] }
   0x2   :  { %181 = vmatpush.bf16.msra.mxu0 %v480_v0  ;;  %567 = vmatpush.bf16.msra.mxu1 %v480_v0  ;;  %v477_v3 = vld [vmem:[%s734_s1 + $0x20] sm:$0xff]  ;;  %v476_v4 = vld [vmem:[%s734_s1 + $0x18] sm:$0xff]  ;;  %v475_v5 = vld [vmem:[%s734_s1 + $0x10] sm:$0xff] }
   0x3   :  { %568 = vmatpush.bf16.msra.mxu2 %v480_v0  ;;  %569 = vmatpush.bf16.msra.mxu3 %v480_v0  ;;  %v474_v6 = vld [vmem:[%s734_s1 + $0x8] sm:$0xff]  ;;  %v473_v7 = vld [vmem:[%s734_s1] sm:$0xff]  ;;  %v467_v9 = vld [vmem:[%s736_s0 + $0x10] sm:$0xff] }
   0x4   :  { %v465_v8 = vld [vmem:[%s736_s0] sm:$0xff]  ;;  %v471_v11 = vld [vmem:[%s736_s0 + $0x30] sm:$0xff]  ;;  %v466_v12 = vld [vmem:[%s736_s0 + $0x8] sm:$0xff] }
   0x5   :  { %v469_v10 = vld [vmem:[%s736_s0 + $0x20] sm:$0xff]  ;;  %v468_v13 = vld [vmem:[%s736_s0 + $0x18] sm:$0xff]  ;;  %v470_v14 = vld [vmem:[%s736_s0 + $0x28] sm:$0xff] }
   0x6   :  { %182 = vmatpush.bf16.msra.mxu0 %v479_v1  ;;  %570 = vmatpush.bf16.msra.mxu1 %v479_v1  ;;  %v472_v15 = vld [vmem:[%s736_s0 + $0x38] sm:$0xff]  ;;  %v668_v18 = vld [vmem:[%s735_s2] ss:$0 sm:$0xff]  ;;  %v554_v20 = vld [vmem:[%s737_s3 + $0x10] sm:$0xff]  }
   0x7   :  { %571 = vmatpush.bf16.msra.mxu2 %v479_v1  ;;  %572 = vmatpush.bf16.msra.mxu3 %v479_v1  ;;  %v482_v19 = vld [vmem:[%s737_s3] sm:$0xff]   ;;  %v491_v24 = vunpack.c.l.bf16 %v554_v20  ;;  %v492_v28 = vunpack.c.h.bf16 %v554_v20  ;;  %v558_v34 = vld [vmem:[%s737_s3 + $0x30] sm:$0xff]   ;;  %v553_v61 = vld [vmem:[%s737_s3 + $0x8] sm:$0xff]  }
   0x8   :  { %v483_v22 = vunpack.c.l.bf16 %v482_v19  ;;  %v484_v27 = vunpack.c.h.bf16 %v482_v19  ;;  %v556_v33 = vld [vmem:[%s737_s3 + $0x20] sm:$0xff]   ;;  %v507_v42 = vunpack.c.l.bf16 %v558_v34  ;;  %v508_v48 = vunpack.c.h.bf16 %v558_v34  ;;  %v555_v62 = vld [vmem:[%s737_s3 + $0x18] sm:$0xff]  }
   0x9   :  { %v499_v40 = vunpack.c.l.bf16 %v556_v33  ;;  %v500_v47 = vunpack.c.h.bf16 %v556_v33  ;;  %v559_v19 = vld [vmem:[%s737_s3 + $0x38] sm:$0xff]  }
   0xa   :  { %183 = vmatpush.bf16.msra.mxu0 %v478_v2  ;;  %573 = vmatpush.bf16.msra.mxu1 %v478_v2  ;;  %v512_v33 = vunpack.c.h.bf16 %v559_v19 }
   0xb   :  { %574 = vmatpush.bf16.msra.mxu2 %v478_v2  ;;  %575 = vmatpush.bf16.msra.mxu3 %v478_v2 }
   0xe   :  { %184 = vmatpush.bf16.msra.mxu0 %v477_v3  ;;  %576 = vmatpush.bf16.msra.mxu1 %v477_v3 }
   0xf   :  { %577 = vmatpush.bf16.msra.mxu2 %v477_v3  ;;  %578 = vmatpush.bf16.msra.mxu3 %v477_v3 }
  0x12   :  { %185 = vmatpush.bf16.msra.mxu0 %v476_v4  ;;  %579 = vmatpush.bf16.msra.mxu1 %v476_v4 }
  0x13   :  { %580 = vmatpush.bf16.msra.mxu2 %v476_v4  ;;  %581 = vmatpush.bf16.msra.mxu3 %v476_v4  ;;  %v487_v4 = vunpack.c.l.bf16 %v553_v61 }
  0x16   :  { %186 = vmatpush.bf16.msra.mxu0 %v475_v5  ;;  %582 = vmatpush.bf16.msra.mxu1 %v475_v5 }
  0x17   :  { %583 = vmatpush.bf16.msra.mxu2 %v475_v5  ;;  %584 = vmatpush.bf16.msra.mxu3 %v475_v5 }
  0x1a   :  { %187 = vmatpush.bf16.msra.mxu0 %v474_v6  ;;  %585 = vmatpush.bf16.msra.mxu1 %v474_v6 }
  0x1b   :  { %586 = vmatpush.bf16.msra.mxu2 %v474_v6  ;;  %587 = vmatpush.bf16.msra.mxu3 %v474_v6  ;;  %v495_v6 = vunpack.c.l.bf16 %v555_v62 }
  0x1e   :  { %188 = vmatpush.bf16.msra.mxu0 %v473_v7  ;;  %588 = vmatpush.bf16.msra.mxu1 %v473_v7 }
  0x1f   :  { %589 = vmatpush.bf16.msra.mxu2 %v473_v7  ;;  %590 = vmatpush.bf16.msra.mxu3 %v473_v7 }
  0x21   :  { %189 = vmatmul.bf16.vlgmr.msra.gmra.mxu0 %v465_v8  ;;  %199 = vmatmul.bf16.vlgmr.msra.gmra.mxu1 %v467_v9 }
  0x22   :  { %209 = vmatmul.bf16.vlgmr.msra.gmra.mxu2 %v469_v10  ;;  %219 = vmatmul.bf16.vlgmr.msra.gmra.mxu3 %v471_v11  ;;  %v488_v11 = vunpack.c.h.bf16 %v553_v61 }
  0x31   :  { %194 = vmatmul.bf16.gmra.mxu0 %v466_v12  ;;  %204 = vmatmul.bf16.gmra.mxu1 %v468_v13  ;;  %v496_v12 = vunpack.c.h.bf16 %v555_v62 }
  0x32   :  { %214 = vmatmul.bf16.gmra.mxu2 %v470_v14  ;;  %224 = vmatmul.bf16.gmra.mxu3 %v472_v15 }
  0x9e   :  { %v190_v16 = vpop.f32.mrf.mxu0  ;;  %v200_v17 = vpop.f32.mrf.mxu1 }
  0x9f   :  { %v285_v21 = vadd.f32 %v668_v18, %v190_v16  ;;  %v289_v23 = vadd.f32 %v668_v18, %v200_v17  ;;  %v557_v17 = vld [vmem:[%s737_s3 + $0x28] sm:$0xff]  }
  0xa1   :  { %v333_v31 = vadd.f32 %v483_v22, %v285_v21  ;;  %v337_v32 = vadd.f32 %v491_v24, %v289_v23 }
  0xa3   :  { %v349_v43 = vmax.f32 %v333_v31, 0.0  ;;  %v353_v44 = vmax.f32 %v337_v32, 0.0  ;;  %v504_v32 = vunpack.c.h.bf16 %v557_v17 }
  0xa5   :  { %v210_v25 = vpop.f32.mrf.mxu2  ;;  %v220_v26 = vpop.f32.mrf.mxu3 }
  0xa6   :  { %v192_v29 = vpop.f32.mrf.mxu0  ;;  %v202_v30 = vpop.f32.mrf.mxu1  ;;  %v293_v39 = vadd.f32 %v668_v18, %v210_v25  ;;  %v297_v41 = vadd.f32 %v668_v18, %v220_v26  ;;  %v503_v25 = vunpack.c.l.bf16 %v557_v17 }
  0xa7   :  { %v286_v35 = vadd.f32 %v668_v18, %v192_v29  ;;  %v290_v36 = vadd.f32 %v668_v18, %v202_v30 }
  0xa8   :  { %v341_v53 = vadd.f32 %v499_v40, %v293_v39  ;;  %v345_v54 = vadd.f32 %v507_v42, %v297_v41 }
  0xa9   :  { %v334_v37 = vadd.f32 %v484_v27, %v286_v35  ;;  %v338_v38 = vadd.f32 %v492_v28, %v290_v36  ;;  %v511_v27 = vunpack.c.l.bf16 %v559_v19 }
  0xaa   :  { %v357_v63 = vmax.f32 %v341_v53, 0.0  ;;  %v361_v0 = vmax.f32 %v345_v54, 0.0 }
  0xab   :  { %v350_v45 = vmax.f32 %v334_v37, 0.0  ;;  %v354_v46 = vmax.f32 %v338_v38, 0.0 }
  0xad   :  { %v516_v49 = vpack.c.bf16 %v350_v45, %v349_v43  ;;  %v526_v50 = vpack.c.bf16 %v354_v46, %v353_v44  ;;  %v212_v51 = vpop.f32.mrf.mxu2  ;;  %v222_v52 = vpop.f32.mrf.mxu3 }
  0xae   :  { %v294_v55 = vadd.f32 %v668_v18, %v212_v51  ;;  %v298_v56 = vadd.f32 %v668_v18, %v222_v52  ;;  %v195_v57 = vpop.f32.mrf.mxu0  ;;  %v205_v58 = vpop.f32.mrf.mxu1 }
  0xaf   :  { %517 = vst [vmem:[%s738_s4] sm:$0xff] %v516_v49   ;;  %v287_v3 = vadd.f32 %v668_v18, %v195_v57  ;;  %v291_v5 = vadd.f32 %v668_v18, %v205_v58 }
  0xb0   :  { %561 = vst [vmem:[%s738_s4 + $0x10] sm:$0xff] %v526_v50   ;;  %v342_v59 = vadd.f32 %v500_v47, %v294_v55  ;;  %v346_v60 = vadd.f32 %v508_v48, %v298_v56 }
  0xb1   :  { %v335_v15 = vadd.f32 %v487_v4, %v287_v3  ;;  %v339_v16 = vadd.f32 %v495_v6, %v291_v5 }
  0xb2   :  { %v358_v1 = vmax.f32 %v342_v59, 0.0  ;;  %v362_v2 = vmax.f32 %v346_v60, 0.0 }
  0xb3   :  { %v351_v28 = vmax.f32 %v335_v15, 0.0  ;;  %v355_v29 = vmax.f32 %v339_v16, 0.0 }
  0xb4   :  { %v536_v7 = vpack.c.bf16 %v358_v1, %v357_v63  ;;  %v546_v8 = vpack.c.bf16 %v362_v2, %v361_v0 }
  0xb5   :  { %v215_v9 = vpop.f32.mrf.mxu2  ;;  %v225_v10 = vpop.f32.mrf.mxu3 }
  0xb6   :  { %563 = vst [vmem:[%s738_s4 + $0x20] sm:$0xff] %v536_v7   ;;  %v197_v13 = vpop.f32.mrf.mxu0  ;;  %v207_v14 = vpop.f32.mrf.mxu1  ;;  %v295_v24 = vadd.f32 %v668_v18, %v215_v9  ;;  %v299_v26 = vadd.f32 %v668_v18, %v225_v10 }
  0xb7   :  { %565 = vst [vmem:[%s738_s4 + $0x30] sm:$0xff] %v546_v8   ;;  %v288_v20 = vadd.f32 %v668_v18, %v197_v13  ;;  %v292_v21 = vadd.f32 %v668_v18, %v207_v14 }
  0xb8   :  { %v343_v38 = vadd.f32 %v503_v25, %v295_v24  ;;  %v347_v39 = vadd.f32 %v511_v27, %v299_v26 }
  0xb9   :  { %v336_v22 = vadd.f32 %v488_v11, %v288_v20  ;;  %v340_v23 = vadd.f32 %v496_v12, %v292_v21 }
  0xba   :  { %v359_v44 = vmax.f32 %v343_v38, 0.0  ;;  %v363_v45 = vmax.f32 %v347_v39, 0.0 }
  0xbb   :  { %v352_v30 = vmax.f32 %v336_v22, 0.0  ;;  %v356_v31 = vmax.f32 %v340_v23, 0.0 }
  0xbd   :  { %v521_v34 = vpack.c.bf16 %v352_v30, %v351_v28  ;;  %v531_v35 = vpack.c.bf16 %v356_v31, %v355_v29  ;;  %v217_v36 = vpop.f32.mrf.mxu2  ;;  %v227_v37 = vpop.f32.mrf.mxu3 }
  0xbe   :  { %v296_v40 = vadd.f32 %v668_v18, %v217_v36  ;;  %v300_v41 = vadd.f32 %v668_v18, %v227_v37 }
  0xbf   :  { %560 = vst [vmem:[%s738_s4 + $0x8] sm:$0xff] %v521_v34  }
  0xc0   :  { %562 = vst [vmem:[%s738_s4 + $0x18] sm:$0xff] %v531_v35   ;;  %v344_v42 = vadd.f32 %v504_v32, %v296_v40  ;;  %v348_v43 = vadd.f32 %v512_v33, %v300_v41 }
  0xc2   :  { %v360_v46 = vmax.f32 %v344_v42, 0.0  ;;  %v364_v47 = vmax.f32 %v348_v43, 0.0 }
  0xc4   :  { %v541_v48 = vpack.c.bf16 %v360_v46, %v359_v44  ;;  %v551_v49 = vpack.c.bf16 %v364_v47, %v363_v45 }
  0xc6   :  { %564 = vst [vmem:[%s738_s4 + $0x28] sm:$0xff] %v541_v48  }
  0xc7   :  { %566 = vst [vmem:[%s738_s4 + $0x38] sm:$0xff] %v551_v49  }

// kernel: forward.23
= control target key start
LH: loop header
LB: loop body
LE: loop exit
PB: predicated region body
PF: predicated region fallthrough
CT: control target
= control target key end

     0   :  { %s999_s12 = smov 0   ;;  %s1001_s13 = smov 0   ;;  %s1131_s0 = inlined_call_operand.vmem [shape: bf16[128,1152], index: 0, kind: input, shape index: {}]   ;;  %s1132_s1 = inlined_call_operand.vmem [shape: bf16[1152,128], index: 1, kind: input, shape index: {}]   ;;  %s1133_s2 = inlined_call_operand.vmem [shape: f32[1,128], index: 2, kind: input, shape index: {}]   ;;  %s1134_s3 = inlined_call_operand.vmem [shape: bf16[128,128], index: 3, kind: output, shape index: {}]  }
   0x1   :  { %s1003_s14 = smov 0   ;;  %s1005_s15 = smov 0  }
   0x2   :  { %s1007_s16 = smov 0  }
   0x3 LB: > { %s22_s17 = sadd.s32 1, %s972_s15  ;;  %p41_p1 = scmp.ne.s32.totalorder %s964_s13, %s960_s12  ;;  %s976_s16 = sphi %s1007_s16, %s13_s16   ;;  %s972_s15 = sphi %s1005_s15, %s1138_s15   ;;  %s968_s14 = sphi %s1003_s14, %s1137_s14   ;;  %s964_s13 = sphi %s1001_s13, %s1136_s13   ;;  %s960_s12 = sphi %s999_s12, %s1135_s12  }
   0x4   : > { %p23_p0 = scmp.ge.s32.totalorder %s22_s17, 9  ;;  %p42_p2 = scmp.eq.s32.totalorder %s976_s16, 0 }
   0x5   : > { %s34_s19 = sadd.s32 1, %s964_s13  ;;  %p732_p5 = scmp.ge.s32.totalorder %s976_s16, 9 }
   0x6   : > { %s1140_s17 = smov (%p23_p0, %s22_s17), 0  ;;  %p43_p3 = por %p42_p2, %p41_p1 }
   0x7   : > { %s30_s18 = ssub.s32 %s972_s15, %s1140_s17  ;;  %143 = sbr.rel (%p732_p5) target bundleno = 32 (0x20), region = 20 }
   0x8   : > { %p32_p4 = scmp.eq.s32.totalorder %s30_s18, 0 }
   0xa   : > { %s1034_s20 = scalar_select %p32_p4, %s964_s13, %s34_s19  }
   0xc   : > { %146 = sbr.rel (!%p43_p3) target bundleno = 32 (0x20), region = 24  ;;  %s148_s21 = sand.u32 (%p43_p3), 1, %s964_s13  }
   0xd   : > { %s734_s22 = sshll.u32 (%p43_p3), %s972_s15, 2  ;;  %s733_s23 = sshll.u32 (%p43_p3), %s148_s21, 6 }
   0xe   : > { %s1042_s26 = scalar_lea.vmem (%p43_p3), %s1131_s0, %s734_s22  ;;  %s150_s27 = scalar_lea.vmem (%p43_p3), [#allocation3], %s733_s23 }
   0xf   : > { %v172_v0 = vld [vmem:[%s1042_s26] sm:$0xf] (%p43_p3)  ;;  %v174_v1 = vld [vmem:[%s1042_s26 + $0x24] sm:$0xf] (%p43_p3)  ;;  %v176_v2 = vld [vmem:[%s1042_s26 + $0x48] sm:$0xf] (%p43_p3) }
  0x10   : > { %173 = vst [vmem:[%s150_s27] sm:$0xf] (%p43_p3), %v172_v0  ;;  %v178_v3 = vld [vmem:[%s1042_s26 + $0x6c] sm:$0xf] (%p43_p3)  ;;  %v180_v4 = vld [vmem:[%s1042_s26 + $0x90] sm:$0xf] (%p43_p3) }
  0x11   : > { %175 = vst [vmem:[%s150_s27 + $0x4] sm:$0xf] %v174_v1  ;;  %v182_v5 = vld [vmem:[%s1042_s26 + $0xb4] sm:$0xf]  ;;  %v184_v6 = vld [vmem:[%s1042_s26 + $0xd8] sm:$0xf] }
  0x12   : > { %177 = vst [vmem:[%s150_s27 + $0x8] sm:$0xf] %v176_v2  ;;  %v186_v7 = vld [vmem:[%s1042_s26 + $0xfc] sm:$0xf]  ;;  %v188_v8 = vld [vmem:[%s1042_s26 + $0x120] sm:$0xf] }
  0x13   : > { %179 = vst [vmem:[%s150_s27 + $0xc] sm:$0xf] %v178_v3  ;;  %v190_v9 = vld [vmem:[%s1042_s26 + $0x144] sm:$0xf]  ;;  %v192_v10 = vld [vmem:[%s1042_s26 + $0x168] sm:$0xf] }
  0x14   : > { %181 = vst [vmem:[%s150_s27 + $0x10] sm:$0xf] %v180_v4  ;;  %v194_v11 = vld [vmem:[%s1042_s26 + $0x18c] sm:$0xf]  ;;  %v196_v12 = vld [vmem:[%s1042_s26 + $0x1b0] sm:$0xf] }
  0x15   : > { %183 = vst [vmem:[%s150_s27 + $0x14] sm:$0xf] %v182_v5  ;;  %v198_v13 = vld [vmem:[%s1042_s26 + $0x1d4] sm:$0xf]  ;;  %v200_v14 = vld [vmem:[%s1042_s26 + $0x1f8] sm:$0xf] }
  0x16   : > { %185 = vst [vmem:[%s150_s27 + $0x18] sm:$0xf] %v184_v6  ;;  %v202_v15 = vld [vmem:[%s1042_s26 + $0x21c] sm:$0xf] }
  0x17   : > { %187 = vst [vmem:[%s150_s27 + $0x1c] sm:$0xf] %v186_v7 }
  0x18   : > { %189 = vst [vmem:[%s150_s27 + $0x20] sm:$0xf] %v188_v8 }
  0x19   : > { %191 = vst [vmem:[%s150_s27 + $0x24] sm:$0xf] %v190_v9 }
  0x1a   : > { %193 = vst [vmem:[%s150_s27 + $0x28] sm:$0xf] %v192_v10 }
  0x1b   : > { %195 = vst [vmem:[%s150_s27 + $0x2c] sm:$0xf] %v194_v11 }
  0x1c   : > { %197 = vst [vmem:[%s150_s27 + $0x30] sm:$0xf] %v196_v12 }
  0x1d   : > { %199 = vst [vmem:[%s150_s27 + $0x34] sm:$0xf] %v198_v13 }
  0x1e   : > { %201 = vst [vmem:[%s150_s27 + $0x38] sm:$0xf] %v200_v14 }
  0x1f   : > { %203 = vst [vmem:[%s150_s27 + $0x3c] sm:$0xf] %v202_v15 }
  0x20 PF: > { %p735_p6 = scmp.ge.s32.totalorder %s976_s16, 1  ;;  %p267_p7 = scmp.lt.s32.totalorder %s976_s16, 10 }
  0x22   : > { %p268_p8 = pnand %p735_p6, %p267_p7 }
  0x23   : > { %s274_s28 = sand.u32 (!%p268_p8), 1, %s960_s12   ;;  %s737_s29 = sshll.u32 (!%p268_p8), %s968_s14, 4 }
  0x24   : > { %271 = sbr.rel (%p268_p8) target bundleno = 272 (0x110), region = 69  ;;  %s736_s30 = sshll.u32 (!%p268_p8), %s274_s28, 6 }
  0x25   : > { %p304_p9 = scmp.lt.s32.totalorder (!%p268_p8), %s737_s29, 143  ;;  %s1069_s8 = scalar_lea.vmem (!%p268_p8), [#allocation3], %s736_s30 }
  0x26   : > { %p739_p10 = scmp.ne.s32.totalorder (!%p268_p8), %s968_s14, 0 }
  0x29   : > { %s1142_s29 = smov (!%p304_p9, %s737_s29), 143  ;;  %318 = sbr.rel (%p739_p10) target bundleno = 63 (0x3f), region = 77 }
  0x2a   : > { %s738_s4 = sshll.u32 %s1142_s29, 2 }
  0x2b   : > { %s1067_s7 = scalar_lea.vmem %s1132_s1, %s738_s4 }
  0x2e   : > { %v978_v16 = vmov 0.0  }
  0x2f   : > { %319 = vst [vmem:[#allocation2 + $0x30] sm:$0xff] %v978_v16 }
  0x30   : > { %320 = vst [vmem:[#allocation2] sm:$0xff] %v978_v16 }
  0x31   : > { %321 = vst [vmem:[#allocation2 + $0x58] sm:$0xff] %v978_v16 }
  0x32   : > { %322 = vst [vmem:[#allocation2 + $0x18] sm:$0xff] %v978_v16 }
  0x33   : > { %323 = vst [vmem:[#allocation2 + $0x50] sm:$0xff] %v978_v16 }
  0x34   : > { %324 = vst [vmem:[#allocation2 + $0x68] sm:$0xff] %v978_v16 }
  0x35   : > { %325 = vst [vmem:[#allocation2 + $0x8] sm:$0xff] %v978_v16 }
  0x36   : > { %326 = vst [vmem:[#allocation2 + $0x48] sm:$0xff] %v978_v16 }
  0x37   : > { %327 = vst [vmem:[#allocation2 + $0x40] sm:$0xff] %v978_v16 }
  0x38   : > { %328 = vst [vmem:[#allocation2 + $0x20] sm:$0xff] %v978_v16 }
  0x39   : > { %329 = vst [vmem:[#allocation2 + $0x10] sm:$0xff] %v978_v16 }
  0x3a   : > { %330 = vst [vmem:[#allocation2 + $0x38] sm:$0xff] %v978_v16 }
  0x3b   : > { %331 = vst [vmem:[#allocation2 + $0x60] sm:$0xff] %v978_v16 }
  0x3c   : > { %332 = vst [vmem:[#allocation2 + $0x70] sm:$0xff] %v978_v16 }
  0x3d   : > { %333 = vst [vmem:[#allocation2 + $0x78] sm:$0xff] %v978_v16 }
  0x3e   : > { %334 = vst [vmem:[#allocation2 + $0x28] sm:$0xff] %v978_v16 }
  0x3f PF: > { %v824_v17 = vld [vmem:[%s1067_s7 + $0x38] sm:$0xff]  ;;  %v823_v18 = vld [vmem:[%s1067_s7 + $0x30] sm:$0xff]  ;;  %v822_v19 = vld [vmem:[%s1067_s7 + $0x28] sm:$0xff]  ;;  %p804_p11 = scmp.ne.s32.totalorder %s968_s14, 8 }
  0x40   : > { %479 = vmatpush.bf16.msra.mxu0 %v824_v17  ;;  %872 = vmatpush.bf16.msra.mxu1 %v824_v17  ;;  %v821_v20 = vld [vmem:[%s1067_s7 + $0x20] sm:$0xff]  ;;  %v820_v21 = vld [vmem:[%s1067_s7 + $0x18] sm:$0xff]  ;;  %v819_v22 = vld [vmem:[%s1067_s7 + $0x10] sm:$0xff] }
  0x41   : > { %873 = vmatpush.bf16.msra.mxu2 %v824_v17  ;;  %874 = vmatpush.bf16.msra.mxu3 %v824_v17  ;;  %v818_v23 = vld [vmem:[%s1067_s7 + $0x8] sm:$0xff]  ;;  %v817_v24 = vld [vmem:[%s1067_s7] sm:$0xff]  ;;  %v811_v26 = vld [vmem:[%s1069_s8 + $0x10] sm:$0xff] }
  0x42   : > { %v809_v25 = vld [vmem:[%s1069_s8] sm:$0xff]  ;;  %v815_v28 = vld [vmem:[%s1069_s8 + $0x30] sm:$0xff]  ;;  %v810_v29 = vld [vmem:[%s1069_s8 + $0x8] sm:$0xff] }
  0x43   : > { %v813_v27 = vld [vmem:[%s1069_s8 + $0x20] sm:$0xff]  ;;  %v812_v30 = vld [vmem:[%s1069_s8 + $0x18] sm:$0xff]  ;;  %v814_v31 = vld [vmem:[%s1069_s8 + $0x28] sm:$0xff] }
  0x44   : > { %480 = vmatpush.bf16.msra.mxu0 %v823_v18  ;;  %875 = vmatpush.bf16.msra.mxu1 %v823_v18  ;;  %v816_v32 = vld [vmem:[%s1069_s8 + $0x38] sm:$0xff]  ;;  %v335_v33 = vld [vmem:[#allocation2 + $0x30] sm:$0xff]  ;;  %v343_v39 = vld [vmem:[#allocation2 + $0x40] sm:$0xff] }
  0x45   : > { %876 = vmatpush.bf16.msra.mxu2 %v823_v18  ;;  %877 = vmatpush.bf16.msra.mxu3 %v823_v18  ;;  %v339_v34 = vld [vmem:[#allocation2 + $0x50] sm:$0xff]  ;;  %v347_v40 = vld [vmem:[#allocation2 + $0x60] sm:$0xff]  ;;  %v340_v42 = vld [vmem:[#allocation2 + $0x68] sm:$0xff] }
  0x46   : > { %v336_v41 = vld [vmem:[#allocation2] sm:$0xff]  ;;  %v348_v52 = vld [vmem:[#allocation2 + $0x70] sm:$0xff]  ;;  %v337_v53 = vld [vmem:[#allocation2 + $0x58] sm:$0xff] }
  0x47   : > { %v344_v51 = vld [vmem:[#allocation2 + $0x20] sm:$0xff]  ;;  %v341_v54 = vld [vmem:[#allocation2 + $0x8] sm:$0xff]  ;;  %v345_v63 = vld [vmem:[#allocation2 + $0x10] sm:$0xff] }
  0x48   : > { %481 = vmatpush.bf16.msra.mxu0 %v822_v19  ;;  %878 = vmatpush.bf16.msra.mxu1 %v822_v19  ;;  %v349_v0 = vld [vmem:[#allocation2 + $0x78] sm:$0xff]  ;;  %v342_v2 = vld [vmem:[#allocation2 + $0x48] sm:$0xff] }
  0x49   : > { %879 = vmatpush.bf16.msra.mxu2 %v822_v19  ;;  %880 = vmatpush.bf16.msra.mxu3 %v822_v19  ;;  %v338_v1 = vld [vmem:[#allocation2 + $0x18] sm:$0xff]  ;;  %v350_v12 = vld [vmem:[#allocation2 + $0x28] sm:$0xff] }
  0x4a   : > { %v346_v11 = vld [vmem:[#allocation2 + $0x38] sm:$0xff] }
  0x4c   : > { %482 = vmatpush.bf16.msra.mxu0 %v821_v20  ;;  %881 = vmatpush.bf16.msra.mxu1 %v821_v20 }
  0x4d   : > { %882 = vmatpush.bf16.msra.mxu2 %v821_v20  ;;  %883 = vmatpush.bf16.msra.mxu3 %v821_v20 }
  0x50   : > { %483 = vmatpush.bf16.msra.mxu0 %v820_v21  ;;  %884 = vmatpush.bf16.msra.mxu1 %v820_v21 }
  0x51   : > { %885 = vmatpush.bf16.msra.mxu2 %v820_v21  ;;  %886 = vmatpush.bf16.msra.mxu3 %v820_v21 }
  0x54   : > { %484 = vmatpush.bf16.msra.mxu0 %v819_v22  ;;  %887 = vmatpush.bf16.msra.mxu1 %v819_v22 }
  0x55   : > { %888 = vmatpush.bf16.msra.mxu2 %v819_v22  ;;  %889 = vmatpush.bf16.msra.mxu3 %v819_v22 }
  0x58   : > { %485 = vmatpush.bf16.msra.mxu0 %v818_v23  ;;  %890 = vmatpush.bf16.msra.mxu1 %v818_v23 }
  0x59   : > { %891 = vmatpush.bf16.msra.mxu2 %v818_v23  ;;  %892 = vmatpush.bf16.msra.mxu3 %v818_v23 }
  0x5c   : > { %486 = vmatpush.bf16.msra.mxu0 %v817_v24  ;;  %893 = vmatpush.bf16.msra.mxu1 %v817_v24 }
  0x5d   : > { %894 = vmatpush.bf16.msra.mxu2 %v817_v24  ;;  %895 = vmatpush.bf16.msra.mxu3 %v817_v24 }
  0x5f   : > { %487 = vmatmul.bf16.vlgmr.msra.gmra.mxu0 %v809_v25  ;;  %497 = vmatmul.bf16.vlgmr.msra.gmra.mxu1 %v811_v26 }
  0x60   : > { %507 = vmatmul.bf16.vlgmr.msra.gmra.mxu2 %v813_v27  ;;  %517 = vmatmul.bf16.vlgmr.msra.gmra.mxu3 %v815_v28 }
  0x6f   : > { %492 = vmatmul.bf16.gmra.mxu0 %v810_v29  ;;  %502 = vmatmul.bf16.gmra.mxu1 %v812_v30 }
  0x70   : > { %512 = vmatmul.bf16.gmra.mxu2 %v814_v31  ;;  %522 = vmatmul.bf16.gmra.mxu3 %v816_v32 }
  0xdc   : > { %v488_v35 = vpop.f32.mrf.mxu0  ;;  %v498_v36 = vpop.f32.mrf.mxu1 }
  0xdd   : > { %v528_v37 = vadd.f32 %v488_v35, %v335_v33  ;;  %v532_v38 = vadd.f32 %v498_v36, %v339_v34 }
  0xdf   : > { %544 = vst [vmem:[#allocation2 + $0x30] sm:$0xff] %v528_v37 }
  0xe0   : > { %548 = vst [vmem:[#allocation2 + $0x50] sm:$0xff] %v532_v38 }
  0xe3   : > { %v508_v43 = vpop.f32.mrf.mxu2  ;;  %v518_v44 = vpop.f32.mrf.mxu3 }
  0xe4   : > { %v536_v45 = vadd.f32 %v508_v43, %v343_v39  ;;  %v540_v46 = vadd.f32 %v518_v44, %v347_v40  ;;  %v490_v47 = vpop.f32.mrf.mxu0  ;;  %v500_v48 = vpop.f32.mrf.mxu1 }
  0xe5   : > { %v529_v49 = vadd.f32 %v490_v47, %v336_v41  ;;  %v533_v50 = vadd.f32 %v500_v48, %v340_v42 }
  0xe6   : > { %552 = vst [vmem:[#allocation2 + $0x40] sm:$0xff] %v536_v45 }
  0xe7   : > { %556 = vst [vmem:[#allocation2 + $0x60] sm:$0xff] %v540_v46 }
  0xe8   : > { %545 = vst [vmem:[#allocation2] sm:$0xff] %v529_v49 }
  0xe9   : > { %549 = vst [vmem:[#allocation2 + $0x68] sm:$0xff] %v533_v50 }
  0xeb   : > { %v510_v55 = vpop.f32.mrf.mxu2  ;;  %v520_v56 = vpop.f32.mrf.mxu3 }
  0xec   : > { %v537_v57 = vadd.f32 %v510_v55, %v344_v51  ;;  %v541_v58 = vadd.f32 %v520_v56, %v348_v52  ;;  %v493_v59 = vpop.f32.mrf.mxu0  ;;  %v503_v60 = vpop.f32.mrf.mxu1 }
  0xed   : > { %v530_v61 = vadd.f32 %v493_v59, %v337_v53  ;;  %v534_v62 = vadd.f32 %v503_v60, %v341_v54 }
  0xee   : > { %553 = vst [vmem:[#allocation2 + $0x20] sm:$0xff] %v537_v57 }
  0xef   : > { %557 = vst [vmem:[#allocation2 + $0x70] sm:$0xff] %v541_v58 }
  0xf0   : > { %546 = vst [vmem:[#allocation2 + $0x58] sm:$0xff] %v530_v61 }
  0xf1   : > { %550 = vst [vmem:[#allocation2 + $0x8] sm:$0xff] %v534_v62 }
  0xf3   : > { %v513_v3 = vpop.f32.mrf.mxu2  ;;  %v523_v4 = vpop.f32.mrf.mxu3 }
  0xf4   : > { %v538_v5 = vadd.f32 %v513_v3, %v345_v63  ;;  %v542_v6 = vadd.f32 %v523_v4, %v349_v0  ;;  %v495_v7 = vpop.f32.mrf.mxu0  ;;  %v505_v8 = vpop.f32.mrf.mxu1 }
  0xf5   : > { %v531_v9 = vadd.f32 %v495_v7, %v338_v1  ;;  %v535_v10 = vadd.f32 %v505_v8, %v342_v2 }
  0xf6   : > { %554 = vst [vmem:[#allocation2 + $0x10] sm:$0xff] %v538_v5 }
  0xf7   : > { %558 = vst [vmem:[#allocation2 + $0x78] sm:$0xff] %v542_v6 }
  0xf8   : > { %547 = vst [vmem:[#allocation2 + $0x18] sm:$0xff] %v531_v9 }
  0xf9   : > { %551 = vst [vmem:[#allocation2 + $0x48] sm:$0xff] %v535_v10 }
  0xfb   : > { %v515_v13 = vpop.f32.mrf.mxu2  ;;  %v525_v14 = vpop.f32.mrf.mxu3  ;;  %563 = sbr.rel (%p804_p11) target bundleno = 272 (0x110), region = 81 }
  0xfc   : > { %v539_v15 = vadd.f32 %v515_v13, %v346_v11  ;;  %v543_v16 = vadd.f32 %v525_v14, %v350_v12 }
  0xfe   : > { %555 = vst [vmem:[#allocation2 + $0x38] sm:$0xff] %v539_v15 }
  0xff   : > { %559 = vst [vmem:[#allocation2 + $0x28] sm:$0xff] %v543_v16 }
 0x100   : > { %v564_v17 = vld [vmem:[#allocation2 + $0x30] sm:$0xff]  ;;  %v565_v18 = vld [vmem:[#allocation2] sm:$0xff]  ;;  %v566_v20 = vld [vmem:[#allocation2 + $0x58] sm:$0xff] }
 0x101   : > { %v937_v19 = vld [vmem:[%s1133_s2] ss:$0 sm:$0xff]  ;;  %v567_v21 = vld [vmem:[#allocation2 + $0x18] sm:$0xff]  ;;  %v568_v22 = vld [vmem:[#allocation2 + $0x50] sm:$0xff] }
 0x102   : > { %v569_v23 = vld [vmem:[#allocation2 + $0x68] sm:$0xff]  ;;  %v584_v25 = vadd.f32 %v937_v19, %v564_v17  ;;  %v585_v26 = vadd.f32 %v937_v19, %v565_v18  ;;  %v586_v27 = vadd.f32 %v937_v19, %v566_v20  ;;  %v587_v28 = vadd.f32 %v937_v19, %v567_v21  ;;  %v572_v34 = vld [vmem:[#allocation2 + $0x40] sm:$0xff]  ;;  %v574_v40 = vld [vmem:[#allocation2 + $0x10] sm:$0xff] }
 0x103   : > { %v570_v24 = vld [vmem:[#allocation2 + $0x8] sm:$0xff]  ;;  %v588_v30 = vadd.f32 %v937_v19, %v568_v22  ;;  %v589_v31 = vadd.f32 %v937_v19, %v569_v23  ;;  %v573_v35 = vld [vmem:[#allocation2 + $0x20] sm:$0xff]  ;;  %v577_v47 = vld [vmem:[#allocation2 + $0x70] sm:$0xff]  ;;  %v592_v50 = vadd.f32 %v937_v19, %v572_v34  ;;  %v594_v56 = vadd.f32 %v937_v19, %v574_v40 }
 0x104   : > { %v571_v29 = vld [vmem:[#allocation2 + $0x48] sm:$0xff]  ;;  %v590_v32 = vadd.f32 %v937_v19, %v570_v24  ;;  %v600_v36 = vmax.f32 %v584_v25, 0.0  ;;  %v601_v37 = vmax.f32 %v585_v26, 0.0  ;;  %v602_v38 = vmax.f32 %v586_v27, 0.0  ;;  %v576_v46 = vld [vmem:[#allocation2 + $0x60] sm:$0xff]  ;;  %v578_v52 = vld [vmem:[#allocation2 + $0x78] sm:$0xff] }
 0x105   : > { %v591_v33 = vadd.f32 %v937_v19, %v571_v29  ;;  %v603_v39 = vmax.f32 %v587_v28, 0.0  ;;  %v575_v41 = vld [vmem:[#allocation2 + $0x38] sm:$0xff]  ;;  %v604_v42 = vmax.f32 %v588_v30, 0.0  ;;  %v605_v43 = vmax.f32 %v589_v31, 0.0 }
 0x106   : > { %v606_v44 = vmax.f32 %v590_v32, 0.0  ;;  %v828_v48 = vpack.c.bf16 %v601_v37, %v600_v36  ;;  %v593_v51 = vadd.f32 %v937_v19, %v573_v35  ;;  %v579_v53 = vld [vmem:[#allocation2 + $0x28] sm:$0xff]  ;;  %v595_v57 = vadd.f32 %v937_v19, %v575_v41 }
 0x107   : > { %v607_v45 = vmax.f32 %v591_v33, 0.0  ;;  %v833_v49 = vpack.c.bf16 %v603_v39, %v602_v38  ;;  %v838_v54 = vpack.c.bf16 %v605_v43, %v604_v42  ;;  %v608_v58 = vmax.f32 %v592_v50, 0.0 }
 0x108   : > { %829 = vst [vmem:[%s1134_s3] sm:$0xff] %v828_v48   ;;  %v609_v59 = vmax.f32 %v593_v51, 0.0  ;;  %v596_v60 = vadd.f32 %v937_v19, %v576_v46  ;;  %v597_v61 = vadd.f32 %v937_v19, %v577_v47  ;;  %v610_v62 = vmax.f32 %v594_v56, 0.0 }
 0x109   : > { %v843_v55 = vpack.c.bf16 %v607_v45, %v606_v44  ;;  %865 = vst [vmem:[%s1134_s3 + $0x8] sm:$0xff] %v833_v49   ;;  %v611_v63 = vmax.f32 %v595_v57, 0.0  ;;  %v598_v0 = vadd.f32 %v937_v19, %v578_v52  ;;  %v599_v1 = vadd.f32 %v937_v19, %v579_v53 }
 0x10a   : > { %866 = vst [vmem:[%s1134_s3 + $0x10] sm:$0xff] %v838_v54   ;;  %v848_v2 = vpack.c.bf16 %v609_v59, %v608_v58  ;;  %v612_v3 = vmax.f32 %v596_v60, 0.0  ;;  %v613_v4 = vmax.f32 %v597_v61, 0.0 }
 0x10b   : > { %867 = vst [vmem:[%s1134_s3 + $0x18] sm:$0xff] %v843_v55   ;;  %v853_v5 = vpack.c.bf16 %v611_v63, %v610_v62  ;;  %v614_v6 = vmax.f32 %v598_v0, 0.0  ;;  %v615_v7 = vmax.f32 %v599_v1, 0.0 }
 0x10c   : > { %868 = vst [vmem:[%s1134_s3 + $0x20] sm:$0xff] %v848_v2   ;;  %v858_v8 = vpack.c.bf16 %v613_v4, %v612_v3 }
 0x10d   : > { %869 = vst [vmem:[%s1134_s3 + $0x28] sm:$0xff] %v853_v5   ;;  %v863_v9 = vpack.c.bf16 %v615_v7, %v614_v6 }
 0x10e   : > { %870 = vst [vmem:[%s1134_s3 + $0x30] sm:$0xff] %v858_v8  }
 0x10f   : > { %871 = vst [vmem:[%s1134_s3 + $0x38] sm:$0xff] %v863_v9  }
 0x110 PF: > { %s13_s16 = sadd.s32 1, %s976_s16   ;;  %s1135_s12 = smov %s964_s13 }
 0x111   : > { %p10_p12 = scmp.ge.s32.totalorder %s13_s16, 11   ;;  %s1136_s13 = smov %s1034_s20 }
 0x112   : > { %s1137_s14 = smov %s972_s15  ;;  %s1138_s15 = smov %s1140_s17 }
 0x113   :  { %12 = sbr.rel (!%p10_p12) target bundleno = 3 (0x3), region = 119 }

// kernel: forward.24
= control target key start
LH: loop header
LB: loop body
LE: loop exit
PB: predicated region body
PF: predicated region fallthrough
CT: control target
= control target key end

     0   :  { %s581_s1 = inlined_call_operand.vmem [shape: bf16[128,128], index: 1, kind: input, shape index: {}]   ;;  %s582_s2 = inlined_call_operand.vmem [shape: f32[1,128], index: 2, kind: input, shape index: {}]   ;;  %s583_s0 = inlined_call_operand.vmem [shape: bf16[128,128], index: 0, kind: input, shape index: {}]   ;;  %s584_s3 = inlined_call_operand.vmem [shape: bf16[128,128], index: 3, kind: output, shape index: {}]  }
   0x1   :  { %v413_v0 = vld [vmem:[%s581_s1 + $0x38] sm:$0xff]  ;;  %v412_v1 = vld [vmem:[%s581_s1 + $0x30] sm:$0xff]  ;;  %v411_v2 = vld [vmem:[%s581_s1 + $0x28] sm:$0xff] }
   0x2   :  { %178 = vmatpush.bf16.msra.mxu0 %v413_v0  ;;  %461 = vmatpush.bf16.msra.mxu1 %v413_v0  ;;  %v410_v3 = vld [vmem:[%s581_s1 + $0x20] sm:$0xff]  ;;  %v409_v4 = vld [vmem:[%s581_s1 + $0x18] sm:$0xff]  ;;  %v408_v5 = vld [vmem:[%s581_s1 + $0x10] sm:$0xff] }
   0x3   :  { %462 = vmatpush.bf16.msra.mxu2 %v413_v0  ;;  %463 = vmatpush.bf16.msra.mxu3 %v413_v0  ;;  %v407_v6 = vld [vmem:[%s581_s1 + $0x8] sm:$0xff]  ;;  %v406_v7 = vld [vmem:[%s581_s1] sm:$0xff]  ;;  %v400_v9 = vld [vmem:[%s583_s0 + $0x10] sm:$0xff] }
   0x4   :  { %v398_v8 = vld [vmem:[%s583_s0] sm:$0xff]  ;;  %v404_v11 = vld [vmem:[%s583_s0 + $0x30] sm:$0xff]  ;;  %v399_v12 = vld [vmem:[%s583_s0 + $0x8] sm:$0xff] }
   0x5   :  { %v402_v10 = vld [vmem:[%s583_s0 + $0x20] sm:$0xff]  ;;  %v401_v13 = vld [vmem:[%s583_s0 + $0x18] sm:$0xff]  ;;  %v403_v14 = vld [vmem:[%s583_s0 + $0x28] sm:$0xff] }
   0x6   :  { %179 = vmatpush.bf16.msra.mxu0 %v412_v1  ;;  %464 = vmatpush.bf16.msra.mxu1 %v412_v1  ;;  %v405_v15 = vld [vmem:[%s583_s0 + $0x38] sm:$0xff]  ;;  %v485_v18 = vld [vmem:[%s582_s2] ss:$0 sm:$0xff] }
   0x7   :  { %465 = vmatpush.bf16.msra.mxu2 %v412_v1  ;;  %466 = vmatpush.bf16.msra.mxu3 %v412_v1 }
   0xa   :  { %180 = vmatpush.bf16.msra.mxu0 %v411_v2  ;;  %467 = vmatpush.bf16.msra.mxu1 %v411_v2 }
   0xb   :  { %468 = vmatpush.bf16.msra.mxu2 %v411_v2  ;;  %469 = vmatpush.bf16.msra.mxu3 %v411_v2 }
   0xe   :  { %181 = vmatpush.bf16.msra.mxu0 %v410_v3  ;;  %470 = vmatpush.bf16.msra.mxu1 %v410_v3 }
   0xf   :  { %471 = vmatpush.bf16.msra.mxu2 %v410_v3  ;;  %472 = vmatpush.bf16.msra.mxu3 %v410_v3 }
  0x12   :  { %182 = vmatpush.bf16.msra.mxu0 %v409_v4  ;;  %473 = vmatpush.bf16.msra.mxu1 %v409_v4 }
  0x13   :  { %474 = vmatpush.bf16.msra.mxu2 %v409_v4  ;;  %475 = vmatpush.bf16.msra.mxu3 %v409_v4 }
  0x16   :  { %183 = vmatpush.bf16.msra.mxu0 %v408_v5  ;;  %476 = vmatpush.bf16.msra.mxu1 %v408_v5 }
  0x17   :  { %477 = vmatpush.bf16.msra.mxu2 %v408_v5  ;;  %478 = vmatpush.bf16.msra.mxu3 %v408_v5 }
  0x1a   :  { %184 = vmatpush.bf16.msra.mxu0 %v407_v6  ;;  %479 = vmatpush.bf16.msra.mxu1 %v407_v6 }
  0x1b   :  { %480 = vmatpush.bf16.msra.mxu2 %v407_v6  ;;  %481 = vmatpush.bf16.msra.mxu3 %v407_v6 }
  0x1e   :  { %185 = vmatpush.bf16.msra.mxu0 %v406_v7  ;;  %482 = vmatpush.bf16.msra.mxu1 %v406_v7 }
  0x1f   :  { %483 = vmatpush.bf16.msra.mxu2 %v406_v7  ;;  %484 = vmatpush.bf16.msra.mxu3 %v406_v7 }
  0x21   :  { %186 = vmatmul.bf16.vlgmr.msra.gmra.mxu0 %v398_v8  ;;  %196 = vmatmul.bf16.vlgmr.msra.gmra.mxu1 %v400_v9 }
  0x22   :  { %206 = vmatmul.bf16.vlgmr.msra.gmra.mxu2 %v402_v10  ;;  %216 = vmatmul.bf16.vlgmr.msra.gmra.mxu3 %v404_v11 }
  0x31   :  { %191 = vmatmul.bf16.gmra.mxu0 %v399_v12  ;;  %201 = vmatmul.bf16.gmra.mxu1 %v401_v13 }
  0x32   :  { %211 = vmatmul.bf16.gmra.mxu2 %v403_v14  ;;  %221 = vmatmul.bf16.gmra.mxu3 %v405_v15 }
  0x9e   :  { %v187_v16 = vpop.f32.mrf.mxu0  ;;  %v197_v17 = vpop.f32.mrf.mxu1 }
  0x9f   :  { %v282_v23 = vadd.f32 %v485_v18, %v187_v16  ;;  %v286_v24 = vadd.f32 %v485_v18, %v197_v17 }
  0xa5   :  { %v207_v19 = vpop.f32.mrf.mxu2  ;;  %v217_v20 = vpop.f32.mrf.mxu3 }
  0xa6   :  { %v189_v21 = vpop.f32.mrf.mxu0  ;;  %v199_v22 = vpop.f32.mrf.mxu1  ;;  %v290_v31 = vadd.f32 %v485_v18, %v207_v19  ;;  %v294_v32 = vadd.f32 %v485_v18, %v217_v20 }
  0xa7   :  { %v283_v25 = vadd.f32 %v485_v18, %v189_v21  ;;  %v287_v26 = vadd.f32 %v485_v18, %v199_v22 }
  0xa9   :  { %v417_v27 = vpack.c.bf16 %v283_v25, %v282_v23  ;;  %v427_v28 = vpack.c.bf16 %v287_v26, %v286_v24 }
  0xab   :  { %418 = vst [vmem:[%s584_s3] sm:$0xff] %v417_v27  }
  0xac   :  { %455 = vst [vmem:[%s584_s3 + $0x10] sm:$0xff] %v427_v28  }
  0xad   :  { %v209_v29 = vpop.f32.mrf.mxu2  ;;  %v219_v30 = vpop.f32.mrf.mxu3 }
  0xae   :  { %v291_v33 = vadd.f32 %v485_v18, %v209_v29  ;;  %v295_v34 = vadd.f32 %v485_v18, %v219_v30  ;;  %v192_v35 = vpop.f32.mrf.mxu0  ;;  %v202_v36 = vpop.f32.mrf.mxu1 }
  0xaf   :  { %v284_v43 = vadd.f32 %v485_v18, %v192_v35  ;;  %v288_v44 = vadd.f32 %v485_v18, %v202_v36 }
  0xb0   :  { %v437_v37 = vpack.c.bf16 %v291_v33, %v290_v31  ;;  %v447_v38 = vpack.c.bf16 %v295_v34, %v294_v32 }
  0xb2   :  { %457 = vst [vmem:[%s584_s3 + $0x20] sm:$0xff] %v437_v37  }
  0xb3   :  { %459 = vst [vmem:[%s584_s3 + $0x30] sm:$0xff] %v447_v38  }
  0xb5   :  { %v212_v39 = vpop.f32.mrf.mxu2  ;;  %v222_v40 = vpop.f32.mrf.mxu3 }
  0xb6   :  { %v194_v41 = vpop.f32.mrf.mxu0  ;;  %v204_v42 = vpop.f32.mrf.mxu1  ;;  %v292_v51 = vadd.f32 %v485_v18, %v212_v39  ;;  %v296_v52 = vadd.f32 %v485_v18, %v222_v40 }
  0xb7   :  { %v285_v45 = vadd.f32 %v485_v18, %v194_v41  ;;  %v289_v46 = vadd.f32 %v485_v18, %v204_v42 }
  0xb9   :  { %v422_v47 = vpack.c.bf16 %v285_v45, %v284_v43  ;;  %v432_v48 = vpack.c.bf16 %v289_v46, %v288_v44 }
  0xbb   :  { %454 = vst [vmem:[%s584_s3 + $0x8] sm:$0xff] %v422_v47  }
  0xbc   :  { %456 = vst [vmem:[%s584_s3 + $0x18] sm:$0xff] %v432_v48  }
  0xbd   :  { %v214_v49 = vpop.f32.mrf.mxu2  ;;  %v224_v50 = vpop.f32.mrf.mxu3 }
  0xbe   :  { %v293_v53 = vadd.f32 %v485_v18, %v214_v49  ;;  %v297_v54 = vadd.f32 %v485_v18, %v224_v50 }
  0xc0   :  { %v442_v55 = vpack.c.bf16 %v293_v53, %v292_v51  ;;  %v452_v56 = vpack.c.bf16 %v297_v54, %v296_v52 }
  0xc2   :  { %458 = vst [vmem:[%s584_s3 + $0x28] sm:$0xff] %v442_v55  }
  0xc3   :  { %460 = vst [vmem:[%s584_s3 + $0x38] sm:$0xff] %v452_v56  }

// kernel: forward.27
= control target key start
LH: loop header
LB: loop body
LE: loop exit
PB: predicated region body
PF: predicated region fallthrough
CT: control target
= control target key end

     0   :  { %s683_s12 = smov 0   ;;  %s685_s13 = smov 0   ;;  %s776_s0 = inlined_call_operand.vmem [shape: bf16[32,1152], index: 0, kind: input, shape index: {}]   ;;  %s777_s1 = inlined_call_operand.vmem [shape: bf16[1152,128], index: 1, kind: input, shape index: {}]   ;;  %s778_s2 = inlined_call_operand.vmem [shape: f32[1,128], index: 2, kind: input, shape index: {}]   ;;  %s779_s3 = inlined_call_operand.vmem [shape: bf16[32,128], index: 3, kind: output, shape index: {}]  }
   0x1   :  { %s687_s14 = smov 0   ;;  %s689_s15 = smov 0  }
   0x2   :  { %s691_s16 = smov 0  }
   0x3 LB: > { %s22_s17 = sadd.s32 1, %s656_s15  ;;  %p41_p1 = scmp.ne.s32.totalorder %s648_s13, %s644_s12  ;;  %s660_s16 = sphi %s691_s16, %s13_s16   ;;  %s656_s15 = sphi %s689_s15, %s783_s15   ;;  %s652_s14 = sphi %s687_s14, %s782_s14   ;;  %s648_s13 = sphi %s685_s13, %s781_s13   ;;  %s644_s12 = sphi %s683_s12, %s780_s12  }
   0x4   : > { %p23_p0 = scmp.ge.s32.totalorder %s22_s17, 9  ;;  %p42_p2 = scmp.eq.s32.totalorder %s660_s16, 0 }
   0x5   : > { %s34_s19 = sadd.s32 1, %s648_s13  ;;  %p498_p5 = scmp.ge.s32.totalorder %s660_s16, 9 }
   0x6   : > { %s785_s17 = smov (%p23_p0, %s22_s17), 0  ;;  %p43_p3 = por %p42_p2, %p41_p1 }
   0x7   : > { %s30_s18 = ssub.s32 %s656_s15, %s785_s17  ;;  %143 = sbr.rel (%p498_p5) target bundleno = 20 (0x14), region = 20 }
   0x8   : > { %p32_p4 = scmp.eq.s32.totalorder %s30_s18, 0 }
   0xa   : > { %s718_s20 = scalar_select %p32_p4, %s648_s13, %s34_s19  }
   0xc   : > { %146 = sbr.rel (!%p43_p3) target bundleno = 20 (0x14), region = 24  ;;  %s148_s21 = sand.u32 (%p43_p3), 1, %s648_s13  }
   0xd   : > { %s500_s22 = sshll.u32 (%p43_p3), %s656_s15, 2  ;;  %s499_s23 = sshll.u32 (%p43_p3), %s148_s21, 4 }
   0xe   : > { %s155_s26 = scalar_lea.vmem (%p43_p3), %s776_s0, %s500_s22  ;;  %s150_s27 = scalar_lea.vmem (%p43_p3), [#allocation3], %s499_s23 }
   0xf   : > { %v172_v0 = vld [vmem:[%s155_s26] sm:$0xf] (%p43_p3)  ;;  %v174_v1 = vld [vmem:[%s155_s26 + $0x24] sm:$0xf] (%p43_p3)  ;;  %v176_v2 = vld [vmem:[%s155_s26 + $0x48] sm:$0xf] (%p43_p3) }
  0x10   : > { %173 = vst [vmem:[%s150_s27] sm:$0xf] (%p43_p3), %v172_v0  ;;  %v178_v3 = vld [vmem:[%s155_s26 + $0x6c] sm:$0xf] (%p43_p3) }
  0x11   : > { %175 = vst [vmem:[%s150_s27 + $0x4] sm:$0xf] %v174_v1 }
  0x12   : > { %177 = vst [vmem:[%s150_s27 + $0x8] sm:$0xf] %v176_v2 }
  0x13   : > { %179 = vst [vmem:[%s150_s27 + $0xc] sm:$0xf] %v178_v3 }
  0x14 PF: > { %p501_p6 = scmp.ge.s32.totalorder %s660_s16, 1  ;;  %p219_p7 = scmp.lt.s32.totalorder %s660_s16, 10 }
  0x16   : > { %p220_p8 = pnand %p501_p6, %p219_p7 }
  0x17   : > { %s226_s28 = sand.u32 (!%p220_p8), 1, %s644_s12   ;;  %s503_s29 = sshll.u32 (!%p220_p8), %s652_s14, 4 }
  0x18   : > { %223 = sbr.rel (%p220_p8) target bundleno = 223 (0xdf), region = 69  ;;  %s730_s30 = sshll.u32 (!%p220_p8), %s226_s28, 4 }
  0x19   : > { %p256_p9 = scmp.lt.s32.totalorder (!%p220_p8), %s503_s29, 143  ;;  %s228_s8 = scalar_lea.vmem (!%p220_p8), [#allocation3], %s730_s30 }
  0x1a   : > { %p505_p10 = scmp.ne.s32.totalorder (!%p220_p8), %s652_s14, 0 }
  0x1d   : > { %s787_s29 = smov (!%p256_p9, %s503_s29), 143  ;;  %270 = sbr.rel (%p505_p10) target bundleno = 39 (0x27), region = 77 }
  0x1e   : > { %s504_s4 = sshll.u32 %s787_s29, 2 }
  0x1f   : > { %s735_s7 = scalar_lea.vmem %s777_s1, %s504_s4 }
  0x22   : > { %v662_v4 = vmov 0.0  }
  0x23   : > { %271 = vst [vmem:[#allocation2 + $0x10] sm:$0xff] %v662_v4 }
  0x24   : > { %272 = vst [vmem:[#allocation2] sm:$0xff] %v662_v4 }
  0x25   : > { %273 = vst [vmem:[#allocation2 + $0x18] sm:$0xff] %v662_v4 }
  0x26   : > { %274 = vst [vmem:[#allocation2 + $0x8] sm:$0xff] %v662_v4 }
  0x27 PF: > { %v560_v5 = vld [vmem:[%s735_s7 + $0x38] sm:$0xff]  ;;  %v559_v6 = vld [vmem:[%s735_s7 + $0x30] sm:$0xff]  ;;  %v558_v7 = vld [vmem:[%s735_s7 + $0x28] sm:$0xff]  ;;  %p546_p11 = scmp.ne.s32.totalorder %s652_s14, 8 }
  0x28   : > { %359 = vmatpush.bf16.msra.mxu0 %v560_v5  ;;  %572 = vmatpush.bf16.msra.mxu1 %v560_v5  ;;  %v557_v8 = vld [vmem:[%s735_s7 + $0x20] sm:$0xff]  ;;  %v556_v9 = vld [vmem:[%s735_s7 + $0x18] sm:$0xff]  ;;  %v555_v10 = vld [vmem:[%s735_s7 + $0x10] sm:$0xff] }
  0x29   : > { %v554_v11 = vld [vmem:[%s735_s7 + $0x8] sm:$0xff]  ;;  %v553_v12 = vld [vmem:[%s735_s7] sm:$0xff] }
  0x2a   : > { %v551_v13 = vld [vmem:[%s228_s8] sm:$0xff]  ;;  %v552_v14 = vld [vmem:[%s228_s8 + $0x8] sm:$0xff] }
  0x2b   : > { %v275_v15 = vld [vmem:[#allocation2 + $0x10] sm:$0xff]  ;;  %v276_v21 = vld [vmem:[#allocation2] sm:$0xff] }
  0x2c   : > { %360 = vmatpush.bf16.msra.mxu0 %v559_v6  ;;  %573 = vmatpush.bf16.msra.mxu1 %v559_v6  ;;  %v277_v16 = vld [vmem:[#allocation2 + $0x18] sm:$0xff] }
  0x2d   : > { %v278_v22 = vld [vmem:[#allocation2 + $0x8] sm:$0xff] }
  0x30   : > { %361 = vmatpush.bf16.msra.mxu0 %v558_v7  ;;  %574 = vmatpush.bf16.msra.mxu1 %v558_v7 }
  0x34   : > { %362 = vmatpush.bf16.msra.mxu0 %v557_v8  ;;  %575 = vmatpush.bf16.msra.mxu1 %v557_v8 }
  0x38   : > { %363 = vmatpush.bf16.msra.mxu0 %v556_v9  ;;  %576 = vmatpush.bf16.msra.mxu1 %v556_v9 }
  0x3c   : > { %364 = vmatpush.bf16.msra.mxu0 %v555_v10  ;;  %577 = vmatpush.bf16.msra.mxu1 %v555_v10 }
  0x40   : > { %365 = vmatpush.bf16.msra.mxu0 %v554_v11  ;;  %578 = vmatpush.bf16.msra.mxu1 %v554_v11 }
  0x44   : > { %366 = vmatpush.bf16.msra.mxu0 %v553_v12  ;;  %579 = vmatpush.bf16.msra.mxu1 %v553_v12 }
  0x47   : > { %367 = vmatmul.bf16.vlgmr.msra.gmra.mxu0 %v551_v13  ;;  %372 = vmatmul.bf16.vlgmr.msra.gmra.mxu1 %v552_v14 }
  0xc4   : > { %v368_v17 = vpop.f32.mrf.mxu0  ;;  %v373_v18 = vpop.f32.mrf.mxu1 }
  0xc5   : > { %v378_v19 = vadd.f32 %v368_v17, %v275_v15  ;;  %v380_v20 = vadd.f32 %v373_v18, %v277_v16 }
  0xc7   : > { %382 = vst [vmem:[#allocation2 + $0x10] sm:$0xff] %v378_v19 }
  0xc8   : > { %384 = vst [vmem:[#allocation2 + $0x18] sm:$0xff] %v380_v20 }
  0xcc   : > { %v370_v23 = vpop.f32.mrf.mxu0  ;;  %v375_v24 = vpop.f32.mrf.mxu1  ;;  %389 = sbr.rel (%p546_p11) target bundleno = 223 (0xdf), region = 81 }
  0xcd   : > { %v379_v25 = vadd.f32 %v370_v23, %v276_v21  ;;  %v381_v26 = vadd.f32 %v375_v24, %v278_v22 }
  0xcf   : > { %383 = vst [vmem:[#allocation2] sm:$0xff] %v379_v25 }
  0xd0   : > { %385 = vst [vmem:[#allocation2 + $0x8] sm:$0xff] %v381_v26 }
  0xd1   : > { %v390_v27 = vld [vmem:[#allocation2 + $0x10] sm:$0xff]  ;;  %v621_v29 = vld [vmem:[%s778_s2] ss:$0 sm:$0xff]  ;;  %v392_v30 = vld [vmem:[#allocation2 + $0x18] sm:$0xff] }
  0xd2   : > { %v398_v32 = vadd.f32 %v621_v29, %v390_v27  ;;  %v400_v34 = vadd.f32 %v621_v29, %v392_v30 }
  0xd4   : > { %v402_v36 = vmax.f32 %v398_v32, 0.0  ;;  %v404_v38 = vmax.f32 %v400_v34, 0.0 }
  0xd6   : > { %v391_v28 = vld [vmem:[#allocation2] sm:$0xff] }
  0xd7   : > { %v393_v31 = vld [vmem:[#allocation2 + $0x8] sm:$0xff]  ;;  %v399_v33 = vadd.f32 %v621_v29, %v391_v28 }
  0xd8   : > { %v401_v35 = vadd.f32 %v621_v29, %v393_v31 }
  0xd9   : > { %v403_v37 = vmax.f32 %v399_v33, 0.0 }
  0xda   : > { %v405_v39 = vmax.f32 %v401_v35, 0.0 }
  0xdb   : > { %v564_v40 = vpack.c.bf16 %v403_v37, %v402_v36 }
  0xdc   : > { %v569_v41 = vpack.c.bf16 %v405_v39, %v404_v38 }
  0xdd   : > { %565 = vst [vmem:[%s779_s3] sm:$0xff] %v564_v40  }
  0xde   : > { %571 = vst [vmem:[%s779_s3 + $0x8] sm:$0xff] %v569_v41  }
  0xdf PF: > { %s13_s16 = sadd.s32 1, %s660_s16   ;;  %s780_s12 = smov %s648_s13 }
  0xe0   : > { %p10_p12 = scmp.ge.s32.totalorder %s13_s16, 11   ;;  %s781_s13 = smov %s718_s20 }
  0xe1   : > { %s782_s14 = smov %s656_s15  ;;  %s783_s15 = smov %s785_s17 }
  0xe2   :  { %12 = sbr.rel (!%p10_p12) target bundleno = 3 (0x3), region = 119 }

// kernel: forward.28
= control target key start
LH: loop header
LB: loop body
LE: loop exit
PB: predicated region body
PF: predicated region fallthrough
CT: control target
= control target key end

     0   :  { %s289_s1 = inlined_call_operand.vmem [shape: bf16[128,128], index: 1, kind: input, shape index: {}]   ;;  %s290_s2 = inlined_call_operand.vmem [shape: f32[1,128], index: 2, kind: input, shape index: {}]   ;;  %s291_s0 = inlined_call_operand.vmem [shape: bf16[32,128], index: 0, kind: input, shape index: {}]   ;;  %s292_s3 = inlined_call_operand.vmem [shape: bf16[32,128], index: 3, kind: output, shape index: {}]  }
   0x1   :  { %v209_v0 = vld [vmem:[%s289_s1 + $0x38] sm:$0xff]  ;;  %v208_v1 = vld [vmem:[%s289_s1 + $0x30] sm:$0xff]  ;;  %v207_v2 = vld [vmem:[%s289_s1 + $0x28] sm:$0xff] }
   0x2   :  { %106 = vmatpush.bf16.msra.mxu0 %v209_v0  ;;  %221 = vmatpush.bf16.msra.mxu1 %v209_v0  ;;  %v206_v3 = vld [vmem:[%s289_s1 + $0x20] sm:$0xff]  ;;  %v205_v4 = vld [vmem:[%s289_s1 + $0x18] sm:$0xff]  ;;  %v204_v5 = vld [vmem:[%s289_s1 + $0x10] sm:$0xff] }
   0x3   :  { %v203_v6 = vld [vmem:[%s289_s1 + $0x8] sm:$0xff]  ;;  %v202_v7 = vld [vmem:[%s289_s1] sm:$0xff] }
   0x4   :  { %v200_v8 = vld [vmem:[%s291_s0] sm:$0xff]  ;;  %v201_v9 = vld [vmem:[%s291_s0 + $0x8] sm:$0xff] }
   0x5   :  { %v229_v12 = vld [vmem:[%s290_s2] ss:$0 sm:$0xff] }
   0x6   :  { %107 = vmatpush.bf16.msra.mxu0 %v208_v1  ;;  %222 = vmatpush.bf16.msra.mxu1 %v208_v1 }
   0xa   :  { %108 = vmatpush.bf16.msra.mxu0 %v207_v2  ;;  %223 = vmatpush.bf16.msra.mxu1 %v207_v2 }
   0xe   :  { %109 = vmatpush.bf16.msra.mxu0 %v206_v3  ;;  %224 = vmatpush.bf16.msra.mxu1 %v206_v3 }
  0x12   :  { %110 = vmatpush.bf16.msra.mxu0 %v205_v4  ;;  %225 = vmatpush.bf16.msra.mxu1 %v205_v4 }
  0x16   :  { %111 = vmatpush.bf16.msra.mxu0 %v204_v5  ;;  %226 = vmatpush.bf16.msra.mxu1 %v204_v5 }
  0x1a   :  { %112 = vmatpush.bf16.msra.mxu0 %v203_v6  ;;  %227 = vmatpush.bf16.msra.mxu1 %v203_v6 }
  0x1e   :  { %113 = vmatpush.bf16.msra.mxu0 %v202_v7  ;;  %228 = vmatpush.bf16.msra.mxu1 %v202_v7 }
  0x21   :  { %114 = vmatmul.bf16.vlgmr.msra.gmra.mxu0 %v200_v8  ;;  %119 = vmatmul.bf16.vlgmr.msra.gmra.mxu1 %v201_v9 }
  0x9e   :  { %v115_v10 = vpop.f32.mrf.mxu0  ;;  %v120_v11 = vpop.f32.mrf.mxu1 }
  0x9f   :  { %v144_v15 = vadd.f32 %v229_v12, %v115_v10  ;;  %v146_v16 = vadd.f32 %v229_v12, %v120_v11 }
  0xa6   :  { %v117_v13 = vpop.f32.mrf.mxu0  ;;  %v122_v14 = vpop.f32.mrf.mxu1 }
  0xa7   :  { %v145_v17 = vadd.f32 %v229_v12, %v117_v13  ;;  %v147_v18 = vadd.f32 %v229_v12, %v122_v14 }
  0xa9   :  { %v213_v19 = vpack.c.bf16 %v145_v17, %v144_v15  ;;  %v218_v20 = vpack.c.bf16 %v147_v18, %v146_v16 }
  0xab   :  { %214 = vst [vmem:[%s292_s3] sm:$0xff] %v213_v19  }
  0xac   :  { %220 = vst [vmem:[%s292_s3 + $0x8] sm:$0xff] %v218_v20  }

// kernel: forward.29
= control target key start
LH: loop header
LB: loop body
LE: loop exit
PB: predicated region body
PF: predicated region fallthrough
CT: control target
= control target key end

     0   :  { %s328_s1 = inlined_call_operand.vmem [shape: bf16[128,128], index: 1, kind: input, shape index: {}]   ;;  %s329_s2 = inlined_call_operand.vmem [shape: f32[1,128], index: 2, kind: input, shape index: {}]   ;;  %s330_s0 = inlined_call_operand.vmem [shape: bf16[32,128], index: 0, kind: input, shape index: {}]   ;;  %s331_s3 = inlined_call_operand.vmem [shape: bf16[32,128], index: 3, kind: input, shape index: {}]   ;;  %s332_s4 = inlined_call_operand.vmem [shape: bf16[32,128], index: 4, kind: output, shape index: {}]  }
   0x1   :  { %v228_v0 = vld [vmem:[%s328_s1 + $0x38] sm:$0xff]  ;;  %v227_v1 = vld [vmem:[%s328_s1 + $0x30] sm:$0xff]  ;;  %v226_v2 = vld [vmem:[%s328_s1 + $0x28] sm:$0xff] }
   0x2   :  { %109 = vmatpush.bf16.msra.mxu0 %v228_v0  ;;  %249 = vmatpush.bf16.msra.mxu1 %v228_v0  ;;  %v225_v3 = vld [vmem:[%s328_s1 + $0x20] sm:$0xff]  ;;  %v224_v4 = vld [vmem:[%s328_s1 + $0x18] sm:$0xff]  ;;  %v223_v5 = vld [vmem:[%s328_s1 + $0x10] sm:$0xff] }
   0x3   :  { %v222_v6 = vld [vmem:[%s328_s1 + $0x8] sm:$0xff]  ;;  %v221_v7 = vld [vmem:[%s328_s1] sm:$0xff] }
   0x4   :  { %v219_v8 = vld [vmem:[%s330_s0] sm:$0xff]  ;;  %v220_v9 = vld [vmem:[%s330_s0 + $0x8] sm:$0xff] }
   0x5   :  { %v257_v12 = vld [vmem:[%s329_s2] ss:$0 sm:$0xff]  ;;  %v247_v14 = vld [vmem:[%s331_s3 + $0x8] sm:$0xff]  }
   0x6   :  { %110 = vmatpush.bf16.msra.mxu0 %v227_v1  ;;  %250 = vmatpush.bf16.msra.mxu1 %v227_v1  ;;  %v230_v13 = vld [vmem:[%s331_s3] sm:$0xff]   ;;  %v235_v18 = vunpack.c.l.bf16 %v247_v14  ;;  %v236_v20 = vunpack.c.h.bf16 %v247_v14 }
   0x7   :  { %v231_v16 = vunpack.c.l.bf16 %v230_v13  ;;  %v232_v19 = vunpack.c.h.bf16 %v230_v13 }
   0xa   :  { %111 = vmatpush.bf16.msra.mxu0 %v226_v2  ;;  %251 = vmatpush.bf16.msra.mxu1 %v226_v2 }
   0xe   :  { %112 = vmatpush.bf16.msra.mxu0 %v225_v3  ;;  %252 = vmatpush.bf16.msra.mxu1 %v225_v3 }
  0x12   :  { %113 = vmatpush.bf16.msra.mxu0 %v224_v4  ;;  %253 = vmatpush.bf16.msra.mxu1 %v224_v4 }
  0x16   :  { %114 = vmatpush.bf16.msra.mxu0 %v223_v5  ;;  %254 = vmatpush.bf16.msra.mxu1 %v223_v5 }
  0x1a   :  { %115 = vmatpush.bf16.msra.mxu0 %v222_v6  ;;  %255 = vmatpush.bf16.msra.mxu1 %v222_v6 }
  0x1e   :  { %116 = vmatpush.bf16.msra.mxu0 %v221_v7  ;;  %256 = vmatpush.bf16.msra.mxu1 %v221_v7 }
  0x21   :  { %117 = vmatmul.bf16.vlgmr.msra.gmra.mxu0 %v219_v8  ;;  %122 = vmatmul.bf16.vlgmr.msra.gmra.mxu1 %v220_v9 }
  0x9e   :  { %v118_v10 = vpop.f32.mrf.mxu0  ;;  %v123_v11 = vpop.f32.mrf.mxu1 }
  0x9f   :  { %v147_v15 = vadd.f32 %v257_v12, %v118_v10  ;;  %v149_v17 = vadd.f32 %v257_v12, %v123_v11 }
  0xa1   :  { %v159_v23 = vadd.f32 %v231_v16, %v147_v15  ;;  %v161_v24 = vadd.f32 %v235_v18, %v149_v17 }
  0xa3   :  { %v163_v29 = vmax.f32 %v159_v23, 0.0  ;;  %v165_v30 = vmax.f32 %v161_v24, 0.0 }
  0xa6   :  { %v120_v21 = vpop.f32.mrf.mxu0  ;;  %v125_v22 = vpop.f32.mrf.mxu1 }
  0xa7   :  { %v148_v25 = vadd.f32 %v257_v12, %v120_v21  ;;  %v150_v26 = vadd.f32 %v257_v12, %v125_v22 }
  0xa9   :  { %v160_v27 = vadd.f32 %v232_v19, %v148_v25  ;;  %v162_v28 = vadd.f32 %v236_v20, %v150_v26 }
  0xab   :  { %v164_v31 = vmax.f32 %v160_v27, 0.0  ;;  %v166_v32 = vmax.f32 %v162_v28, 0.0 }
  0xad   :  { %v240_v33 = vpack.c.bf16 %v164_v31, %v163_v29  ;;  %v245_v34 = vpack.c.bf16 %v166_v32, %v165_v30 }
  0xaf   :  { %241 = vst [vmem:[%s332_s4] sm:$0xff] %v240_v33  }
  0xb0   :  { %248 = vst [vmem:[%s332_s4 + $0x8] sm:$0xff] %v245_v34  }

// kernel: closed_call.79
= control target key start
LH: loop header
LB: loop body
LE: loop exit
PB: predicated region body
PF: predicated region fallthrough
CT: control target
= control target key end

     0   :  { %s293_s1 = inlined_call_operand.vmem [shape: bf16[128,128], index: 1, kind: input, shape index: {}]   ;;  %s294_s2 = inlined_call_operand.vmem [shape: f32[1,128], index: 2, kind: input, shape index: {}]   ;;  %s295_s0 = inlined_call_operand.vmem [shape: bf16[32,128], index: 0, kind: input, shape index: {}]   ;;  %s296_s3 = inlined_call_operand.vmem [shape: bf16[32,128], index: 3, kind: output, shape index: {}]  }
   0x1   :  { %v213_v0 = vld [vmem:[%s293_s1 + $0x38] sm:$0xff]  ;;  %v212_v1 = vld [vmem:[%s293_s1 + $0x30] sm:$0xff]  ;;  %v211_v2 = vld [vmem:[%s293_s1 + $0x28] sm:$0xff] }
   0x2   :  { %106 = vmatpush.bf16.msra.mxu0 %v213_v0  ;;  %225 = vmatpush.bf16.msra.mxu1 %v213_v0  ;;  %v210_v3 = vld [vmem:[%s293_s1 + $0x20] sm:$0xff]  ;;  %v209_v4 = vld [vmem:[%s293_s1 + $0x18] sm:$0xff]  ;;  %v208_v5 = vld [vmem:[%s293_s1 + $0x10] sm:$0xff] }
   0x3   :  { %v207_v6 = vld [vmem:[%s293_s1 + $0x8] sm:$0xff]  ;;  %v206_v7 = vld [vmem:[%s293_s1] sm:$0xff] }
   0x4   :  { %v204_v8 = vld [vmem:[%s295_s0] sm:$0xff]  ;;  %v205_v9 = vld [vmem:[%s295_s0 + $0x8] sm:$0xff] }
   0x5   :  { %v233_v12 = vld [vmem:[%s294_s2] ss:$0 sm:$0xff] }
   0x6   :  { %107 = vmatpush.bf16.msra.mxu0 %v212_v1  ;;  %226 = vmatpush.bf16.msra.mxu1 %v212_v1 }
   0xa   :  { %108 = vmatpush.bf16.msra.mxu0 %v211_v2  ;;  %227 = vmatpush.bf16.msra.mxu1 %v211_v2 }
   0xe   :  { %109 = vmatpush.bf16.msra.mxu0 %v210_v3  ;;  %228 = vmatpush.bf16.msra.mxu1 %v210_v3 }
  0x12   :  { %110 = vmatpush.bf16.msra.mxu0 %v209_v4  ;;  %229 = vmatpush.bf16.msra.mxu1 %v209_v4 }
  0x16   :  { %111 = vmatpush.bf16.msra.mxu0 %v208_v5  ;;  %230 = vmatpush.bf16.msra.mxu1 %v208_v5 }
  0x1a   :  { %112 = vmatpush.bf16.msra.mxu0 %v207_v6  ;;  %231 = vmatpush.bf16.msra.mxu1 %v207_v6 }
  0x1e   :  { %113 = vmatpush.bf16.msra.mxu0 %v206_v7  ;;  %232 = vmatpush.bf16.msra.mxu1 %v206_v7 }
  0x21   :  { %114 = vmatmul.bf16.vlgmr.msra.gmra.mxu0 %v204_v8  ;;  %119 = vmatmul.bf16.vlgmr.msra.gmra.mxu1 %v205_v9 }
  0x9e   :  { %v115_v10 = vpop.f32.mrf.mxu0  ;;  %v120_v11 = vpop.f32.mrf.mxu1 }
  0x9f   :  { %v144_v13 = vadd.f32 %v233_v12, %v115_v10  ;;  %v146_v14 = vadd.f32 %v233_v12, %v120_v11 }
  0xa1   :  { %v148_v19 = vmax.f32 %v144_v13, 0.0  ;;  %v150_v20 = vmax.f32 %v146_v14, 0.0 }
  0xa6   :  { %v117_v15 = vpop.f32.mrf.mxu0  ;;  %v122_v16 = vpop.f32.mrf.mxu1 }
  0xa7   :  { %v145_v17 = vadd.f32 %v233_v12, %v117_v15  ;;  %v147_v18 = vadd.f32 %v233_v12, %v122_v16 }
  0xa9   :  { %v149_v21 = vmax.f32 %v145_v17, 0.0  ;;  %v151_v22 = vmax.f32 %v147_v18, 0.0 }
  0xab   :  { %v217_v23 = vpack.c.bf16 %v149_v21, %v148_v19  ;;  %v222_v24 = vpack.c.bf16 %v151_v22, %v150_v20 }
  0xad   :  { %218 = vst [vmem:[%s296_s3] sm:$0xff] %v217_v23  }
  0xae   :  { %224 = vst [vmem:[%s296_s3 + $0x8] sm:$0xff] %v222_v24  }

// kernel: forward.32
= control target key start
LH: loop header
LB: loop body
LE: loop exit
PB: predicated region body
PF: predicated region fallthrough
CT: control target
= control target key end

     0   :  { %s209_s1 = inlined_call_operand.vmem [shape: bf16[128,128], index: 1, kind: input, shape index: {}]   ;;  %s210_s2 = inlined_call_operand.vmem [shape: f32[1,128], index: 2, kind: input, shape index: {}]   ;;  %s211_s0 = inlined_call_operand.vmem [shape: bf16[8,128], index: 0, kind: input, shape index: {}]   ;;  %s212_s3 = inlined_call_operand.vmem [shape: bf16[8,128], index: 3, kind: output, shape index: {}]  }
   0x1   :  { %v154_v0 = vld [vmem:[%s209_s1 + $0x38] sm:$0xff]  ;;  %v153_v1 = vld [vmem:[%s209_s1 + $0x30] sm:$0xff]  ;;  %v152_v2 = vld [vmem:[%s209_s1 + $0x28] sm:$0xff] }
   0x2   :  { %85 = vmatpush.bf16.msra.mxu0 %v154_v0  ;;  %v151_v3 = vld [vmem:[%s209_s1 + $0x20] sm:$0xff]  ;;  %v150_v4 = vld [vmem:[%s209_s1 + $0x18] sm:$0xff]  ;;  %v149_v5 = vld [vmem:[%s209_s1 + $0x10] sm:$0xff] }
   0x3   :  { %v148_v6 = vld [vmem:[%s209_s1 + $0x8] sm:$0xff]  ;;  %v147_v7 = vld [vmem:[%s209_s1] sm:$0xff] }
   0x4   :  { %v20_v8 = vld [vmem:[%s211_s0] sm:$0xf] }
   0x5   :  { %v155_v9 = vld [vmem:[%s210_s2] ss:$0 sm:$0xff] }
   0x6   :  { %86 = vmatpush.bf16.msra.mxu0 %v153_v1 }
   0xa   :  { %87 = vmatpush.bf16.msra.mxu0 %v152_v2 }
   0xe   :  { %88 = vmatpush.bf16.msra.mxu0 %v151_v3 }
  0x12   :  { %89 = vmatpush.bf16.msra.mxu0 %v150_v4 }
  0x16   :  { %90 = vmatpush.bf16.msra.mxu0 %v149_v5 }
  0x1a   :  { %91 = vmatpush.bf16.msra.mxu0 %v148_v6 }
  0x1e   :  { %92 = vmatpush.bf16.msra.mxu0 %v147_v7 }
  0x21   :  { %93 = vmatmul.bf16.vlgmr.msra.gmra.mxu0 %v20_v8 }
  0x9e   :  { %v94_v10 = vpop.f32.mrf.mxu0 }
  0x9f   :  { %v108_v11 = vadd.f32 %v155_v9, %v94_v10 }
  0xa1   :  { %v109_v12 = vpack.c.bf16 %v108_v11, %v108_v11 }
  0xa3   :  { %110 = vst [vmem:[%s212_s3] sm:$0xf] %v109_v12 }
  0xa6   :  { %v96_v13 = vpop.f32.mrf.mxu0 }

// kernel: forward.31
= control target key start
LH: loop header
LB: loop body
LE: loop exit
PB: predicated region body
PF: predicated region fallthrough
CT: control target
= control target key end

     0   :  { %s513_s12 = smov 0   ;;  %s515_s13 = smov 0   ;;  %s559_s0 = inlined_call_operand.vmem [shape: bf16[8,1152], index: 0, kind: input, shape index: {}]   ;;  %s560_s1 = inlined_call_operand.vmem [shape: bf16[1152,128], index: 1, kind: input, shape index: {}]   ;;  %s561_s2 = inlined_call_operand.vmem [shape: f32[1,128], index: 2, kind: input, shape index: {}]   ;;  %s562_s3 = inlined_call_operand.vmem [shape: bf16[8,128], index: 3, kind: output, shape index: {}]  }
   0x1   :  { %s517_s14 = smov 0  }
   0x2 LB: > { %s22_s15 = sadd.s32 1, %s486_s13  ;;  %p393_p0 = scmp.ge.s32.totalorder %s490_s14, 1  ;;  %s490_s14 = sphi %s517_s14, %s13_s14   ;;  %s486_s13 = sphi %s515_s13, %s564_s13   ;;  %s482_s12 = sphi %s513_s12, %s563_s12  }
   0x3   : > { %p23_p1 = scmp.ge.s32.totalorder %s22_s15, 9  ;;  %p165_p2 = scmp.lt.s32.totalorder %s490_s14, 10 }
   0x5   : > { %s566_s15 = smov (%p23_p1, %s22_s15), 0  ;;  %p166_p3 = pnand %p393_p0, %p165_p2 }
   0x6   : > { %p198_p4 = scmp.lt.s32.totalorder (!%p166_p3), %s482_s12, 8  ;;  %s395_s16 = sshll.u32 (!%p166_p3), %s482_s12, 4 }
   0x7   : > { %169 = sbr.rel (%p166_p3) target bundleno = 195 (0xc3), region = 32  ;;  %p205_p5 = scmp.lt.s32.totalorder (!%p166_p3), %s395_s16, 143 }
   0x8   : > { %p397_p6 = scmp.ne.s32.totalorder (!%p166_p3), %s482_s12, 0 }
   0xc   : > { %s199_s17 = scalar_select %p198_p4, %s482_s12, 8 }
   0xd   : > { %s568_s16 = smov (!%p205_p5, %s395_s16), 143  ;;  %217 = sbr.rel (%p397_p6) target bundleno = 20 (0x14), region = 36 }
   0xe   : > { %s394_s18 = sshll.u32 %s199_s17, 2  ;;  %s396_s22 = sshll.u32 %s568_s16, 2 }
   0xf   : > { %s203_s21 = scalar_lea.vmem %s559_s0, %s394_s18  ;;  %s208_s25 = scalar_lea.vmem %s560_s1, %s396_s22 }
  0x12   : > { %v492_v0 = vmov 0.0  }
  0x13   : > { %218 = vst [vmem:[#allocation2] sm:$0xff] %v492_v0 }
  0x14 PF: > { %v441_v1 = vld [vmem:[%s208_s25 + $0x38] sm:$0xff]  ;;  %v440_v2 = vld [vmem:[%s208_s25 + $0x30] sm:$0xff]  ;;  %v439_v3 = vld [vmem:[%s208_s25 + $0x28] sm:$0xff]  ;;  %p430_p7 = scmp.ne.s32.totalorder %s482_s12, 8 }
  0x15   : > { %285 = vmatpush.bf16.msra.mxu0 %v441_v1  ;;  %v438_v4 = vld [vmem:[%s208_s25 + $0x20] sm:$0xff]  ;;  %v437_v5 = vld [vmem:[%s208_s25 + $0x18] sm:$0xff]  ;;  %v436_v6 = vld [vmem:[%s208_s25 + $0x10] sm:$0xff] }
  0x16   : > { %v435_v7 = vld [vmem:[%s208_s25 + $0x8] sm:$0xff]  ;;  %v434_v8 = vld [vmem:[%s208_s25] sm:$0xff] }
  0x17   : > { %v220_v9 = vld [vmem:[%s203_s21] sm:$0xf] }
  0x19   : > { %286 = vmatpush.bf16.msra.mxu0 %v440_v2 }
  0x1a   : > { %v219_v10 = vld [vmem:[#allocation2] sm:$0xff] }
  0x1d   : > { %287 = vmatpush.bf16.msra.mxu0 %v439_v3 }
  0x21   : > { %288 = vmatpush.bf16.msra.mxu0 %v438_v4 }
  0x25   : > { %289 = vmatpush.bf16.msra.mxu0 %v437_v5 }
  0x29   : > { %290 = vmatpush.bf16.msra.mxu0 %v436_v6 }
  0x2d   : > { %291 = vmatpush.bf16.msra.mxu0 %v435_v7 }
  0x31   : > { %292 = vmatpush.bf16.msra.mxu0 %v434_v8 }
  0x34   : > { %293 = vmatmul.bf16.vlgmr.msra.gmra.mxu0 %v220_v9 }
  0xb1   : > { %v294_v11 = vpop.f32.mrf.mxu0 }
  0xb2   : > { %v298_v12 = vadd.f32 %v294_v11, %v219_v10 }
  0xb4   : > { %299 = vst [vmem:[#allocation2] sm:$0xff] %v298_v12 }
  0xb5   : > { %303 = sbr.rel (%p430_p7) target bundleno = 195 (0xc3), region = 40 }
  0xb9   : > { %v296_v13 = vpop.f32.mrf.mxu0 }
  0xba   : > { %v467_v15 = vld [vmem:[%s561_s2] ss:$0 sm:$0xff] }
  0xbb   : > { %v304_v14 = vld [vmem:[#allocation2] sm:$0xff] }
  0xbc   : > { %v309_v16 = vadd.f32 %v467_v15, %v304_v14 }
  0xbe   : > { %v310_v17 = vmax.f32 %v309_v16, 0.0 }
  0xc0   : > { %v311_v18 = vpack.c.bf16 %v310_v17, %v310_v17 }
  0xc2   : > { %312 = vst [vmem:[%s562_s3] sm:$0xf] %v311_v18 }
  0xc3 PF: > { %s13_s14 = sadd.s32 1, %s490_s14   ;;  %s563_s12 = smov %s486_s13 }
  0xc4   : > { %p10_p8 = scmp.ge.s32.totalorder %s13_s14, 11   ;;  %s564_s13 = smov %s566_s15 }
  0xc6   :  { %12 = sbr.rel (!%p10_p8) target bundleno = 2 (0x2), region = 73 }

// kernel: forward.33
= control target key start
LH: loop header
LB: loop body
LE: loop exit
PB: predicated region body
PF: predicated region fallthrough
CT: control target
= control target key end

     0   :  { %s224_s1 = inlined_call_operand.vmem [shape: bf16[128,128], index: 1, kind: input, shape index: {}]   ;;  %s225_s2 = inlined_call_operand.vmem [shape: f32[1,128], index: 2, kind: input, shape index: {}]   ;;  %s226_s0 = inlined_call_operand.vmem [shape: bf16[8,128], index: 0, kind: input, shape index: {}]   ;;  %s227_s3 = inlined_call_operand.vmem [shape: bf16[8,128], index: 3, kind: input, shape index: {}]   ;;  %s228_s4 = inlined_call_operand.vmem [shape: bf16[8,128], index: 4, kind: output, shape index: {}]  }
   0x1   :  { %v161_v0 = vld [vmem:[%s224_s1 + $0x38] sm:$0xff]  ;;  %v160_v1 = vld [vmem:[%s224_s1 + $0x30] sm:$0xff]  ;;  %v159_v2 = vld [vmem:[%s224_s1 + $0x28] sm:$0xff] }
   0x2   :  { %88 = vmatpush.bf16.msra.mxu0 %v161_v0  ;;  %v158_v3 = vld [vmem:[%s224_s1 + $0x20] sm:$0xff]  ;;  %v157_v4 = vld [vmem:[%s224_s1 + $0x18] sm:$0xff]  ;;  %v156_v5 = vld [vmem:[%s224_s1 + $0x10] sm:$0xff] }
   0x3   :  { %v155_v6 = vld [vmem:[%s224_s1 + $0x8] sm:$0xff]  ;;  %v154_v7 = vld [vmem:[%s224_s1] sm:$0xff] }
   0x4   :  { %v23_v8 = vld [vmem:[%s226_s0] sm:$0xf] }
   0x5   :  { %v112_v9 = vld [vmem:[%s227_s3] sm:$0xf] }
   0x6   :  { %89 = vmatpush.bf16.msra.mxu0 %v160_v1  ;;  %v162_v10 = vld [vmem:[%s225_s2] ss:$0 sm:$0xff]  ;;  %v113_v11 = vunpack.c.l.bf16 %v112_v9 }
   0xa   :  { %90 = vmatpush.bf16.msra.mxu0 %v159_v2 }
   0xe   :  { %91 = vmatpush.bf16.msra.mxu0 %v158_v3 }
  0x12   :  { %92 = vmatpush.bf16.msra.mxu0 %v157_v4 }
  0x16   :  { %93 = vmatpush.bf16.msra.mxu0 %v156_v5 }
  0x1a   :  { %94 = vmatpush.bf16.msra.mxu0 %v155_v6 }
  0x1e   :  { %95 = vmatpush.bf16.msra.mxu0 %v154_v7 }
  0x21   :  { %96 = vmatmul.bf16.vlgmr.msra.gmra.mxu0 %v23_v8 }
  0x9e   :  { %v97_v12 = vpop.f32.mrf.mxu0 }
  0x9f   :  { %v111_v13 = vadd.f32 %v162_v10, %v97_v12 }
  0xa1   :  { %v114_v14 = vadd.f32 %v113_v11, %v111_v13 }
  0xa3   :  { %v115_v15 = vmax.f32 %v114_v14, 0.0 }
  0xa5   :  { %v116_v16 = vpack.c.bf16 %v115_v15, %v115_v15 }
  0xa6   :  { %v99_v17 = vpop.f32.mrf.mxu0 }
  0xa7   :  { %117 = vst [vmem:[%s228_s4] sm:$0xf] %v116_v16 }

// kernel: closed_call.82
= control target key start
LH: loop header
LB: loop body
LE: loop exit
PB: predicated region body
PF: predicated region fallthrough
CT: control target
= control target key end

     0   :  { %s210_s1 = inlined_call_operand.vmem [shape: bf16[128,128], index: 1, kind: input, shape index: {}]   ;;  %s211_s2 = inlined_call_operand.vmem [shape: f32[1,128], index: 2, kind: input, shape index: {}]   ;;  %s212_s0 = inlined_call_operand.vmem [shape: bf16[8,128], index: 0, kind: input, shape index: {}]   ;;  %s213_s3 = inlined_call_operand.vmem [shape: bf16[8,128], index: 3, kind: output, shape index: {}]  }
   0x1   :  { %v155_v0 = vld [vmem:[%s210_s1 + $0x38] sm:$0xff]  ;;  %v154_v1 = vld [vmem:[%s210_s1 + $0x30] sm:$0xff]  ;;  %v153_v2 = vld [vmem:[%s210_s1 + $0x28] sm:$0xff] }
   0x2   :  { %85 = vmatpush.bf16.msra.mxu0 %v155_v0  ;;  %v152_v3 = vld [vmem:[%s210_s1 + $0x20] sm:$0xff]  ;;  %v151_v4 = vld [vmem:[%s210_s1 + $0x18] sm:$0xff]  ;;  %v150_v5 = vld [vmem:[%s210_s1 + $0x10] sm:$0xff] }
   0x3   :  { %v149_v6 = vld [vmem:[%s210_s1 + $0x8] sm:$0xff]  ;;  %v148_v7 = vld [vmem:[%s210_s1] sm:$0xff] }
   0x4   :  { %v20_v8 = vld [vmem:[%s212_s0] sm:$0xf] }
   0x5   :  { %v156_v9 = vld [vmem:[%s211_s2] ss:$0 sm:$0xff] }
   0x6   :  { %86 = vmatpush.bf16.msra.mxu0 %v154_v1 }
   0xa   :  { %87 = vmatpush.bf16.msra.mxu0 %v153_v2 }
   0xe   :  { %88 = vmatpush.bf16.msra.mxu0 %v152_v3 }
  0x12   :  { %89 = vmatpush.bf16.msra.mxu0 %v151_v4 }
  0x16   :  { %90 = vmatpush.bf16.msra.mxu0 %v150_v5 }
  0x1a   :  { %91 = vmatpush.bf16.msra.mxu0 %v149_v6 }
  0x1e   :  { %92 = vmatpush.bf16.msra.mxu0 %v148_v7 }
  0x21   :  { %93 = vmatmul.bf16.vlgmr.msra.gmra.mxu0 %v20_v8 }
  0x9e   :  { %v94_v10 = vpop.f32.mrf.mxu0 }
  0x9f   :  { %v108_v11 = vadd.f32 %v156_v9, %v94_v10 }
  0xa1   :  { %v109_v12 = vmax.f32 %v108_v11, 0.0 }
  0xa3   :  { %v110_v13 = vpack.c.bf16 %v109_v12, %v109_v12 }
  0xa5   :  { %111 = vst [vmem:[%s213_s3] sm:$0xf] %v110_v13 }
  0xa6   :  { %v96_v14 = vpop.f32.mrf.mxu0 }

// kernel: forward.36
= control target key start
LH: loop header
LB: loop body
LE: loop exit
PB: predicated region body
PF: predicated region fallthrough
CT: control target
= control target key end

     0   :  { %s373_s1 = inlined_call_operand.vmem [shape: bf16[128,256], index: 1, kind: input, shape index: {}]   ;;  %s374_s0 = inlined_call_operand.vmem [shape: bf16[8,128], index: 0, kind: input, shape index: {}]   ;;  %s375_s2 = inlined_call_operand.vmem [shape: f32[1,256], index: 2, kind: input, shape index: {}]   ;;  %s376_s3 = inlined_call_operand.vmem [shape: bf16[8,256], index: 3, kind: output, shape index: {}]  }
   0x1   :  { %v226_v0 = vld [vmem:[%s373_s1 + $0x70] sm:$0xf]  ;;  %v247_v1 = vld [vmem:[%s373_s1 + $0x74] sm:$0xf0]  ;;  %v246_v2 = vld [vmem:[%s373_s1 + $0x74] sm:$0xf] }
   0x2   :  { %v227_v3 = vor.u32 %v247_v1, %v226_v0  ;;  %v228_v4 = vld [vmem:[%s373_s1 + $0x78] sm:$0xf0]  ;;  %v218_v5 = vld [vmem:[%s373_s1 + $0x60] sm:$0xf]  ;;  %v245_v6 = vld [vmem:[%s373_s1 + $0x64] sm:$0xf0] }
   0x3   :  { %v231_v7 = vor.u32 %v246_v2, %v228_v4  ;;  %v244_v8 = vld [vmem:[%s373_s1 + $0x64] sm:$0xf]  ;;  %v220_v9 = vld [vmem:[%s373_s1 + $0x68] sm:$0xf0]  ;;  %v219_v10 = vor.u32 %v245_v6, %v218_v5  ;;  %v210_v12 = vld [vmem:[%s373_s1 + $0x50] sm:$0xf] }
   0x4   :  { %119 = vmatpush.bf16.msra.mxu0 %v227_v3  ;;  %v223_v11 = vor.u32 %v244_v8, %v220_v9  ;;  %v243_v13 = vld [vmem:[%s373_s1 + $0x54] sm:$0xf0]  ;;  %v242_v14 = vld [vmem:[%s373_s1 + $0x54] sm:$0xf]  ;;  %v212_v15 = vld [vmem:[%s373_s1 + $0x58] sm:$0xf0] }
   0x5   :  { %132 = vmatpush.bf16.msra.mxu1 %v231_v7  ;;  %v211_v16 = vor.u32 %v243_v13, %v210_v12  ;;  %v215_v17 = vor.u32 %v242_v14, %v212_v15  ;;  %v202_v18 = vld [vmem:[%s373_s1 + $0x40] sm:$0xf]  ;;  %v241_v19 = vld [vmem:[%s373_s1 + $0x44] sm:$0xf0]  ;;  %v240_v20 = vld [vmem:[%s373_s1 + $0x44] sm:$0xf] }
   0x6   :  { %v204_v21 = vld [vmem:[%s373_s1 + $0x48] sm:$0xf0]  ;;  %v203_v22 = vor.u32 %v241_v19, %v202_v18  ;;  %v194_v24 = vld [vmem:[%s373_s1 + $0x30] sm:$0xf]  ;;  %v239_v25 = vld [vmem:[%s373_s1 + $0x34] sm:$0xf0] }
   0x7   :  { %v207_v23 = vor.u32 %v240_v20, %v204_v21  ;;  %v238_v26 = vld [vmem:[%s373_s1 + $0x34] sm:$0xf]  ;;  %v196_v27 = vld [vmem:[%s373_s1 + $0x38] sm:$0xf0]  ;;  %v195_v28 = vor.u32 %v239_v25, %v194_v24  ;;  %v186_v30 = vld [vmem:[%s373_s1 + $0x20] sm:$0xf] }
   0x8   :  { %120 = vmatpush.bf16.msra.mxu0 %v219_v10  ;;  %v199_v29 = vor.u32 %v238_v26, %v196_v27  ;;  %v237_v31 = vld [vmem:[%s373_s1 + $0x24] sm:$0xf0]  ;;  %v236_v32 = vld [vmem:[%s373_s1 + $0x24] sm:$0xf]  ;;  %v188_v33 = vld [vmem:[%s373_s1 + $0x28] sm:$0xf0] }
   0x9   :  { %133 = vmatpush.bf16.msra.mxu1 %v223_v11  ;;  %v187_v34 = vor.u32 %v237_v31, %v186_v30  ;;  %v191_v35 = vor.u32 %v236_v32, %v188_v33  ;;  %v178_v36 = vld [vmem:[%s373_s1 + $0x10] sm:$0xf]  ;;  %v235_v37 = vld [vmem:[%s373_s1 + $0x14] sm:$0xf0]  ;;  %v234_v38 = vld [vmem:[%s373_s1 + $0x14] sm:$0xf] }
   0xa   :  { %v180_v39 = vld [vmem:[%s373_s1 + $0x18] sm:$0xf0]  ;;  %v179_v40 = vor.u32 %v235_v37, %v178_v36  ;;  %v170_v42 = vld [vmem:[%s373_s1] sm:$0xf]  ;;  %v233_v43 = vld [vmem:[%s373_s1 + $0x4] sm:$0xf0] }
   0xb   :  { %v183_v41 = vor.u32 %v234_v38, %v180_v39  ;;  %v232_v44 = vld [vmem:[%s373_s1 + $0x4] sm:$0xf]  ;;  %v172_v45 = vld [vmem:[%s373_s1 + $0x8] sm:$0xf0]  ;;  %v171_v46 = vor.u32 %v233_v43, %v170_v42  ;;  %v22_v48 = vld [vmem:[%s374_s0] sm:$0xf] }
   0xc   :  { %121 = vmatpush.bf16.msra.mxu0 %v211_v16  ;;  %v175_v47 = vor.u32 %v232_v44, %v172_v45  ;;  %v154_v49 = vld [vmem:[%s375_s2] sm:$0x3] }
   0xd   :  { %134 = vmatpush.bf16.msra.mxu1 %v215_v17  ;;  %v156_v50 = vperm.slane %v154_v49, 0  ;;  %v157_v51 = vperm.slane %v154_v49, 1 }
  0x10   :  { %122 = vmatpush.bf16.msra.mxu0 %v203_v22 }
  0x11   :  { %135 = vmatpush.bf16.msra.mxu1 %v207_v23 }
  0x14   :  { %123 = vmatpush.bf16.msra.mxu0 %v195_v28 }
  0x15   :  { %136 = vmatpush.bf16.msra.mxu1 %v199_v29 }
  0x18   :  { %124 = vmatpush.bf16.msra.mxu0 %v187_v34 }
  0x19   :  { %137 = vmatpush.bf16.msra.mxu1 %v191_v35 }
  0x1c   :  { %125 = vmatpush.bf16.msra.mxu0 %v179_v40 }
  0x1d   :  { %138 = vmatpush.bf16.msra.mxu1 %v183_v41 }
  0x20   :  { %126 = vmatpush.bf16.msra.mxu0 %v171_v46 }
  0x21   :  { %139 = vmatpush.bf16.msra.mxu1 %v175_v47 }
  0x23   :  { %127 = vmatmul.bf16.vlgmr.msra.gmra.mxu0 %v22_v48 }
  0x24   :  { %140 = vmatmul.bf16.vlgmr.msra.gmra.mxu1 %v22_v48 }
  0xa0   :  { %v128_v52 = vpop.f32.mrf.mxu0 }
  0xa1   :  { %v160_v53 = vadd.f32 %v156_v50, %v128_v52  ;;  %v141_v54 = vpop.f32.mrf.mxu1 }
  0xa2   :  { %v161_v55 = vadd.f32 %v157_v51, %v141_v54 }
  0xa4   :  { %v162_v56 = vpack.c.bf16 %v161_v55, %v160_v53 }
  0xa6   :  { %163 = vst [vmem:[%s376_s3] sm:$0xff] %v162_v56 }
  0xa8   :  { %v130_v57 = vpop.f32.mrf.mxu0 }
  0xa9   :  { %v143_v58 = vpop.f32.mrf.mxu1 }

// kernel: forward.37
= control target key start
LH: loop header
LB: loop body
LE: loop exit
PB: predicated region body
PF: predicated region fallthrough
CT: control target
= control target key end

     0   :  { %s391_s1 = inlined_call_operand.vmem [shape: bf16[128,256], index: 1, kind: input, shape index: {}]   ;;  %s392_s0 = inlined_call_operand.vmem [shape: bf16[8,128], index: 0, kind: input, shape index: {}]   ;;  %s393_s2 = inlined_call_operand.vmem [shape: f32[1,256], index: 2, kind: input, shape index: {}]   ;;  %s394_s3 = inlined_call_operand.vmem [shape: bf16[8,256], index: 3, kind: input, shape index: {}]   ;;  %s395_s4 = inlined_call_operand.vmem [shape: bf16[8,256], index: 4, kind: output, shape index: {}]  }
   0x1   :  { %v236_v0 = vld [vmem:[%s391_s1 + $0x70] sm:$0xf]  ;;  %v257_v1 = vld [vmem:[%s391_s1 + $0x74] sm:$0xf0]  ;;  %v256_v2 = vld [vmem:[%s391_s1 + $0x74] sm:$0xf] }
   0x2   :  { %v237_v3 = vor.u32 %v257_v1, %v236_v0  ;;  %v238_v4 = vld [vmem:[%s391_s1 + $0x78] sm:$0xf0]  ;;  %v228_v5 = vld [vmem:[%s391_s1 + $0x60] sm:$0xf]  ;;  %v255_v6 = vld [vmem:[%s391_s1 + $0x64] sm:$0xf0] }
   0x3   :  { %v241_v7 = vor.u32 %v256_v2, %v238_v4  ;;  %v254_v8 = vld [vmem:[%s391_s1 + $0x64] sm:$0xf]  ;;  %v230_v9 = vld [vmem:[%s391_s1 + $0x68] sm:$0xf0]  ;;  %v229_v10 = vor.u32 %v255_v6, %v228_v5  ;;  %v220_v12 = vld [vmem:[%s391_s1 + $0x50] sm:$0xf] }
   0x4   :  { %122 = vmatpush.bf16.msra.mxu0 %v237_v3  ;;  %v233_v11 = vor.u32 %v254_v8, %v230_v9  ;;  %v253_v13 = vld [vmem:[%s391_s1 + $0x54] sm:$0xf0]  ;;  %v252_v14 = vld [vmem:[%s391_s1 + $0x54] sm:$0xf]  ;;  %v222_v15 = vld [vmem:[%s391_s1 + $0x58] sm:$0xf0] }
   0x5   :  { %135 = vmatpush.bf16.msra.mxu1 %v241_v7  ;;  %v221_v16 = vor.u32 %v253_v13, %v220_v12  ;;  %v225_v17 = vor.u32 %v252_v14, %v222_v15  ;;  %v212_v18 = vld [vmem:[%s391_s1 + $0x40] sm:$0xf]  ;;  %v251_v19 = vld [vmem:[%s391_s1 + $0x44] sm:$0xf0]  ;;  %v250_v20 = vld [vmem:[%s391_s1 + $0x44] sm:$0xf] }
   0x6   :  { %v214_v21 = vld [vmem:[%s391_s1 + $0x48] sm:$0xf0]  ;;  %v213_v22 = vor.u32 %v251_v19, %v212_v18  ;;  %v204_v24 = vld [vmem:[%s391_s1 + $0x30] sm:$0xf]  ;;  %v249_v25 = vld [vmem:[%s391_s1 + $0x34] sm:$0xf0] }
   0x7   :  { %v217_v23 = vor.u32 %v250_v20, %v214_v21  ;;  %v248_v26 = vld [vmem:[%s391_s1 + $0x34] sm:$0xf]  ;;  %v206_v27 = vld [vmem:[%s391_s1 + $0x38] sm:$0xf0]  ;;  %v205_v28 = vor.u32 %v249_v25, %v204_v24  ;;  %v196_v30 = vld [vmem:[%s391_s1 + $0x20] sm:$0xf] }
   0x8   :  { %123 = vmatpush.bf16.msra.mxu0 %v229_v10  ;;  %v209_v29 = vor.u32 %v248_v26, %v206_v27  ;;  %v247_v31 = vld [vmem:[%s391_s1 + $0x24] sm:$0xf0]  ;;  %v246_v32 = vld [vmem:[%s391_s1 + $0x24] sm:$0xf]  ;;  %v198_v33 = vld [vmem:[%s391_s1 + $0x28] sm:$0xf0] }
   0x9   :  { %136 = vmatpush.bf16.msra.mxu1 %v233_v11  ;;  %v197_v34 = vor.u32 %v247_v31, %v196_v30  ;;  %v201_v35 = vor.u32 %v246_v32, %v198_v33  ;;  %v188_v36 = vld [vmem:[%s391_s1 + $0x10] sm:$0xf]  ;;  %v245_v37 = vld [vmem:[%s391_s1 + $0x14] sm:$0xf0]  ;;  %v244_v38 = vld [vmem:[%s391_s1 + $0x14] sm:$0xf] }
   0xa   :  { %v190_v39 = vld [vmem:[%s391_s1 + $0x18] sm:$0xf0]  ;;  %v189_v40 = vor.u32 %v245_v37, %v188_v36  ;;  %v180_v42 = vld [vmem:[%s391_s1] sm:$0xf]  ;;  %v243_v43 = vld [vmem:[%s391_s1 + $0x4] sm:$0xf0] }
   0xb   :  { %v193_v41 = vor.u32 %v244_v38, %v190_v39  ;;  %v242_v44 = vld [vmem:[%s391_s1 + $0x4] sm:$0xf]  ;;  %v182_v45 = vld [vmem:[%s391_s1 + $0x8] sm:$0xf0]  ;;  %v181_v46 = vor.u32 %v243_v43, %v180_v42  ;;  %v25_v48 = vld [vmem:[%s392_s0] sm:$0xf] }
   0xc   :  { %124 = vmatpush.bf16.msra.mxu0 %v221_v16  ;;  %v185_v47 = vor.u32 %v242_v44, %v182_v45  ;;  %v157_v49 = vld [vmem:[%s393_s2] sm:$0x3] }
   0xd   :  { %137 = vmatpush.bf16.msra.mxu1 %v225_v17  ;;  %v165_v50 = vld [vmem:[%s394_s3] sm:$0xff]  ;;  %v159_v51 = vperm.slane %v157_v49, 0  ;;  %v160_v52 = vperm.slane %v157_v49, 1 }
   0xe   :  { %v166_v53 = vunpack.c.l.bf16 %v165_v50  ;;  %v167_v55 = vunpack.c.h.bf16 %v165_v50 }
  0x10   :  { %125 = vmatpush.bf16.msra.mxu0 %v213_v22 }
  0x11   :  { %138 = vmatpush.bf16.msra.mxu1 %v217_v23 }
  0x14   :  { %126 = vmatpush.bf16.msra.mxu0 %v205_v28 }
  0x15   :  { %139 = vmatpush.bf16.msra.mxu1 %v209_v29 }
  0x18   :  { %127 = vmatpush.bf16.msra.mxu0 %v197_v34 }
  0x19   :  { %140 = vmatpush.bf16.msra.mxu1 %v201_v35 }
  0x1c   :  { %128 = vmatpush.bf16.msra.mxu0 %v189_v40 }
  0x1d   :  { %141 = vmatpush.bf16.msra.mxu1 %v193_v41 }
  0x20   :  { %129 = vmatpush.bf16.msra.mxu0 %v181_v46 }
  0x21   :  { %142 = vmatpush.bf16.msra.mxu1 %v185_v47 }
  0x23   :  { %130 = vmatmul.bf16.vlgmr.msra.gmra.mxu0 %v25_v48 }
  0x24   :  { %143 = vmatmul.bf16.vlgmr.msra.gmra.mxu1 %v25_v48 }
  0xa0   :  { %v131_v54 = vpop.f32.mrf.mxu0 }
  0xa1   :  { %v163_v56 = vadd.f32 %v159_v51, %v131_v54  ;;  %v144_v57 = vpop.f32.mrf.mxu1 }
  0xa2   :  { %v164_v58 = vadd.f32 %v160_v52, %v144_v57 }
  0xa3   :  { %v168_v59 = vadd.f32 %v166_v53, %v163_v56 }
  0xa4   :  { %v169_v60 = vadd.f32 %v167_v55, %v164_v58 }
  0xa5   :  { %v170_v61 = vmax.f32 %v168_v59, 0.0 }
  0xa6   :  { %v171_v62 = vmax.f32 %v169_v60, 0.0 }
  0xa8   :  { %v172_v63 = vpack.c.bf16 %v171_v62, %v170_v61  ;;  %v133_v0 = vpop.f32.mrf.mxu0 }
  0xa9   :  { %v146_v1 = vpop.f32.mrf.mxu1 }
  0xaa   :  { %173 = vst [vmem:[%s395_s4] sm:$0xff] %v172_v63 }

// kernel: closed_call.85
= control target key start
LH: loop header
LB: loop body
LE: loop exit
PB: predicated region body
PF: predicated region fallthrough
CT: control target
= control target key end

     0   :  { %s358_s1 = inlined_call_operand.vmem [shape: bf16[256,128], index: 1, kind: input, shape index: {}]   ;;  %s359_s0 = inlined_call_operand.vmem [shape: bf16[8,256], index: 0, kind: input, shape index: {}]   ;;  %s360_s2 = inlined_call_operand.vmem [shape: f32[1,128], index: 2, kind: input, shape index: {}]   ;;  %s361_s3 = inlined_call_operand.vmem [shape: bf16[8,128], index: 3, kind: output, shape index: {}]  }
   0x1   :  { %v271_v0 = vld [vmem:[%s358_s1 + $0x38] sm:$0xff]  ;;  %v270_v2 = vld [vmem:[%s358_s1 + $0x30] sm:$0xff]  ;;  %v269_v4 = vld [vmem:[%s358_s1 + $0x28] sm:$0xff] }
   0x2   :  { %v279_v1 = vld [vmem:[%s358_s1 + $0x78] sm:$0xff]  ;;  %156 = vmatpush.bf16.msra.mxu0 %v271_v0  ;;  %v278_v3 = vld [vmem:[%s358_s1 + $0x70] sm:$0xff]  ;;  %v277_v5 = vld [vmem:[%s358_s1 + $0x68] sm:$0xff] }
   0x3   :  { %169 = vmatpush.bf16.msra.mxu1 %v279_v1  ;;  %v268_v6 = vld [vmem:[%s358_s1 + $0x20] sm:$0xff]  ;;  %v267_v8 = vld [vmem:[%s358_s1 + $0x18] sm:$0xff]  ;;  %v266_v10 = vld [vmem:[%s358_s1 + $0x10] sm:$0xff] }
   0x4   :  { %v276_v7 = vld [vmem:[%s358_s1 + $0x60] sm:$0xff]  ;;  %v275_v9 = vld [vmem:[%s358_s1 + $0x58] sm:$0xff]  ;;  %v274_v11 = vld [vmem:[%s358_s1 + $0x50] sm:$0xff] }
   0x5   :  { %v265_v12 = vld [vmem:[%s358_s1 + $0x8] sm:$0xff]  ;;  %v20_v14 = vld [vmem:[%s359_s0] sm:$0xff] }
   0x6   :  { %157 = vmatpush.bf16.msra.mxu0 %v270_v2  ;;  %v273_v13 = vld [vmem:[%s358_s1 + $0x48] sm:$0xff]  ;;  %v54_v15 = vunpack.c.l.b16 %v20_v14  ;;  %v55_v16 = vunpack.c.h.b16 %v20_v14  ;;  %v264_v17 = vld [vmem:[%s358_s1] sm:$0xff] }
   0x7   :  { %170 = vmatpush.bf16.msra.mxu1 %v278_v3  ;;  %v272_v18 = vld [vmem:[%s358_s1 + $0x40] sm:$0xff] }
   0x8   :  { %v56_v19 = vpack.c.b16 %v54_v15, %v54_v15  ;;  %v57_v20 = vpack.c.b16 %v55_v16, %v55_v16  ;;  %v280_v21 = vld [vmem:[%s360_s2] ss:$0 sm:$0xff] }
   0xa   :  { %158 = vmatpush.bf16.msra.mxu0 %v269_v4 }
   0xb   :  { %171 = vmatpush.bf16.msra.mxu1 %v277_v5 }
   0xe   :  { %159 = vmatpush.bf16.msra.mxu0 %v268_v6 }
   0xf   :  { %172 = vmatpush.bf16.msra.mxu1 %v276_v7 }
  0x12   :  { %160 = vmatpush.bf16.msra.mxu0 %v267_v8 }
  0x13   :  { %173 = vmatpush.bf16.msra.mxu1 %v275_v9 }
  0x16   :  { %161 = vmatpush.bf16.msra.mxu0 %v266_v10 }
  0x17   :  { %174 = vmatpush.bf16.msra.mxu1 %v274_v11 }
  0x1a   :  { %162 = vmatpush.bf16.msra.mxu0 %v265_v12 }
  0x1b   :  { %175 = vmatpush.bf16.msra.mxu1 %v273_v13 }
  0x1e   :  { %163 = vmatpush.bf16.msra.mxu0 %v264_v17 }
  0x1f   :  { %176 = vmatpush.bf16.msra.mxu1 %v272_v18 }
  0x21   :  { %164 = vmatmul.bf16.vlgmr.msra.gmra.mxu0 %v56_v19 }
  0x22   :  { %177 = vmatmul.bf16.vlgmr.msra.gmra.mxu1 %v57_v20 }
  0x9e   :  { %v165_v22 = vpop.f32.mrf.mxu0 }
  0x9f   :  { %v178_v23 = vpop.f32.mrf.mxu1 }
  0xa0   :  { %v179_v24 = vadd.f32 %v178_v23, %v165_v22 }
  0xa2   :  { %v192_v25 = vadd.f32 %v280_v21, %v179_v24 }
  0xa4   :  { %v193_v26 = vmax.f32 %v192_v25, 0.0 }
  0xa6   :  { %v194_v27 = vpack.c.bf16 %v193_v26, %v193_v26  ;;  %v167_v28 = vpop.f32.mrf.mxu0 }
  0xa7   :  { %v180_v29 = vpop.f32.mrf.mxu1 }
  0xa8   :  { %195 = vst [vmem:[%s361_s3] sm:$0xf] %v194_v27 }

// kernel: forward.38
= control target key start
LH: loop header
LB: loop body
LE: loop exit
PB: predicated region body
PF: predicated region fallthrough
CT: control target
= control target key end

     0   :  { %vm21_vm0 = vcmask 1041409   ;;  %vm23_vm1 = vcmask 1043459   ;;  %vm25_vm2 = vcmask 1045509   ;;  %vm27_vm3 = vcmask 1047559   ;;  %s54_s0 = inlined_call_operand.vmem [shape: bf16[2,1,256], index: 0, kind: input, shape index: {}]   ;;  %s55_s1 = inlined_call_operand.vmem [shape: f32[2,256], index: 1, kind: output, shape index: {}]  }
   0x1   :  { %v8_v0 = vld [vmem:[%s54_s0] sm:$0x3]  ;;  %v9_v1 = vld [vmem:[%s54_s0 + $0x2] sm:$0x3] }
   0x2   :  { %v10_v2 = vunpack.c.l.bf16 %v8_v0  ;;  %v11_v3 = vunpack.c.l.bf16 %v9_v1 }
   0x4   :  { %v20_v4 = vrot.slane %v11_v3, 7 }
   0x6   :  { %v22_v5 = vsel %vm21_vm0, %v20_v4, %v10_v2 }
   0x7   :  { %v24_v6 = vsel %vm23_vm1, %v20_v4, %v22_v5 }
   0x8   :  { %v26_v7 = vsel %vm25_vm2, %v20_v4, %v24_v6 }
   0x9   :  { %v28_v8 = vsel %vm27_vm3, %v20_v4, %v26_v7 }
   0xa   :  { %30 = vst [vmem:[%s55_s1] sm:$0xf] %v28_v8 }

// kernel: forward.39
= control target key start
LH: loop header
LB: loop body
LE: loop exit
PB: predicated region body
PF: predicated region fallthrough
CT: control target
= control target key end

     0   :  { %s286_s0 = inlined_call_operand.vmem [shape: f32[2,256], index: 0, kind: input, shape index: {}]   ;;  %s287_s1 = inlined_call_operand.vmem [shape: f32[256,128], index: 1, kind: input, shape index: {}]   ;;  %s288_s2 = inlined_call_operand.vmem [shape: f32[1,128], index: 2, kind: input, shape index: {}]   ;;  %s289_s3 = inlined_call_operand.hbm [shape: f32[2,128], index: 3, kind: output, shape index: {}]  }
   0x1   :  { %v31_v0 = vld [vmem:[%s287_s1 + $0x78] sm:$0xff]  ;;  %v30_v1 = vld [vmem:[%s287_s1 + $0x70] sm:$0xff]  ;;  %v29_v4 = vld [vmem:[%s287_s1 + $0x68] sm:$0xff] }
   0x2   :  { %v47_v2 = vld [vmem:[%s287_s1 + $0xf8] sm:$0xff]  ;;  %58 = vmatpush.msra.mxu0 %v31_v0  ;;  %v46_v3 = vld [vmem:[%s287_s1 + $0xf0] sm:$0xff]  ;;  %v45_v5 = vld [vmem:[%s287_s1 + $0xe8] sm:$0xff] }
   0x3   :  { %78 = vmatpush.msra.mxu1 %v47_v2  ;;  %v28_v6 = vld [vmem:[%s287_s1 + $0x60] sm:$0xff]  ;;  %v27_v8 = vld [vmem:[%s287_s1 + $0x58] sm:$0xff]  ;;  %v26_v10 = vld [vmem:[%s287_s1 + $0x50] sm:$0xff] }
   0x4   :  { %59 = vmatpush.msra.mxu0 %v30_v1  ;;  %v44_v7 = vld [vmem:[%s287_s1 + $0xe0] sm:$0xff]  ;;  %v43_v9 = vld [vmem:[%s287_s1 + $0xd8] sm:$0xff]  ;;  %v42_v11 = vld [vmem:[%s287_s1 + $0xd0] sm:$0xff] }
   0x5   :  { %79 = vmatpush.msra.mxu1 %v46_v3  ;;  %v25_v12 = vld [vmem:[%s287_s1 + $0x48] sm:$0xff]  ;;  %v15_v14 = vld [vmem:[%s286_s0] sm:$0xf] }
   0x6   :  { %60 = vmatpush.msra.mxu0 %v29_v4  ;;  %v41_v13 = vld [vmem:[%s287_s1 + $0xc8] sm:$0xff]  ;;  %53 = vst [vmem:[#allocation1] ss:$4 sm:$0xff] %v15_v14  ;;  %v24_v15 = vld [vmem:[%s287_s1 + $0x40] sm:$0xff] }
   0x7   :  { %80 = vmatpush.msra.mxu1 %v45_v5  ;;  %v40_v16 = vld [vmem:[%s287_s1 + $0xc0] sm:$0xff] }
   0x8   :  { %61 = vmatpush.msra.mxu0 %v28_v6 }
   0x9   :  { %81 = vmatpush.msra.mxu1 %v44_v7 }
   0xa   :  { %62 = vmatpush.msra.mxu0 %v27_v8 }
   0xb   :  { %82 = vmatpush.msra.mxu1 %v43_v9 }
   0xc   :  { %63 = vmatpush.msra.mxu0 %v26_v10 }
   0xd   :  { %83 = vmatpush.msra.mxu1 %v42_v11 }
   0xe   :  { %8 = vsyncpa [#allocation3], 0  ;;  %64 = vmatpush.msra.mxu0 %v25_v12  ;;  %v23_v17 = vld [vmem:[%s287_s1 + $0x38] sm:$0xff]  ;;  %v22_v19 = vld [vmem:[%s287_s1 + $0x30] sm:$0xff]  ;;  %vm98_vm0 = vcmask 1041408   ;;  %s119_s26 = sshll.u32 %s289_s3, 4  ;;  %s120_s26 = int_to_ptr.hbm [resolvable:$true] %s119_s26 }
   0xf   :  { %84 = vmatpush.msra.mxu1 %v41_v13  ;;  %v39_v18 = vld [vmem:[%s287_s1 + $0xb8] sm:$0xff]  ;;  %v38_v20 = vld [vmem:[%s287_s1 + $0xb0] sm:$0xff]  ;;  %v21_v21 = vld [vmem:[%s287_s1 + $0x28] sm:$0xff] }
  0x10   :  { %65 = vmatpush.msra.mxu0 %v24_v15  ;;  %v37_v22 = vld [vmem:[%s287_s1 + $0xa8] sm:$0xff]  ;;  %v20_v23 = vld [vmem:[%s287_s1 + $0x20] sm:$0xff]  ;;  %v19_v25 = vld [vmem:[%s287_s1 + $0x18] sm:$0xff] }
  0x11   :  { %85 = vmatpush.msra.mxu1 %v40_v16  ;;  %v36_v24 = vld [vmem:[%s287_s1 + $0xa0] sm:$0xff]  ;;  %v35_v26 = vld [vmem:[%s287_s1 + $0x98] sm:$0xff]  ;;  %v18_v27 = vld [vmem:[%s287_s1 + $0x10] sm:$0xff] }
  0x12   :  { %66 = vmatpush.msra.mxu0 %v23_v17  ;;  %v34_v28 = vld [vmem:[%s287_s1 + $0x90] sm:$0xff]  ;;  %v17_v29 = vld [vmem:[%s287_s1 + $0x8] sm:$0xff]  ;;  %v16_v31 = vld [vmem:[%s287_s1] sm:$0xff] }
  0x13   :  { %86 = vmatpush.msra.mxu1 %v39_v18  ;;  %v33_v30 = vld [vmem:[%s287_s1 + $0x88] sm:$0xff]  ;;  %v32_v32 = vld [vmem:[%s287_s1 + $0x80] sm:$0xff]  ;;  %s160_s1 = smov [#allocation2]  }
  0x14   :  { %67 = vmatpush.msra.mxu0 %v22_v19  ;;  %v54_v33 = vld.sshfl [vmem:[#allocation1] sm:$0xff pattern:$0x73625140]  ;;  %v55_v34 = vld.sshfl [vmem:[#allocation1 + $0x8] sm:$0xff pattern:$0x73625140] }
  0x15   :  { %87 = vmatpush.msra.mxu1 %v38_v20  ;;  %v129_v35 = vld [vmem:[%s288_s2] ss:$0 sm:$0xff]  ;;  %s117_s24 = sshll.u32 %s160_s1, 4  ;;  %s118_s24 = int_to_ptr.vmem [resolvable:$true] %s117_s24 }
  0x16   :  { %68 = vmatpush.msra.mxu0 %v21_v21 }
  0x17   :  { %88 = vmatpush.msra.mxu1 %v37_v22 }
  0x18   :  { %69 = vmatpush.msra.mxu0 %v20_v23 }
  0x19   :  { %89 = vmatpush.msra.mxu1 %v36_v24 }
  0x1a   :  { %70 = vmatpush.msra.mxu0 %v19_v25 }
  0x1b   :  { %90 = vmatpush.msra.mxu1 %v35_v26 }
  0x1c   :  { %71 = vmatpush.msra.mxu0 %v18_v27 }
  0x1d   :  { %91 = vmatpush.msra.mxu1 %v34_v28 }
  0x1e   :  { %72 = vmatpush.msra.mxu0 %v17_v29 }
  0x1f   :  { %92 = vmatpush.msra.mxu1 %v33_v30 }
  0x20   :  { %73 = vmatpush.msra.mxu0 %v16_v31 }
  0x21   :  { %93 = vmatpush.msra.mxu1 %v32_v32  ;;  %74 = vmatmul.f32.vlgmr.msra.gmra.mxu0 %v54_v33 }
  0x22   :  { %94 = vmatmul.f32.vlgmr.msra.gmra.mxu1 %v55_v34 }
  0x9e   :  { %v75_v36 = vpop.f32.mrf.mxu0 }
  0x9f   :  { %v95_v37 = vpop.f32.mrf.mxu1  ;;  %v76_v38 = vadd.f32 %v129_v35, %v75_v36 }
  0xa1   :  { %v96_v39 = vadd.f32 %v95_v37, %v76_v38 }
  0xa3   :  { %v99_v40 = vsel %vm98_vm0, %v96_v39, -inf }
  0xa4   :  { %100 = vmax.xlane.f32.xlu0 %v99_v40 }
 0x117   :  { %v101_v41 = vpop.xlane.xlu0 %100 }
 0x118   :  { %v102_v42 = vsub.f32 %v96_v39, %v101_v41 }
 0x11a   :  { %v103_v43 = vmul.f32 1.442695, %v102_v42 }
 0x11c   :  { %130 = vpow2.f32 %v103_v43 }
 0x122   :  { %v131_v44 = vpop.eup %130 }
 0x123   :  { %v105_v45 = vsel %vm98_vm0, %v131_v44, 0.0 }
 0x124   :  { %106 = vadd.xlane.f32.xlu0 %v105_v45 }
 0x197   :  { %v107_v46 = vpop.xlane.xlu0 %106 }
 0x198   :  { %132 = vlog2.f32 %v107_v46 }
 0x19e   :  { %v133_v47 = vpop.eup %132 }
 0x19f   :  { %v109_v48 = vmul.f32 0.6931472, %v133_v47 }
 0x1a1   :  { %v110_v49 = vsub.f32 %v102_v42, %v109_v48 }
 0x1a3   :  { %111 = vst [vmem:[#allocation2] sm:$0x3] %v110_v49 }
 0x1a4   :  { %122 = dma.vmem_to_hbm [thread:$0]  %s118_s24, 32, %s120_s26, [#allocation3]  }
 0x1a5   :  { %158 = dma.done.wait [#allocation3], 32  }
 0x1a6   :  { %159 = vsyncadd [#allocation3], 4294967264 }
 0x1a7   :  { %127 = vsyncpa [#allocation3], 1 }

</bundles_post_ra>
